<compile_context>
chip_gen: v7x
topology: tpu7x:2x2x1
jax: 0.10.0
libtpu: 0.0.40
codegen_flags: <defaults>
</compile_context>

<pallas_src>
import functools

import jax
import jax.numpy as jnp
from jax.experimental import pallas as pl
from jax.experimental.pallas import tpu as pltpu


@functools.lru_cache(maxsize=1)
def _vmem_limit():
    """Per-generation VMEM budget: ~75% of physical, capped at 100 MiB."""
    cap = 64 * 1024 * 1024
    try:
        cap = int(pltpu.get_tpu_info().vmem_capacity_bytes)
    except Exception:
        pass
    return min(cap * 3 // 4, 100 * 1024 * 1024)


def _pick_chunk(hw, cap=8192):
    """Largest lane-dense (multiple of 128) chunk dividing hw; else full hw."""
    top = min(hw, cap) // 128
    for m in range(top, 0, -1):
        c = m * 128
        if hw % c == 0:
            return c
    return hw


def _pick_rows(H, W, max_pixels=8192):
    """Rows per strip for kernel 1: lane-dense strips, >=2 strips when possible."""
    for rows in range(H, 0, -1):
        if H % rows:
            continue
        P = rows * W
        if rows != H and (P % 128 != 0 or P > max_pixels):
            continue
        if H // rows >= 2:
            return rows
    return H


# ---------------------------------------------------------------------------
# Kernel 1 (fused): qkv 1x1 conv + 3x3 depthwise conv (padding=1, groups=3C).
# Channels-first row strip; halo rows come from the neighbour-strip inputs.
# ---------------------------------------------------------------------------
def _qkv_dwconv_kernel(xu_ref, x_ref, xd_ref, wq_ref, bq_ref, wd_ref, bd_ref,
                       out_ref, *, W):
    si = pl.program_id(1)
    ns = pl.num_programs(1)
    C3, P = out_ref.shape

    # padded 1x1-conv input along the lane (pixel) axis:
    #   [ zero | top-halo row | strip | bottom-halo row | zero ]
    x_mid = x_ref[...]                              # (C, P)
    x_top = xu_ref[...][:, P - W:]                  # last row of the strip above
    x_bot = xd_ref[...][:, :W]                      # first row of the strip below
    zcol = jnp.zeros((x_mid.shape[0], 1), x_mid.dtype)
    xpad = jnp.concatenate([zcol, x_top, x_mid, x_bot, zcol], axis=1)

    # single MXU matmul for the 1x1 conv over the whole padded strip
    ypad = jnp.dot(wq_ref[...], xpad,
                   preferred_element_type=jnp.float32) + bq_ref[...]

    # zero the positions outside the image so the depthwise conv sees zero padding
    width = P + 2 * W + 2
    pos = jax.lax.broadcasted_iota(jnp.int32, (1, width), 1)
    valid = jnp.logical_and(pos > 0, pos < width - 1)
    valid = jnp.logical_and(valid, jnp.logical_or(pos >= 1 + W, si > 0))
    valid = jnp.logical_and(valid, jnp.logical_or(pos < 1 + W + P, si < ns - 1))
    ypad = jnp.where(valid, ypad, 0.0)

    # column-edge masks (j == 0 / j == W-1) for the +-1 column taps, from iota
    col = jax.lax.broadcasted_iota(jnp.int32, (1, P), 1) % W
    not_first = col != 0
    not_last = col != (W - 1)

    wd = wd_ref[...]                                # (3C, 9) per-channel tap weights
    acc = jnp.zeros((C3, P), jnp.float32)
    for ki in range(3):
        for kj in range(3):
            start = 1 + W + (ki - 1) * W + (kj - 1)
            tap = ypad[:, start:start + P]          # static slice of the padded strip
            if kj == 0:
                tap = jnp.where(not_first, tap, 0.0)
            elif kj == 2:
                tap = jnp.where(not_last, tap, 0.0)
            t = ki * 3 + kj
            acc = acc + tap * wd[:, t:t + 1]
    out_ref[...] = (acc + bd_ref[...]).astype(out_ref.dtype)


def qkv_dwconv(x, w_qkv, b_qkv, w_dw, b_dw, H, W):
    """x: (b, C, H*W) f32 -> fused qkv slab (b, 3C, H*W) bf16 (channels-first)."""
    b, C, hw = x.shape
    C3 = 3 * C
    rows = _pick_rows(H, W)
    P = rows * W
    ns = H // rows

    wq_t = w_qkv.T                                  # (3C, C)   y = Wq @ x
    wd_t = w_dw.reshape(9, C3).T                    # (3C, 9)   tap = ki*3 + kj

    kernel = functools.partial(_qkv_dwconv_kernel, W=W)

    def full(shape):
        return pl.BlockSpec(shape, lambda bi, si: (0,) * len(shape))

    x_mid = pl.BlockSpec((None, C, P), lambda bi, si: (bi, 0, si))
    x_up = pl.BlockSpec((None, C, P),
                        lambda bi, si: (bi, 0, jnp.maximum(si - 1, 0)))
    x_dn = pl.BlockSpec((None, C, P),
                        lambda bi, si: (bi, 0, jnp.minimum(si + 1, ns - 1)))

    return pl.pallas_call(
        kernel,
        out_shape=jax.ShapeDtypeStruct((b, C3, hw), jnp.bfloat16),
        grid=(b, ns),
        in_specs=[x_up, x_mid, x_dn,
                  full((C3, C)), full((C3, 1)), full((C3, 9)), full((C3, 1))],
        out_specs=pl.BlockSpec((None, C3, P), lambda bi, si: (bi, 0, si)),
        compiler_params=pltpu.CompilerParams(
            dimension_semantics=("parallel", "parallel"),
            vmem_limit_bytes=_vmem_limit()),
    )(x, x, x, wq_t, b_qkv.reshape(C3, 1), wd_t, b_dw.reshape(C3, 1))


# ---------------------------------------------------------------------------
# Kernel 2: streamed channel-attention statistics -> combined mixing matrix
#   MT = W_proj @ blockdiag(softmax(norm(q)·norm(k)^T · T))      (b, C, C)
# ---------------------------------------------------------------------------
def _attn_mix_kernel(qk_ref, w_ref, t_ref, mt_ref, s_acc, qss, kss, *, nh):
    ci = pl.program_id(1)
    C = qk_ref.shape[0] // 2
    ch = C // nh

    @pl.when(ci == 0)
    def _init():
        s_acc[...] = jnp.zeros_like(s_acc)
        qss[...] = jnp.zeros_like(qss)
        kss[...] = jnp.zeros_like(kss)

    qk = qk_ref[...]                                 # (2C, chunk) bf16
    q = qk[:C, :]
    k = qk[C:, :]
    # one full (C, C) Gram per chunk: long contraction over hw, bf16 MXU, f32 acc
    s_acc[...] += jax.lax.dot_general(
        q, k, (((1,), (1,)), ((), ())), preferred_element_type=jnp.float32)
    qf = q.astype(jnp.float32)
    kf = k.astype(jnp.float32)
    qss[...] += jnp.sum(qf * qf, axis=1, keepdims=True)            # (C, 1)
    # k's sum-of-squares is needed along lanes (Gram columns): a tiny M=1 matmul
    # does the transpose-reduce without relayout of the big tensors.
    ones = jnp.ones((1, kf.shape[1]), jnp.float32)
    kss[...] += jax.lax.dot_general(
        ones, kf * kf, (((1,), (1,)), ((), ())),
        preferred_element_type=jnp.float32)                        # (1, C)

    @pl.when(ci == pl.num_programs(1) - 1)
    def _finalize():
        eps2 = 1e-24                                 # F.normalize eps (1e-12) squared
        inv_q = jax.lax.rsqrt(jnp.maximum(qss[...], eps2))          # (C, 1)
        inv_k = jax.lax.rsqrt(jnp.maximum(kss[...], eps2))          # (1, C)
        s_n = s_acc[...] * inv_q * inv_k                            # normalized Gram
        w = w_ref[...]                                              # (C, C) = (out, in)
        cols = []
        for h in range(nh):
            lo, hi = h * ch, (h + 1) * ch
            logits = s_n[lo:hi, lo:hi] * t_ref[h]
            logits = logits - jnp.max(logits, axis=-1, keepdims=True)
            e = jnp.exp(logits)
            p = e / jnp.sum(e, axis=-1, keepdims=True)              # (ch, ch)
            # fold the output projection: MT[:, lo:hi] = Wproj[:, lo:hi] @ P_h
            cols.append(jnp.dot(w[:, lo:hi], p,
                                preferred_element_type=jnp.float32))
        mt_ref[...] = jnp.concatenate(cols, axis=1).astype(mt_ref.dtype)


def attn_mix(qkv, w_proj_t, temperature, num_heads):
    b, c3, hw = qkv.shape
    C = c3 // 3
    chunk = _pick_chunk(hw)
    kernel = functools.partial(_attn_mix_kernel, nh=num_heads)
    return pl.pallas_call(
        kernel,
        out_shape=jax.ShapeDtypeStruct((b, C, C), jnp.float32),
        grid=(b, hw // chunk),
        in_specs=[
            pl.BlockSpec((None, 2 * C, chunk), lambda bi, ci: (bi, 0, ci)),  # q|k
            pl.BlockSpec((C, C), lambda bi, ci: (0, 0)),
            pl.BlockSpec(memory_space=pltpu.MemorySpace.SMEM),               # temp
        ],
        out_specs=pl.BlockSpec((None, C, C), lambda bi, ci: (bi, 0, 0)),
        scratch_shapes=[
            pltpu.VMEM((C, C), jnp.float32),
            pltpu.VMEM((C, 1), jnp.float32),
            pltpu.VMEM((1, C), jnp.float32),
        ],
        compiler_params=pltpu.CompilerParams(
            dimension_semantics=("parallel", "arbitrary"),
            vmem_limit_bytes=_vmem_limit()),
    )(qkv, w_proj_t, temperature)


# ---------------------------------------------------------------------------
# Kernel 3 (fused): attention apply + 1x1 projection:  out = MT @ v + b_proj
# ---------------------------------------------------------------------------
def _apply_project_kernel(mt_ref, v_ref, bp_ref, o_ref):
    m = mt_ref[...].astype(v_ref.dtype)              # bf16 MXU path
    o = jnp.dot(m, v_ref[...], preferred_element_type=jnp.float32) + bp_ref[...]
    o_ref[...] = o.astype(o_ref.dtype)


def apply_project(mt, qkv, b_proj):
    b, c3, hw = qkv.shape
    C = c3 // 3
    chunk = _pick_chunk(hw)
    return pl.pallas_call(
        _apply_project_kernel,
        out_shape=jax.ShapeDtypeStruct((b, C, hw), jnp.float32),
        grid=(b, hw // chunk),
        in_specs=[
            pl.BlockSpec((None, C, C), lambda bi, ci: (bi, 0, 0)),
            pl.BlockSpec((None, C, chunk), lambda bi, ci: (bi, 2, ci)),      # v block
            pl.BlockSpec((C, 1), lambda bi, ci: (0, 0)),
        ],
        out_specs=pl.BlockSpec((None, C, chunk), lambda bi, ci: (bi, 0, ci)),
        compiler_params=pltpu.CompilerParams(
            dimension_semantics=("parallel", "parallel"),
            vmem_limit_bytes=_vmem_limit()),
    )(mt, qkv, b_proj.reshape(C, 1))


# ---------------------------------------------------------------------------
# Full forward (wrapper = reshapes + tiny parameter transposes only)
# ---------------------------------------------------------------------------
def attention_forward(x_nchw, params, num_heads):
    b, c, h, w = x_nchw.shape
    x = x_nchw.reshape(b, c, h * w)                  # NCHW is already channels-first

    qkv = qkv_dwconv(x, params["w_qkv"], params["b_qkv"],
                     params["w_dw"], params["b_dw"], h, w)      # (b, 3c, hw) bf16

    temp = params["temperature"].reshape(num_heads).astype(jnp.float32)
    mt = attn_mix(qkv, params["w_proj"].T, temp, num_heads)     # (b, c, c) f32
    out = apply_project(mt, qkv, params["b_proj"])              # (b, c, hw) f32
    return out.reshape(b, c, h, w)


# ---------------------------------------------------------------------------
# Pure-JAX reference (mirrors the PyTorch forward in NCHW)
# ---------------------------------------------------------------------------
def reference_forward(x, params, num_heads):
    b, c, h, w = x.shape
    qkv = jnp.einsum("bchw,cd->bdhw", x, params["w_qkv"]) \
        + params["b_qkv"][None, :, None, None]
    xp = jnp.pad(qkv, ((0, 0), (0, 0), (1, 1), (1, 1)))
    acc = jnp.zeros_like(qkv)
    for ki in range(3):
        for kj in range(3):
            acc = acc + xp[:, :, ki:ki + h, kj:kj + w] \
                * params["w_dw"][ki, kj][None, :, None, None]
    qkv = acc + params["b_dw"][None, :, None, None]
    q, k, v = jnp.split(qkv, 3, axis=1)
    c_head = c // num_heads
    rs = lambda t: t.reshape(b, num_heads, c_head, h * w)
    q, k, v = rs(q), rs(k), rs(v)
    q = q / jnp.maximum(jnp.linalg.norm(q, axis=-1, keepdims=True), 1e-12)
    k = k / jnp.maximum(jnp.linalg.norm(k, axis=-1, keepdims=True), 1e-12)
    attn = jnp.einsum("bhcd,bhed->bhce", q, k) * params["temperature"][None]
    attn = jax.nn.softmax(attn, axis=-1)
    out = jnp.einsum("bhce,bhed->bhcd", attn, v).reshape(b, c, h, w)
    out = jnp.einsum("bchw,cd->bdhw", out, params["w_proj"]) \
        + params["b_proj"][None, :, None, None]
    return out


def init_params(key, dim, num_heads):
    ks = jax.random.split(key, 7)
    return {
        "temperature": 1.0 + 0.1 * jax.random.normal(ks[6], (num_heads, 1, 1),
                                                     jnp.float32),
        # stored as (in, out); equals torch Conv2d weight[:, :, 0, 0].T
        "w_qkv": 0.1 * jax.random.normal(ks[0], (dim, 3 * dim), jnp.float32),
        "b_qkv": 0.1 * jax.random.normal(ks[1], (3 * dim,), jnp.float32),
        # depthwise weight stored as (3, 3, 3C); equals torch weight[ch, 0, ki, kj]
        "w_dw": 0.1 * jax.random.normal(ks[2], (3, 3, 3 * dim), jnp.float32),
        "b_dw": 0.1 * jax.random.normal(ks[3], (3 * dim,), jnp.float32),
        "w_proj": 0.1 * jax.random.normal(ks[4], (dim, dim), jnp.float32),
        "b_proj": 0.1 * jax.random.normal(ks[5], (dim,), jnp.float32),
    }


if __name__ == "__main__":
    jax.config.update("jax_default_matmul_precision", "highest")

    key = jax.random.PRNGKey(0)
    k_x, k_p = jax.random.split(key)

    b, dim, num_heads, h, w = 2, 32, 4, 16, 16
    x = jax.random.normal(k_x, (b, dim, h, w), jnp.float32)
    params = init_params(k_p, dim, num_heads)

    out = attention_forward(x, params, num_heads)
    out = jax.block_until_ready(out)

    ref = jax.block_until_ready(reference_forward(x, params, num_heads))
    assert out.shape == (b, dim, h, w)
    # tolerance accounts for bf16 storage of the qkv slab / mixing matrix
    assert jnp.allclose(out, ref, atol=2e-2, rtol=2e-2), \
        f"max abs err {jnp.max(jnp.abs(out - ref))}"

    print("KERNEL_OK")
</pallas_src>

<mosaic_0001>
module attributes {stable_mosaic.version = 11 : i64} {
  func.func @_qkv_dwconv_kernel(%arg0: i32, %arg1: i32, %arg2: memref<1x32x128xf32, #tpu.memory_space<vmem>>, %arg3: memref<1x32x128xf32, #tpu.memory_space<vmem>>, %arg4: memref<1x32x128xf32, #tpu.memory_space<vmem>>, %arg5: memref<96x32xf32, #tpu.memory_space<vmem>>, %arg6: memref<96x1xf32, #tpu.memory_space<vmem>>, %arg7: memref<96x9xf32, #tpu.memory_space<vmem>>, %arg8: memref<96x1xf32, #tpu.memory_space<vmem>>, %arg9: memref<1x96x128xbf16, #tpu.memory_space<vmem>>) attributes {dimension_semantics = [#tpu.dimension_semantics<parallel>, #tpu.dimension_semantics<parallel>], iteration_bounds = array<i64: 2, 2>, scalar_prefetch = 0 : i64, scratch_operands = 0 : i64, tpu.core_type = #tpu.core_type<tc>, window_params = [{transform_indices = @transform_0, window_bounds = array<i64: 1, 32, 128>}, {transform_indices = @transform_1, window_bounds = array<i64: 1, 32, 128>}, {transform_indices = @transform_2, window_bounds = array<i64: 1, 32, 128>}, {pipeline_mode = #tpu.pipeline_mode<synchronous>, transform_indices = @transform_3, window_bounds = array<i64: 96, 32>}, {pipeline_mode = #tpu.pipeline_mode<synchronous>, transform_indices = @transform_4, window_bounds = array<i64: 96, 1>}, {pipeline_mode = #tpu.pipeline_mode<synchronous>, transform_indices = @transform_5, window_bounds = array<i64: 96, 9>}, {pipeline_mode = #tpu.pipeline_mode<synchronous>, transform_indices = @transform_6, window_bounds = array<i64: 96, 1>}, {transform_indices = @transform_7, window_bounds = array<i64: 1, 96, 128>}]} {
    %c0 = arith.constant 0 : index
    %c0_0 = arith.constant 0 : index
    %c0_1 = arith.constant 0 : index
    %0 = vector.load %arg3[%c0, %c0_0, %c0_1] : memref<1x32x128xf32, #tpu.memory_space<vmem>>, vector<1x32x128xf32>
    %1 = vector.shape_cast %0 : vector<1x32x128xf32> to vector<32x128xf32>
    %c0_2 = arith.constant 0 : index
    %c0_3 = arith.constant 0 : index
    %c0_4 = arith.constant 0 : index
    %2 = vector.load %arg2[%c0_2, %c0_3, %c0_4] : memref<1x32x128xf32, #tpu.memory_space<vmem>>, vector<1x32x128xf32>
    %3 = vector.shape_cast %2 : vector<1x32x128xf32> to vector<32x128xf32>
    %4 = vector.extract_strided_slice %3 {offsets = [0, 112], sizes = [32, 16], strides = [1, 1]} : vector<32x128xf32> to vector<32x16xf32>
    %c0_5 = arith.constant 0 : index
    %c0_6 = arith.constant 0 : index
    %c0_7 = arith.constant 0 : index
    %5 = vector.load %arg4[%c0_5, %c0_6, %c0_7] : memref<1x32x128xf32, #tpu.memory_space<vmem>>, vector<1x32x128xf32>
    %6 = vector.shape_cast %5 : vector<1x32x128xf32> to vector<32x128xf32>
    %7 = vector.extract_strided_slice %6 {offsets = [0, 0], sizes = [32, 16], strides = [1, 1]} : vector<32x128xf32> to vector<32x16xf32>
    %cst = arith.constant 0.000000e+00 : f32
    %8 = vector.broadcast %cst : f32 to vector<32x1xf32>
    %9 = tpu.concatenate %8, %4, %1, %7, %8 in 1 : vector<32x1xf32>, vector<32x16xf32>, vector<32x128xf32>, vector<32x16xf32>, vector<32x1xf32> -> vector<32x162xf32>
    %c0_8 = arith.constant 0 : index
    %c0_9 = arith.constant 0 : index
    %10 = vector.load %arg5[%c0_8, %c0_9] : memref<96x32xf32, #tpu.memory_space<vmem>>, vector<96x32xf32>
    %cst_10 = arith.constant dense<0.000000e+00> : vector<96x162xf32>
    %11 = tpu.matmul %10, %9, %cst_10 {dimension_numbers = #tpu.dot_dimension_numbers<[1], [0], [0], [1], [0, 0, 1, 1], [], []>, precision = #tpu.contract_precision<fp32>} : vector<96x32xf32>, vector<32x162xf32>, vector<96x162xf32> -> vector<96x162xf32>
    %c0_11 = arith.constant 0 : index
    %c0_12 = arith.constant 0 : index
    %12 = vector.load %arg6[%c0_11, %c0_12] : memref<96x1xf32, #tpu.memory_space<vmem>>, vector<96x1xf32>
    %13 = vector.broadcast %12 : vector<96x1xf32> to vector<96x162xf32>
    %14 = arith.addf %11, %13 : vector<96x162xf32>
    %15 = tpu.iota {dimensions = array<i32: 1>} : vector<1x162xi32>
    %c0_i32 = arith.constant 0 : i32
    %16 = vector.broadcast %c0_i32 : i32 to vector<1x162xi32>
    %17 = arith.cmpi sgt, %15, %16 : vector<1x162xi32>
    %c161_i32 = arith.constant 161 : i32
    %18 = vector.broadcast %c161_i32 : i32 to vector<1x162xi32>
    %19 = arith.cmpi slt, %15, %18 : vector<1x162xi32>
    %20 = arith.andi %17, %19 : vector<1x162xi1>
    %c17_i32 = arith.constant 17 : i32
    %21 = vector.broadcast %c17_i32 : i32 to vector<1x162xi32>
    %22 = arith.cmpi sge, %15, %21 : vector<1x162xi32>
    %c0_i32_13 = arith.constant 0 : i32
    %23 = arith.cmpi sgt, %arg1, %c0_i32_13 : i32
    %24 = vector.broadcast %23 : i1 to vector<1x162xi1>
    %25 = arith.ori %22, %24 : vector<1x162xi1>
    %26 = arith.andi %20, %25 : vector<1x162xi1>
    %c145_i32 = arith.constant 145 : i32
    %27 = vector.broadcast %c145_i32 : i32 to vector<1x162xi32>
    %28 = arith.cmpi slt, %15, %27 : vector<1x162xi32>
    %c1_i32 = arith.constant 1 : i32
    %29 = arith.cmpi slt, %arg1, %c1_i32 : i32
    %30 = vector.broadcast %29 : i1 to vector<1x162xi1>
    %31 = arith.ori %28, %30 : vector<1x162xi1>
    %32 = arith.andi %26, %31 : vector<1x162xi1>
    %cst_14 = arith.constant 0.000000e+00 : f32
    %33 = vector.shape_cast %32 : vector<1x162xi1> to vector<1x162xi1>
    %34 = vector.broadcast %33 : vector<1x162xi1> to vector<96x162xi1>
    %35 = vector.broadcast %cst_14 : f32 to vector<96x162xf32>
    %36 = arith.select %34, %14, %35 : vector<96x162xi1>, vector<96x162xf32>
    %37 = tpu.iota {dimensions = array<i32: 1>} : vector<1x128xi32>
    %c16_i32 = arith.constant 16 : i32
    %c0_i32_15 = arith.constant 0 : i32
    %38 = arith.cmpi eq, %c16_i32, %c0_i32_15 : i32
    %c1_i32_16 = arith.constant 1 : i32
    %39 = arith.select %38, %c1_i32_16, %c16_i32 : i32
    %40 = vector.broadcast %39 : i32 to vector<1x128xi32>
    %41 = arith.remsi %37, %40 : vector<1x128xi32>
    %c0_i32_17 = arith.constant 0 : i32
    %42 = vector.broadcast %c0_i32_17 : i32 to vector<1x128xi32>
    %43 = arith.cmpi ne, %41, %42 : vector<1x128xi32>
    %c0_i32_18 = arith.constant 0 : i32
    %44 = vector.broadcast %c0_i32_18 : i32 to vector<1x128xi32>
    %45 = arith.cmpi slt, %41, %44 : vector<1x128xi32>
    %c0_i32_19 = arith.constant 0 : i32
    %46 = arith.cmpi slt, %39, %c0_i32_19 : i32
    %47 = vector.broadcast %46 : i1 to vector<1x128xi1>
    %48 = vector.broadcast %47 : vector<1x128xi1> to vector<1x128xi1>
    %49 = arith.xori %45, %48 : vector<1x128xi1>
    %50 = arith.andi %49, %43 : vector<1x128xi1>
    %51 = vector.broadcast %39 : i32 to vector<1x128xi32>
    %52 = arith.addi %41, %51 : vector<1x128xi32>
    %53 = arith.select %50, %52, %41 : vector<1x128xi1>, vector<1x128xi32>
    %c0_i32_20 = arith.constant 0 : i32
    %54 = vector.broadcast %c0_i32_20 : i32 to vector<1x128xi32>
    %55 = arith.cmpi ne, %53, %54 : vector<1x128xi32>
    %c15_i32 = arith.constant 15 : i32
    %56 = vector.broadcast %c15_i32 : i32 to vector<1x128xi32>
    %57 = arith.cmpi ne, %53, %56 : vector<1x128xi32>
    %c0_21 = arith.constant 0 : index
    %c0_22 = arith.constant 0 : index
    %58 = vector.load %arg7[%c0_21, %c0_22] : memref<96x9xf32, #tpu.memory_space<vmem>>, vector<96x9xf32>
    %cst_23 = arith.constant 0.000000e+00 : f32
    %59 = vector.broadcast %cst_23 : f32 to vector<96x128xf32>
    %60 = vector.extract_strided_slice %36 {offsets = [0, 0], sizes = [96, 128], strides = [1, 1]} : vector<96x162xf32> to vector<96x128xf32>
    %cst_24 = arith.constant 0.000000e+00 : f32
    %61 = vector.shape_cast %55 : vector<1x128xi1> to vector<1x128xi1>
    %62 = vector.broadcast %61 : vector<1x128xi1> to vector<96x128xi1>
    %63 = vector.broadcast %cst_24 : f32 to vector<96x128xf32>
    %64 = arith.select %62, %60, %63 : vector<96x128xi1>, vector<96x128xf32>
    %65 = vector.extract_strided_slice %58 {offsets = [0, 0], sizes = [96, 1], strides = [1, 1]} : vector<96x9xf32> to vector<96x1xf32>
    %66 = vector.broadcast %65 : vector<96x1xf32> to vector<96x128xf32>
    %67 = arith.mulf %64, %66 : vector<96x128xf32>
    %68 = arith.addf %59, %67 : vector<96x128xf32>
    %69 = vector.extract_strided_slice %36 {offsets = [0, 1], sizes = [96, 128], strides = [1, 1]} : vector<96x162xf32> to vector<96x128xf32>
    %70 = vector.extract_strided_slice %58 {offsets = [0, 1], sizes = [96, 1], strides = [1, 1]} : vector<96x9xf32> to vector<96x1xf32>
    %71 = vector.broadcast %70 : vector<96x1xf32> to vector<96x128xf32>
    %72 = arith.mulf %69, %71 : vector<96x128xf32>
    %73 = arith.addf %68, %72 : vector<96x128xf32>
    %74 = vector.extract_strided_slice %36 {offsets = [0, 2], sizes = [96, 128], strides = [1, 1]} : vector<96x162xf32> to vector<96x128xf32>
    %cst_25 = arith.constant 0.000000e+00 : f32
    %75 = vector.shape_cast %57 : vector<1x128xi1> to vector<1x128xi1>
    %76 = vector.broadcast %75 : vector<1x128xi1> to vector<96x128xi1>
    %77 = vector.broadcast %cst_25 : f32 to vector<96x128xf32>
    %78 = arith.select %76, %74, %77 : vector<96x128xi1>, vector<96x128xf32>
    %79 = vector.extract_strided_slice %58 {offsets = [0, 2], sizes = [96, 1], strides = [1, 1]} : vector<96x9xf32> to vector<96x1xf32>
    %80 = vector.broadcast %79 : vector<96x1xf32> to vector<96x128xf32>
    %81 = arith.mulf %78, %80 : vector<96x128xf32>
    %82 = arith.addf %73, %81 : vector<96x128xf32>
    %83 = vector.extract_strided_slice %36 {offsets = [0, 16], sizes = [96, 128], strides = [1, 1]} : vector<96x162xf32> to vector<96x128xf32>
    %cst_26 = arith.constant 0.000000e+00 : f32
    %84 = vector.shape_cast %55 : vector<1x128xi1> to vector<1x128xi1>
    %85 = vector.broadcast %84 : vector<1x128xi1> to vector<96x128xi1>
    %86 = vector.broadcast %cst_26 : f32 to vector<96x128xf32>
    %87 = arith.select %85, %83, %86 : vector<96x128xi1>, vector<96x128xf32>
    %88 = vector.extract_strided_slice %58 {offsets = [0, 3], sizes = [96, 1], strides = [1, 1]} : vector<96x9xf32> to vector<96x1xf32>
    %89 = vector.broadcast %88 : vector<96x1xf32> to vector<96x128xf32>
    %90 = arith.mulf %87, %89 : vector<96x128xf32>
    %91 = arith.addf %82, %90 : vector<96x128xf32>
    %92 = vector.extract_strided_slice %36 {offsets = [0, 17], sizes = [96, 128], strides = [1, 1]} : vector<96x162xf32> to vector<96x128xf32>
    %93 = vector.extract_strided_slice %58 {offsets = [0, 4], sizes = [96, 1], strides = [1, 1]} : vector<96x9xf32> to vector<96x1xf32>
    %94 = vector.broadcast %93 : vector<96x1xf32> to vector<96x128xf32>
    %95 = arith.mulf %92, %94 : vector<96x128xf32>
    %96 = arith.addf %91, %95 : vector<96x128xf32>
    %97 = vector.extract_strided_slice %36 {offsets = [0, 18], sizes = [96, 128], strides = [1, 1]} : vector<96x162xf32> to vector<96x128xf32>
    %cst_27 = arith.constant 0.000000e+00 : f32
    %98 = vector.shape_cast %57 : vector<1x128xi1> to vector<1x128xi1>
    %99 = vector.broadcast %98 : vector<1x128xi1> to vector<96x128xi1>
    %100 = vector.broadcast %cst_27 : f32 to vector<96x128xf32>
    %101 = arith.select %99, %97, %100 : vector<96x128xi1>, vector<96x128xf32>
    %102 = vector.extract_strided_slice %58 {offsets = [0, 5], sizes = [96, 1], strides = [1, 1]} : vector<96x9xf32> to vector<96x1xf32>
    %103 = vector.broadcast %102 : vector<96x1xf32> to vector<96x128xf32>
    %104 = arith.mulf %101, %103 : vector<96x128xf32>
    %105 = arith.addf %96, %104 : vector<96x128xf32>
    %106 = vector.extract_strided_slice %36 {offsets = [0, 32], sizes = [96, 128], strides = [1, 1]} : vector<96x162xf32> to vector<96x128xf32>
    %cst_28 = arith.constant 0.000000e+00 : f32
    %107 = vector.shape_cast %55 : vector<1x128xi1> to vector<1x128xi1>
    %108 = vector.broadcast %107 : vector<1x128xi1> to vector<96x128xi1>
    %109 = vector.broadcast %cst_28 : f32 to vector<96x128xf32>
    %110 = arith.select %108, %106, %109 : vector<96x128xi1>, vector<96x128xf32>
    %111 = vector.extract_strided_slice %58 {offsets = [0, 6], sizes = [96, 1], strides = [1, 1]} : vector<96x9xf32> to vector<96x1xf32>
    %112 = vector.broadcast %111 : vector<96x1xf32> to vector<96x128xf32>
    %113 = arith.mulf %110, %112 : vector<96x128xf32>
    %114 = arith.addf %105, %113 : vector<96x128xf32>
    %115 = vector.extract_strided_slice %36 {offsets = [0, 33], sizes = [96, 128], strides = [1, 1]} : vector<96x162xf32> to vector<96x128xf32>
    %116 = vector.extract_strided_slice %58 {offsets = [0, 7], sizes = [96, 1], strides = [1, 1]} : vector<96x9xf32> to vector<96x1xf32>
    %117 = vector.broadcast %116 : vector<96x1xf32> to vector<96x128xf32>
    %118 = arith.mulf %115, %117 : vector<96x128xf32>
    %119 = arith.addf %114, %118 : vector<96x128xf32>
    %120 = vector.extract_strided_slice %36 {offsets = [0, 34], sizes = [96, 128], strides = [1, 1]} : vector<96x162xf32> to vector<96x128xf32>
    %cst_29 = arith.constant 0.000000e+00 : f32
    %121 = vector.shape_cast %57 : vector<1x128xi1> to vector<1x128xi1>
    %122 = vector.broadcast %121 : vector<1x128xi1> to vector<96x128xi1>
    %123 = vector.broadcast %cst_29 : f32 to vector<96x128xf32>
    %124 = arith.select %122, %120, %123 : vector<96x128xi1>, vector<96x128xf32>
    %125 = vector.extract_strided_slice %58 {offsets = [0, 8], sizes = [96, 1], strides = [1, 1]} : vector<96x9xf32> to vector<96x1xf32>
    %126 = vector.broadcast %125 : vector<96x1xf32> to vector<96x128xf32>
    %127 = arith.mulf %124, %126 : vector<96x128xf32>
    %128 = arith.addf %119, %127 : vector<96x128xf32>
    %c0_30 = arith.constant 0 : index
    %c0_31 = arith.constant 0 : index
    %129 = vector.load %arg8[%c0_30, %c0_31] : memref<96x1xf32, #tpu.memory_space<vmem>>, vector<96x1xf32>
    %130 = vector.broadcast %129 : vector<96x1xf32> to vector<96x128xf32>
    %131 = arith.addf %128, %130 : vector<96x128xf32>
    %132 = arith.truncf %131 : vector<96x128xf32> to vector<96x128xbf16>
    %c0_32 = arith.constant 0 : index
    %c0_33 = arith.constant 0 : index
    %c0_34 = arith.constant 0 : index
    %133 = vector.load %arg9[%c0_32, %c0_33, %c0_34] : memref<1x96x128xbf16, #tpu.memory_space<vmem>>, vector<1x96x128xbf16>
    %134 = vector.shape_cast %133 : vector<1x96x128xbf16> to vector<96x128xbf16>
    %135 = vector.shape_cast %132 : vector<96x128xbf16> to vector<1x96x128xbf16>
    tpu.vector_store %arg9[%c0_32, %c0_33, %c0_34], %135 {strides = array<i32>} : memref<1x96x128xbf16, #tpu.memory_space<vmem>>, vector<1x96x128xbf16>,
    return
  }
  func.func @transform_0(%arg0: i32, %arg1: i32) -> (i32, i32, i32) {
    %c1_i32 = arith.constant 1 : i32
    %0 = arith.subi %arg1, %c1_i32 : i32
    %c0_i32 = arith.constant 0 : i32
    %1 = arith.maxsi %0, %c0_i32 : i32
    %c0_i32_0 = arith.constant 0 : i32
    %c0_i32_1 = arith.constant 0 : i32
    return %arg0, %c0_i32_0, %1 : i32, i32, i32
  }
  func.func @transform_1(%arg0: i32, %arg1: i32) -> (i32, i32, i32) {
    %c0_i32 = arith.constant 0 : i32
    %c0_i32_0 = arith.constant 0 : i32
    return %arg0, %c0_i32, %arg1 : i32, i32, i32
  }
  func.func @transform_2(%arg0: i32, %arg1: i32) -> (i32, i32, i32) {
    %c1_i32 = arith.constant 1 : i32
    %0 = arith.addi %arg1, %c1_i32 : i32
    %c1_i32_0 = arith.constant 1 : i32
    %1 = arith.minsi %0, %c1_i32_0 : i32
    %c0_i32 = arith.constant 0 : i32
    %c0_i32_1 = arith.constant 0 : i32
    return %arg0, %c0_i32, %1 : i32, i32, i32
  }
  func.func @transform_3(%arg0: i32, %arg1: i32) -> (i32, i32) {
    %c0_i32 = arith.constant 0 : i32
    %c0_i32_0 = arith.constant 0 : i32
    %c0_i32_1 = arith.constant 0 : i32
    return %c0_i32, %c0_i32_0 : i32, i32
  }
  func.func @transform_4(%arg0: i32, %arg1: i32) -> (i32, i32) {
    %c0_i32 = arith.constant 0 : i32
    %c0_i32_0 = arith.constant 0 : i32
    %c0_i32_1 = arith.constant 0 : i32
    return %c0_i32, %c0_i32_0 : i32, i32
  }
  func.func @transform_5(%arg0: i32, %arg1: i32) -> (i32, i32) {
    %c0_i32 = arith.constant 0 : i32
    %c0_i32_0 = arith.constant 0 : i32
    %c0_i32_1 = arith.constant 0 : i32
    return %c0_i32, %c0_i32_0 : i32, i32
  }
  func.func @transform_6(%arg0: i32, %arg1: i32) -> (i32, i32) {
    %c0_i32 = arith.constant 0 : i32
    %c0_i32_0 = arith.constant 0 : i32
    %c0_i32_1 = arith.constant 0 : i32
    return %c0_i32, %c0_i32_0 : i32, i32
  }
  func.func @transform_7(%arg0: i32, %arg1: i32) -> (i32, i32, i32) {
    %c0_i32 = arith.constant 0 : i32
    %c0_i32_0 = arith.constant 0 : i32
    return %arg0, %c0_i32, %arg1 : i32, i32, i32
  }
}

</mosaic_0001>

<bundles_post_ra>
// kernel: tpu_custom_call.1
= control target key start
LH: loop header
LB: loop body
LE: loop exit
PB: predicated region body
PF: predicated region fallthrough
CT: control target
= control target key end

     0   :  { %s6736_s0 = inlined_call_operand.vmem [shape: f32[2,32,256], index: 0, kind: input, shape index: {}]   ;;  %s6737_s1 = inlined_call_operand.vmem [shape: f32[2,32,256], index: 1, kind: input, shape index: {}]   ;;  %s6738_s2 = inlined_call_operand.vmem [shape: f32[2,32,256], index: 2, kind: input, shape index: {}]   ;;  %s6739_s3 = inlined_call_operand.vmem [shape: f32[96,32], index: 3, kind: input, shape index: {}]   ;;  %s6740_s4 = inlined_call_operand.vmem [shape: f32[96,1], index: 4, kind: input, shape index: {}]   ;;  %s6741_s5 = inlined_call_operand.vmem [shape: f32[96,9], index: 5, kind: input, shape index: {}]   ;;  %s6742_s6 = inlined_call_operand.vmem [shape: f32[96,1], index: 6, kind: input, shape index: {}]   ;;  %s6743_s7 = inlined_call_operand.hbm [shape: bf16[2,96,256], index: 7, kind: output, shape index: {}]  }
   0x1   :  { %6812 = sst [smem:[#allocation177_spill]] %s6736_s0 }
   0x2   :  { %6813 = sst [smem:[#allocation178_spill]] %s6743_s7 }
   0x3   :  { %12 = vsyncpa [#allocation6], 0 }
   0x4   :  { %14 = vsyncpa [#allocation6 + $0x1], 0  ;;  %s4232_s24 = smov 0   ;;  %s4234_s25 = smov 0  }
   0x5   :  { %s4236_s26 = smov 0   ;;  %s4238_s27 = smov 0  }
   0x6   :  { %s4240_s28 = smov 0   ;;  %s4242_s29 = smov 0  }
   0x7   :  { %s4244_s30 = smov 0   ;;  %s4246_s8 = smov 0  }
   0x8   :  { %s4248_s9 = smov 0   ;;  %s4250_s10 = smov 0  }
   0x9   :  { %s4252_s11 = smov 0   ;;  %s4254_s12 = smov 0  }
   0xa LB: > { %6814 = sst [smem:[#allocation8_spill]] %s4123_s24  ;;  %s3604_s13 = sadd.s32 4294967295, %s4167_s12   ;;  %s4167_s12 = sphi %s4254_s12, %s20_s12   ;;  %s4163_s11 = sphi %s4252_s11, %s7219_s11   ;;  %s4159_s10 = sphi %s4250_s10, %s7218_s10   ;;  %s4155_s9 = sphi %s4248_s9, %s7217_s9   ;;  %s4151_s8 = sphi %s4246_s8, %s7216_s8   ;;  %s4147_s30 = sphi %s4244_s30, %s7208_s30   ;;  %s4143_s29 = sphi %s4242_s29, %s7207_s29   ;;  %s4139_s28 = sphi %s4240_s28, %s7215_s28   ;;  %s4135_s27 = sphi %s4238_s27, %s7214_s27   ;;  %s4131_s26 = sphi %s4236_s26, %s7213_s26   ;;  %s4127_s25 = sphi %s4234_s25, %s7212_s25   ;;  %s4123_s24 = sphi %s4232_s24, %s7211_s24  }
   0xb   : > { %6815 = sst [smem:[#allocation9_spill]] %s4147_s30  ;;  %s3605_s14 = sadd.s32 4294967294, %s4167_s12  }
   0xc   : > { %s29_s15 = sadd.s32 1, %s4159_s10  ;;  %s32_s16 = sadd.s32 1, %s4163_s11 }
   0xd   : > { %p30_p0 = scmp.ge.s32.totalorder %s29_s15, 2  ;;  %s47_s17 = sadd.s32 1, %s4147_s30 }
   0xe   : > { %p54_p2 = scmp.ne.s32.totalorder %s4147_s30, %s4143_s29  ;;  %p55_p3 = scmp.eq.s32.totalorder %s4167_s12, 0 }
   0xf   : > { %s7221_s15 = smov (%p30_p0, %s29_s15), 0  ;;  %s7223_s16 = smov (!%p30_p0, %s32_s16), %s4163_s11 }
  0x10   : > { %6816 = sst [smem:[#allocation10_spill]] %s7221_s15  ;;  %p34_p1 = scmp.ge.s32.totalorder %s7223_s16, 2 }
  0x11   : > { %s71_s19 = ssub.s32 %s4159_s10, %s7221_s15  ;;  %p4311_p4 = por %p55_p3, %p54_p2 }
  0x12   : > { %s7225_s16 = smov (%p34_p1, %s7223_s16), 0  ;;  %s75_s22 = sadd.s32 1, %s4139_s28 }
  0x13   : > { %6817 = sst [smem:[#allocation11_spill]] %s7225_s16  ;;  %s42_s18 = ssub.s32 %s4163_s11, %s7225_s16 }
  0x14   : > { %p45_p5 = scmp.eq.s32.totalorder %s42_s18, 0  ;;  %s72_s21 = sor.u32 %s71_s19, %s42_s18 }
  0x15   : > { %p73_p6 = scmp.eq.s32.totalorder %s72_s21, 0  ;;  %p82_p7 = scmp.ne.s32.totalorder %s4139_s28, %s4135_s27 }
  0x16   : > { %s4318_s23 = scalar_select %p45_p5, %s4147_s30, %s47_s17  }
  0x17   : > { %s4321_s7 = scalar_select %p73_p6, %s4139_s28, %s75_s22  }
  0x18   : > { %6819 = sst [smem:[#allocation12_spill]] %s4318_s23  ;;  %s109_s16 = sadd.s32 1, %s4131_s26 }
  0x19   : > { %6820 = sst [smem:[#allocation13_spill]] %s4321_s7  ;;  %p4328_p8 = por %p82_p7, %p55_p3 }
  0x1a   : > { %p116_p9 = scmp.ne.s32.totalorder %s4131_s26, %s4127_s25  ;;  %p232_p10 = scmp.eq.s32.totalorder %s3604_s13, 3 }
  0x1b   : > { %p237_p11 = scmp.ne.s32.totalorder %s4135_s27, %s4123_s24  ;;  %p238_p0 = scmp.eq.s32.totalorder %s3605_s14, 3 }
  0x1c   : > { %p4338_p12 = por %p116_p9, %p55_p3  ;;  %p4342_p13 = por %p232_p10, %p82_p7 }
  0x1d   : > { %s4348_s21 = scalar_select %p45_p5, %s4131_s26, %s109_s16  }
  0x1e   : > { %p4350_p1 = por %p238_p0, %p237_p11  ;;  %p3609_p2 = scmp.ge.s32.totalorder %s4167_s12, 4 }
  0x20   : > { %266 = sbr.rel (%p3609_p2) target bundleno = 66 (0x42), region = 32 }
  0x27   : > { %269 = sbr.rel (!%p4311_p4) target bundleno = 51 (0x33), region = 36  ;;  %s271_s13 = sand.u32 (%p4311_p4), 1, %s4147_s30  }
  0x28   : > { %s3610_s23 = sshll.u32 (%p4311_p4), %s271_s13, 5  ;;  %s4117_s7 = sshll.u32 (%p4311_p4), %s4163_s11, 6 }
  0x29   : > { %s6825_s0 = sld [smem:[#allocation177_spill]] (%p4311_p4)  ;;  %s273_s18 = scalar_lea.vmem (%p4311_p4), [#allocation2], %s3610_s23 }
  0x2f   : > { %s280_s16 = scalar_lea.vmem %s6825_s0, %s4117_s7 }
  0x30   : > { %v314_v0 = vld [vmem:[%s280_s16] sm:$0xff]  ;;  %v316_v1 = vld [vmem:[%s280_s16 + $0x10] sm:$0xff] }
  0x31   : > { %v318_v2 = vld [vmem:[%s280_s16 + $0x20] sm:$0xff]  ;;  %315 = vst [vmem:[%s273_s18] sm:$0xff] %v314_v0  ;;  %317 = vst [vmem:[%s273_s18 + $0x8] sm:$0xff] %v316_v1  ;;  %v320_v3 = vld [vmem:[%s280_s16 + $0x30] sm:$0xff] }
  0x32   : > { %319 = vst [vmem:[%s273_s18 + $0x10] sm:$0xff] %v318_v2  ;;  %321 = vst [vmem:[%s273_s18 + $0x18] sm:$0xff] %v320_v3 }
  0x33 PF: > { %327 = sbr.rel (!%p4328_p8) target bundleno = 59 (0x3b), region = 74  ;;  %s329_s20 = sand.u32 (%p4328_p8), 1, %s4139_s28  }
  0x34   : > { %s3615_s13 = sshll.u32 (%p4328_p8), %s4163_s11, 3  ;;  %s3614_s24 = sshll.u32 (%p4328_p8), %s329_s20, 5 }
  0x35   : > { %s333_s7 = sadd.s32 (%p4328_p8), %s4159_s10, %s3615_s13  ;;  %s331_s16 = scalar_lea.vmem (%p4328_p8), [#allocation3], %s3614_s24 }
  0x36   : > { %s3616_s14 = sshll.u32 (%p4328_p8), %s333_s7, 3 }
  0x37   : > { %s335_s23 = scalar_lea.vmem (%p4328_p8), %s6737_s1, %s3616_s14 }
  0x38   : > { %v369_v4 = vld [vmem:[%s335_s23] sm:$0xff] (%p4328_p8)  ;;  %v371_v5 = vld [vmem:[%s335_s23 + $0x10] sm:$0xff] (%p4328_p8) }
  0x39   : > { %v373_v6 = vld [vmem:[%s335_s23 + $0x20] sm:$0xff] (%p4328_p8)  ;;  %370 = vst [vmem:[%s331_s16] sm:$0xff] (%p4328_p8), %v369_v4  ;;  %372 = vst [vmem:[%s331_s16 + $0x8] sm:$0xff] (%p4328_p8), %v371_v5  ;;  %v375_v7 = vld [vmem:[%s335_s23 + $0x30] sm:$0xff] (%p4328_p8) }
  0x3a   : > { %374 = vst [vmem:[%s331_s16 + $0x10] sm:$0xff] %v373_v6  ;;  %376 = vst [vmem:[%s331_s16 + $0x18] sm:$0xff] %v375_v7 }
  0x3b PF: > { %382 = sbr.rel (!%p4338_p12) target bundleno = 66 (0x42), region = 112  ;;  %s384_s15 = sand.u32 (%p4338_p12), 1, %s4131_s26  }
  0x3c   : > { %s3617_s18 = sshll.u32 (%p4338_p12), %s384_s15, 5  ;;  %s4120_s20 = sshll.u32 (%p4338_p12), %s4163_s11, 6 }
  0x3d   : > { %s4119_s0 = sadd.s32 (%p4338_p12), 8, %s4120_s20  ;;  %s386_s24 = scalar_lea.vmem (%p4338_p12), [#allocation4], %s3617_s18 }
  0x3e   : > { %s393_s7 = scalar_lea.vmem (%p4338_p12), %s6738_s2, %s4119_s0 }
  0x3f   : > { %v427_v8 = vld [vmem:[%s393_s7] sm:$0xff] (%p4338_p12)  ;;  %v429_v9 = vld [vmem:[%s393_s7 + $0x10] sm:$0xff] (%p4338_p12) }
  0x40   : > { %v431_v10 = vld [vmem:[%s393_s7 + $0x20] sm:$0xff] (%p4338_p12)  ;;  %428 = vst [vmem:[%s386_s24] sm:$0xff] (%p4338_p12), %v427_v8  ;;  %430 = vst [vmem:[%s386_s24 + $0x8] sm:$0xff] (%p4338_p12), %v429_v9  ;;  %v433_v11 = vld [vmem:[%s393_s7 + $0x30] sm:$0xff] (%p4338_p12) }
  0x41   : > { %432 = vst [vmem:[%s386_s24 + $0x10] sm:$0xff] (%p4338_p12), %v431_v10  ;;  %434 = vst [vmem:[%s386_s24 + $0x18] sm:$0xff] (%p4338_p12), %v433_v11 }
  0x42 PF: > { %p3620_p3 = scmp.ge.s32.totalorder %s4167_s12, 1  ;;  %p439_p4 = scmp.lt.s32.totalorder %s4167_s12, 5 }
  0x44   : > { %p440_p5 = pnand %p3620_p3, %p439_p4 }
  0x46   : > { %443 = sbr.rel (%p440_p5) target bundleno = 1289 (0x509), region = 150 }
  0x4d   : > { %s446_s19 = sand.u32 1, %s4143_s29   ;;  %s4381_s23 = sand.u32 1, %s4135_s27   ;;  %v4170_v24 = vmov 0.0   ;;  %v6749_v25 = vmov 0   ;;  %v597_v26 = vld [vmem:[%s6740_s4 + $0x8] sm:$0xff]  ;;  %v598_v27 = vld [vmem:[%s6740_s4 + $0x10] sm:$0xff] }
  0x4e   : > { %s3621_s14 = sshll.u32 %s446_s19, 5  ;;  %s3622_s15 = sshll.u32 %s4381_s23, 5  ;;  %777 = vmatprep.mubr.f32.mxu1 %v4170_v24  ;;  %1348 = vmatprep.mubr.f32.mxu0 %v4170_v24  ;;  %v600_v28 = vld [vmem:[%s6740_s4 + $0x20] sm:$0xff]  ;;  %v602_v29 = vld [vmem:[%s6740_s4 + $0x30] sm:$0xff]  ;;  %vm668_vm0 = vcmask 261120   ;;  %v599_v40 = vld [vmem:[%s6740_s4 + $0x18] sm:$0xff] }
  0x4f   : > { %s448_s16 = scalar_lea.vmem [#allocation2], %s3621_s14  ;;  %s4169_s18 = smov 17   ;;  %4006 = vset.pattern.permute.xlu1 %v6749_v25  ;;  %4005 = vset.pattern.permute.xlu0 %v6749_v25  ;;  %v604_v30 = vld [vmem:[%s6740_s4 + $0x40] sm:$0xff]  ;;  %v606_v31 = vld [vmem:[%s6740_s4 + $0x50] sm:$0xff]  ;;  %v601_v42 = vld [vmem:[%s6740_s4 + $0x28] sm:$0xff]  ;;  %vm565_vm1 = vcmask 7168  }
  0x50   : > { %v511_v12 = vld [vmem:[%s448_s16 + $0x10] sm:$0xff]  ;;  %v509_v13 = vld [vmem:[%s448_s16] sm:$0xff]  ;;  %v512_v14 = vld [vmem:[%s448_s16 + $0x18] sm:$0xff]  ;;  %s460_s20 = sand.u32 1, %s4127_s25   ;;  %s455_s0 = scalar_lea.vmem [#allocation3], %s3622_s15  ;;  %vm570_vm2 = vcmask 138240  }
  0x51   : > { %525 = vrot.lane.b32.xlu1 %v511_v12, %s4169_s18  ;;  %521 = vrot.lane.b32.xlu0 %v509_v13, %s4169_s18  ;;  %v510_v15 = vld [vmem:[%s448_s16 + $0x8] sm:$0xff]  ;;  %v505_v17 = vld [vmem:[%s455_s0] sm:$0xff]  ;;  %s3623_s29 = sshll.u32 %s460_s20, 5  ;;  %v4172_v0 = vmov 1   ;;  %vm579_vm3 = vcmask 269312   ;;  %p1798_p6 = scmp.gt.s32.totalorder %s4151_s8, 0 }
  0x52   : > { %v506_v16 = vld [vmem:[%s455_s0 + $0x8] sm:$0xff]  ;;  %v508_v18 = vld [vmem:[%s455_s0 + $0x18] sm:$0xff]  ;;  %v507_v19 = vld [vmem:[%s455_s0 + $0x10] sm:$0xff]  ;;  %s462_s30 = scalar_lea.vmem [#allocation4], %s3623_s29  ;;  %p1808_p7 = scmp.lt.s32.totalorder %s4151_s8, 1  ;;  %vm2223_vm15 = vcmask 1031168  }
  0x53   : > { %v514_v20 = vld [vmem:[%s462_s30 + $0x8] sm:$0xff]  ;;  %v513_v21 = vld [vmem:[%s462_s30] sm:$0xff]  ;;  %v516_v22 = vld [vmem:[%s462_s30 + $0x18] sm:$0xff]  ;;  %s1799_s15 = scalar_select %p1798_p6, 1, 0 }
  0x54   : > { %v515_v23 = vld [vmem:[%s462_s30 + $0x10] sm:$0xff]  ;;  %v4410_v32 = vld [vmem:[%s6741_s5] sm:$0xff]  ;;  %v603_v46 = vld [vmem:[%s6740_s4 + $0x38] sm:$0xff]  ;;  %s4178_s20 = smov 112   ;;  %s4179_s0 = smov 126  }
  0x55   : > { %527 = vrot.lane.b32.xlu1 %v512_v14, %s4169_s18  ;;  %523 = vrot.lane.b32.xlu0 %v510_v15, %s4169_s18  ;;  %v4416_v33 = vld [vmem:[%s6741_s5 + $0x10] sm:$0xff]  ;;  %v4422_v34 = vld [vmem:[%s6741_s5 + $0x20] sm:$0xff]  ;;  %s4180_s29 = smov 110   ;;  %s4181_s30 = smov 96  }
  0x56   : > { %v4428_v35 = vld [vmem:[%s6741_s5 + $0x30] sm:$0xff]  ;;  %v4434_v36 = vld [vmem:[%s6741_s5 + $0x40] sm:$0xff]  ;;  %v585_v47 = vld [vmem:[%s6739_s3 + $0x8] sm:$0xff]  ;;  %s4182_s25 = smov 127   ;;  %s4183_s13 = smov 111  }
  0x57   : > { %v596_v37 = vld [vmem:[%s6740_s4] sm:$0xff]  ;;  %v4446_v39 = vld [vmem:[%s6741_s5 + $0x50] sm:$0xff]  ;;  %v673_v51 = vsel %vm668_vm0, %v585_v47, 0  ;;  %v605_v52 = vld [vmem:[%s6740_s4 + $0x48] sm:$0xff]  ;;  %s4187_s7 = smov 94   ;;  %s3879_s24 = smul.u32 24, %s4155_s9 }
  0x58   : > { %v584_v38 = vld [vmem:[%s6739_s3] sm:$0xff]  ;;  %v586_v58 = vld [vmem:[%s6739_s3 + $0x10] sm:$0xff]  ;;  %v4479_v61 = vand.u32 4294901760, %v673_v51  ;;  %v607_v1 = vld [vmem:[%s6740_s4 + $0x58] sm:$0xff] }
  0x59   : > { %539 = vrot.lane.b32.xlu1 %v506_v16, %s4169_s18  ;;  %537 = vrot.lane.b32.xlu0 %v505_v17, %s4169_s18  ;;  %v670_v41 = vsel %vm668_vm0, %v584_v38, 0  ;;  %v676_v2 = vsel %vm668_vm0, %v586_v58, 0  ;;  %v587_v13 = vld [vmem:[%s6739_s3 + $0x18] sm:$0xff]  ;;  %s3478_s9 = sadd.s32 %s4151_s8, %s3879_s24  ;;  %s7203_s8 = sld [smem:[#allocation178_spill]] }
  0x5a   : > { %v4456_v45 = vand.u32 4294901760, %v670_v41  ;;  %v4500_v12 = vsub.f32 %v673_v51, %v4479_v61  ;;  %v4505_v16 = vand.u32 4294901760, %v676_v2  ;;  %s3636_s14 = sshll.u32 %s3478_s9, 6 }
  0x5c   : > { %v4465_v50 = vsub.f32 %v670_v41, %v4456_v45  ;;  %v4535_v41 = vsub.f32 %v676_v2, %v4505_v16 }
  0x5d   : > { %543 = vrot.lane.b32.xlu1 %v508_v18, %s4169_s18  ;;  %541 = vrot.lane.b32.xlu0 %v507_v19, %s4169_s18 }
  0x5e   : > { %v780_v57 = vand.u32 4294901760, %v4465_v50 }
  0x60   : > { %v4497_v11 = vsub.f32 %v4465_v50, %v780_v57 }
  0x61   : > { %555 = vrot.lane.b32.xlu1 %v514_v20, %s4169_s18  ;;  %553 = vrot.lane.b32.xlu0 %v513_v21, %s4169_s18 }
  0x65   : > { %559 = vrot.lane.b32.xlu1 %v516_v22, %s4169_s18  ;;  %557 = vrot.lane.b32.xlu0 %v515_v23, %s4169_s18  ;;  %v679_v22 = vsel %vm668_vm0, %v587_v13, 0  ;;  %v588_v23 = vld [vmem:[%s6739_s3 + $0x20] sm:$0xff]  ;;  %s1809_s18 = scalar_select %p1808_p7, 1, 0 }
  0x69   : > { %615 = vperm.xlu1 %4006, %v597_v26   ;;  %610 = vperm.xlu0 %4005, %v596_v37  }
  0x6d   : > { %620 = vperm.xlu1 %4006, %v598_v27   ;;  %625 = vperm.xlu0 %4005, %v599_v40  }
  0x71   : > { %630 = vperm.xlu1 %4006, %v600_v28   ;;  %635 = vperm.xlu0 %4005, %v601_v42   ;;  %v782_v28 = vand.u32 4294901760, %v4497_v11  ;;  %v591_v11 = vld [vmem:[%s6739_s3 + $0x38] sm:$0xff] }
  0x75   : > { %640 = vperm.xlu1 %4006, %v602_v29   ;;  %645 = vperm.xlu0 %4005, %v603_v46   ;;  %v6751_v29 = vand.u32 4294901760, %v4500_v12  ;;  %v682_v46 = vsel %vm668_vm0, %v588_v23, 0 }
  0x76   : > { %v4582_v13 = vand.u32 4294901760, %v682_v46 }
  0x79   : > { %650 = vperm.xlu1 %4006, %v604_v30   ;;  %655 = vperm.xlu0 %4005, %v605_v52   ;;  %v4523_v30 = vld [vmem:[%s6741_s5 + $0x8] sm:$0xff] }
  0x7d   : > { %660 = vperm.xlu1 %4006, %v606_v31   ;;  %665 = vperm.xlu0 %4005, %v607_v1   ;;  %v4528_v31 = vld [vmem:[%s6741_s5 + $0x18] sm:$0xff]  ;;  %v589_v1 = vld [vmem:[%s6739_s3 + $0x28] sm:$0xff] }
  0x81   : > { %1886 = vperm.xlu1 %4006, %v4410_v32   ;;  %4008 = vset.pattern.permute.xlu0 %v4172_v0 }
  0x82   : > { %1973 = vperm.xlu0 %4008, %v4523_v30  }
  0x85   : > { %1896 = vperm.xlu1 %4006, %v4416_v33  }
  0x86   : > { %1985 = vperm.xlu0 %4008, %v4422_v34  }
  0x89   : > { %1906 = vperm.xlu1 %4006, %v4422_v34  }
  0x8a   : > { %1993 = vperm.xlu0 %4008, %v4428_v35  }
  0x8d   : > { %1916 = vperm.xlu1 %4006, %v4428_v35  }
  0x8e   : > { %2001 = vperm.xlu0 %4008, %v4434_v36  }
  0x91   : > { %1926 = vperm.xlu1 %4006, %v4434_v36  }
  0x92   : > { %2009 = vperm.xlu0 %4008, %v4446_v39  }
  0x95   : > { %1936 = vperm.xlu1 %4006, %v4446_v39  }
  0x99   : > { %4007 = vset.pattern.permute.xlu1 %v4172_v0 }
  0x9a   : > { %1969 = vperm.xlu1 %4007, %v4410_v32  }
  0x9e   : > { %1977 = vperm.xlu1 %4007, %v4416_v33  }
  0xa2   : > { %1981 = vperm.xlu1 %4007, %v4528_v31  }
  0xc3   : > { %v526_v43 = vpop.permute.xlu1 %525  ;;  %v522_v44 = vpop.permute.xlu0 %521 }
  0xc4   : > { %v566_v53 = vsel %vm565_vm1, 0.0, %v522_v44  ;;  %v568_v3 = vsel %vm565_vm1, 0.0, %v526_v43  ;;  %v4538_v44 = vand.u32 4294901760, %v679_v22 }
  0xc7   : > { %v528_v48 = vpop.permute.xlu1 %527  ;;  %v524_v49 = vpop.permute.xlu0 %523 }
  0xc8   : > { %v567_v54 = vsel %vm565_vm1, 0.0, %v524_v49  ;;  %v569_v4 = vsel %vm565_vm1, 0.0, %v528_v48 }
  0xcb   : > { %v540_v55 = vpop.permute.xlu1 %539  ;;  %v538_v56 = vpop.permute.xlu0 %537 }
  0xcc   : > { %v572_v59 = vsel %vm570_vm2, %v567_v54, %v540_v55  ;;  %v571_v60 = vsel %vm570_vm2, %v566_v53, %v538_v56 }
  0xcd   : > { %v711_v62 = vand.u32 4294901760, %v572_v59  ;;  %v707_v63 = vand.u32 4294901760, %v571_v60 }
  0xcf   : > { %v4488_v5 = vsub.f32 %v572_v59, %v711_v62  ;;  %v4490_v6 = vsub.f32 %v571_v60, %v707_v63  ;;  %v544_v7 = vpop.permute.xlu1 %543  ;;  %v542_v8 = vpop.permute.xlu0 %541  ;;  %v4549_v53 = vpack.c.bf16 %v711_v62, %v707_v63  ;;  %v4560_v59 = vld [vmem:[%s6741_s5 + $0x28] sm:$0xff] }
  0xd0   : > { %v574_v9 = vsel %vm570_vm2, %v569_v4, %v544_v7  ;;  %v573_v10 = vsel %vm570_vm2, %v568_v3, %v542_v8  ;;  %1989 = vperm.xlu1 %4007, %v4560_v59  }
  0xd1   : > { %v719_v14 = vand.u32 4294901760, %v574_v9  ;;  %v715_v15 = vand.u32 4294901760, %v573_v10  ;;  %v930_v17 = vand.u32 4294901760, %v4488_v5  ;;  %v918_v18 = vand.u32 4294901760, %v4490_v6 }
  0xd3   : > { %v4510_v19 = vsub.f32 %v574_v9, %v719_v14  ;;  %v556_v20 = vpop.permute.xlu1 %555  ;;  %v554_v21 = vpop.permute.xlu0 %553  ;;  %v4530_v37 = vsub.f32 %v573_v10, %v715_v15  ;;  %v931_v47 = vsub.f32 %v4488_v5, %v930_v17  ;;  %v919_v48 = vsub.f32 %v4490_v6, %v918_v18 }
  0xd4   : > { %v576_v26 = vsel %vm570_vm2, %v540_v55, %v556_v20  ;;  %v575_v27 = vsel %vm570_vm2, %v538_v56, %v554_v21  ;;  %v6752_v9 = vand.u32 4294901760, %v4535_v41  ;;  %v4580_v10 = vsub.f32 %v679_v22, %v4538_v44 }
  0xd5   : > { %v581_v38 = vsel %vm579_vm3, %v576_v26, 0.0  ;;  %v580_v40 = vsel %vm579_vm3, %v575_v27, 0.0  ;;  %v954_v49 = vand.u32 4294901760, %v4510_v19  ;;  %v942_v60 = vand.u32 4294901760, %v4530_v37 }
  0xd6   : > { %v709_v42 = vand.u32 4294901760, %v581_v38  ;;  %v705_v43 = vand.u32 4294901760, %v580_v40  ;;  %v920_v27 = vand.u32 4294901760, %v919_v48 }
  0xd7   : > { %v560_v51 = vpop.permute.xlu1 %559  ;;  %v558_v52 = vpop.permute.xlu0 %557 }
  0xd8   : > { %v4551_v54 = vsub.f32 %v581_v38, %v709_v42  ;;  %v4553_v55 = vsub.f32 %v580_v40, %v705_v43  ;;  %v578_v56 = vsel %vm570_vm2, %v544_v7, %v560_v51  ;;  %v577_v58 = vsel %vm570_vm2, %v542_v8, %v558_v52 }
  0xd9   : > { %v583_v0 = vsel %vm579_vm3, %v578_v56, 0.0  ;;  %v582_v62 = vsel %vm579_vm3, %v577_v58, 0.0  ;;  %v4565_v63 = vpack.c.bf16 %v709_v42, %v705_v43  ;;  %v4576_v8 = vpack.c.bf16 %v719_v14, %v715_v15  ;;  %v4596_v15 = vld [vmem:[%s6741_s5 + $0x38] sm:$0xff] }
  0xda   : > { %v717_v2 = vand.u32 4294901760, %v583_v0  ;;  %v713_v3 = vand.u32 4294901760, %v582_v62  ;;  %v912_v4 = vand.u32 4294901760, %v4553_v55  ;;  %v924_v7 = vand.u32 4294901760, %v4551_v54  ;;  %1997 = vperm.xlu1 %4007, %v4596_v15  }
  0xdb   : > { %3687 = vmatprep.subr.bf16.mxu1 %v4565_v63  ;;  %3711 = vmatprep.subr.bf16.mxu0 %v4565_v63  ;;  %v685_v14 = vsel %vm668_vm0, %v589_v1, 0  ;;  %v932_v38 = vand.u32 4294901760, %v931_v47  ;;  %v955_v40 = vsub.f32 %v4510_v19, %v954_v49  ;;  %v943_v42 = vsub.f32 %v4530_v37, %v942_v60 }
  0xdc   : > { %v4584_v20 = vsub.f32 %v583_v0, %v717_v2  ;;  %v4586_v21 = vsub.f32 %v582_v62, %v713_v3  ;;  %3689 = vmatpush1.bf16.msra.mxu1 %v4549_v53  ;;  %3713 = vmatpush1.bf16.msra.mxu0 %v4549_v53  ;;  %v4590_v23 = vpack.c.bf16 %v717_v2, %v713_v3  ;;  %v813_v1 = vand.u32 4294901760, %v4580_v10 }
  0xdd   : > { %v913_v22 = vsub.f32 %v4553_v55, %v912_v4  ;;  %v925_v26 = vsub.f32 %v4551_v54, %v924_v7  ;;  %v3718_v48 = vpack.c.bf16 %v924_v7, %v912_v4  ;;  %v792_v56 = vsub.f32 %v4500_v12, %v6751_v29 }
  0xde   : > { %3691 = vmatprep.subr.bf16.mxu1 %v4590_v23  ;;  %3715 = vmatprep.subr.bf16.mxu0 %v4590_v23  ;;  %v936_v43 = vand.u32 4294901760, %v4586_v21  ;;  %v948_v51 = vand.u32 4294901760, %v4584_v20  ;;  %v803_v62 = vsub.f32 %v4535_v41, %v6752_v9  ;;  %v3696_v3 = vpack.c.bf16 %v932_v38, %v920_v27 }
  0xdf   : > { %v914_v47 = vand.u32 4294901760, %v913_v22  ;;  %v926_v52 = vand.u32 4294901760, %v925_v26  ;;  %v4624_v4 = vsub.f32 %v682_v46, %v4582_v13  ;;  %v4626_v7 = vand.u32 4294901760, %v685_v14  ;;  %v590_v22 = vld [vmem:[%s6739_s3 + $0x30] sm:$0xff] }
  0xe0   : > { %3693 = vmatpush1.bf16.msra.mxu1 %v4576_v8  ;;  %3717 = vmatpush1.bf16.msra.mxu0 %v4576_v8  ;;  %v937_v58 = vsub.f32 %v4586_v21, %v936_v43  ;;  %v949_v0 = vsub.f32 %v4584_v20, %v948_v51  ;;  %v944_v29 = vand.u32 4294901760, %v943_v42  ;;  %v956_v9 = vand.u32 4294901760, %v955_v40 }
  0xe1   : > { %3719 = vmatprep.subr.bf16.mxu0 %v3718_v48  ;;  %v3694_v2 = vpack.c.bf16 %v926_v52, %v914_v47  ;;  %v3720_v46 = vpack.c.bf16 %v930_v17, %v918_v18  ;;  %v793_v27 = vand.u32 4294901760, %v792_v56  ;;  %v3722_v38 = vpack.c.bf16 %v948_v51, %v936_v43 }
  0xe2   : > { %v938_v26 = vand.u32 4294901760, %v937_v58  ;;  %v950_v25 = vand.u32 4294901760, %v949_v0  ;;  %v688_v47 = vsel %vm668_vm0, %v590_v22, 0  ;;  %v3700_v17 = vpack.c.bf16 %v956_v9, %v944_v29  ;;  %v593_v58 = vld [vmem:[%s6739_s3 + $0x48] sm:$0xff] }
  0xe3   : > { %783 = vmatmul.mubr.f32.vlgmr.msra.gmra.mrb[0].mxu1 %v782_v28  ;;  %3695 = vmatprep.subr.bf16.mxu1 %v3694_v2  ;;  %v804_v28 = vand.u32 4294901760, %v803_v62  ;;  %v4651_v18 = vsub.f32 %v685_v14, %v4626_v7  ;;  %v3724_v40 = vpack.c.bf16 %v954_v49, %v942_v60  ;;  %v3702_v42 = vpack.c.bf16 %v4551_v54, %v4553_v55  ;;  %v592_v14 = vld [vmem:[%s6739_s3 + $0x40] sm:$0xff]  ;;  %v4675_v55 = vld [vmem:[%s6741_s5 + $0x48] sm:$0xff]  ;;  %v4698_v2 = vld [vmem:[%s6741_s5 + $0x58] sm:$0xff] }
  0xe4   : > { %1352 = vmatmul.mubr.f32.vlgmr.msra.gmra.mrb[0].mxu0 %v780_v57  ;;  %3697 = vmatpush1.bf16.msra.mxu1 %v3696_v3  ;;  %v3698_v48 = vpack.c.bf16 %v950_v25, %v938_v26  ;;  %v814_v57 = vsub.f32 %v4580_v10, %v813_v1  ;;  %v824_v25 = vand.u32 4294901760, %v4624_v4  ;;  %v4659_v29 = vand.u32 4294901760, %v688_v47 }
  0xe5   : > { %3721 = vmatpush1.bf16.msra.mxu0 %v3720_v46  ;;  %788 = vmatprep.mubr.f32.mxu1 %v4170_v24  ;;  %v691_v9 = vsel %vm668_vm0, %v591_v11, 0  ;;  %v6826_v43 = vand.u32 4294901760, %v4500_v12  ;;  %v835_v51 = vand.u32 4294901760, %v4651_v18  ;;  %v694_v56 = vsel %vm668_vm0, %v592_v14, 0 }
  0xe6   : > { %3723 = vmatprep.subr.bf16.mxu0 %v3722_v38  ;;  %1357 = vmatprep.mubr.f32.mxu0 %v4170_v24  ;;  %v825_v49 = vsub.f32 %v4624_v4, %v824_v25  ;;  %v4670_v54 = vand.u32 4294901760, %v691_v9  ;;  %v815_v60 = vand.u32 4294901760, %v814_v57  ;;  %v4680_v52 = vsub.f32 %v688_v47, %v4659_v29  ;;  %v595_v57 = vld [vmem:[%s6739_s3 + $0x58] sm:$0xff] }
  0xe7   : > { %794 = vmatmul.mubr.f32.gmra.mrb[2].mxu1 %v793_v27  ;;  %3699 = vmatprep.subr.bf16.mxu1 %v3698_v48  ;;  %v836_v3 = vsub.f32 %v4651_v18, %v835_v51  ;;  %v4702_v26 = vand.u32 4294901760, %v694_v56  ;;  %v697_v46 = vsel %vm668_vm0, %v593_v58, 0  ;;  %v594_v27 = vld [vmem:[%s6739_s3 + $0x50] sm:$0xff]  ;;  %v4173_v48 = vmov 2  }
  0xe8   : > { %1361 = vmatmul.mubr.f32.gmra.mrb[2].mxu0 %v6826_v43  ;;  %3701 = vmatpush1.bf16.msra.mxu1 %v3700_v17  ;;  %v826_v0 = vand.u32 4294901760, %v825_v49  ;;  %v4692_v62 = vsub.f32 %v691_v9, %v4670_v54  ;;  %v846_v22 = vand.u32 4294901760, %v4680_v52  ;;  %v700_v17 = vsel %vm668_vm0, %v594_v27, 0 }
  0xe9   : > { %3725 = vmatpush1.bf16.msra.mxu0 %v3724_v40  ;;  %3703 = vmatprep.subr.bf16.mxu1 %v3702_v42  ;;  %v837_v47 = vand.u32 4294901760, %v836_v3  ;;  %v4716_v11 = vsub.f32 %v694_v56, %v4702_v26  ;;  %v4733_v43 = vand.u32 4294901760, %v700_v17  ;;  %v703_v14 = vsel %vm668_vm0, %v595_v57, 0 }
  0xea   : > { %3727 = vmatprep.subr.bf16.mxu0 %v4565_v63  ;;  %799 = vmatprep.mubr.f32.mxu1 %v4170_v24  ;;  %v6827_v63 = vand.u32 4294901760, %v4535_v41  ;;  %v857_v38 = vand.u32 4294901760, %v4692_v62  ;;  %v4745_v58 = vand.u32 4294901760, %v703_v14  ;;  %v3704_v57 = vpack.c.bf16 %v4488_v5, %v4490_v6 }
  0xeb   : > { %1366 = vmatprep.mubr.f32.mxu0 %v4170_v24  ;;  %805 = vmatmul.mubr.f32.gmra.mrb[4].mxu1 %v804_v28  ;;  %v4718_v28 = vand.u32 4294901760, %v697_v46  ;;  %v868_v9 = vand.u32 4294901760, %v4716_v11  ;;  %v4743_v56 = vsub.f32 %v700_v17, %v4733_v43  ;;  %v4174_v17 = vmov 3  }
  0xec   : > { %1370 = vmatmul.mubr.f32.gmra.mrb[4].mxu0 %v6827_v63  ;;  %810 = vmatprep.mubr.f32.mxu1 %v4170_v24  ;;  %v858_v40 = vsub.f32 %v4692_v62, %v857_v38  ;;  %v3708_v5 = vpack.c.bf16 %v4510_v19, %v4530_v37  ;;  %v4175_v6 = vmov 4   ;;  %v4176_v19 = vmov 5  }
  0xed   : > { %1375 = vmatprep.mubr.f32.mxu0 %v4170_v24  ;;  %2005 = vperm.xlu1 %4007, %v4675_v55   ;;  %v890_v3 = vand.u32 4294901760, %v4743_v56  ;;  %vm2112_vm0 = vcmask 1039360   ;;  %vm2380_vm2 = vcmask 916480   ;;  %vm2718_vm3 = vcmask 900096  }
  0xee   : > { %4009 = vset.pattern.permute.xlu0 %v4173_v48  ;;  %v859_v49 = vand.u32 4294901760, %v858_v40  ;;  %v3706_v40 = vpack.c.bf16 %v4584_v20, %v4586_v21 }
  0xef   : > { %816 = vmatmul.mubr.f32.gmra.mrb[6].mxu1 %v815_v60  ;;  %2261 = vperm.xlu0 %4009, %v4410_v32   ;;  %v869_v60 = vsub.f32 %v4716_v11, %v868_v9  ;;  %v891_v27 = vsub.f32 %v4743_v56, %v890_v3 }
  0xf0   : > { %1379 = vmatmul.mubr.f32.gmra.mrb[6].mxu0 %v813_v1  ;;  %821 = vmatprep.mubr.f32.mxu1 %v4170_v24  ;;  %v847_v1 = vsub.f32 %v4680_v52, %v846_v22 }
  0xf1   : > { %1384 = vmatprep.mubr.f32.mxu0 %v4170_v24  ;;  %2013 = vperm.xlu1 %4007, %v4698_v2  }
  0xf2   : > { %v848_v42 = vand.u32 4294901760, %v847_v1 }
  0xf3   : > { %827 = vmatmul.mubr.f32.gmra.mrb[8].mxu1 %v826_v0  ;;  %2273 = vperm.xlu0 %4009, %v4528_v31  }
  0xf4   : > { %1388 = vmatmul.mubr.f32.gmra.mrb[8].mxu0 %v824_v25  ;;  %832 = vmatprep.mubr.f32.mxu1 %v4170_v24  ;;  %v4731_v25 = vsub.f32 %v697_v46, %v4718_v28  ;;  %v4754_v46 = vsub.f32 %v703_v14, %v4745_v58 }
  0xf5   : > { %1393 = vmatprep.mubr.f32.mxu0 %v4170_v24  ;;  %4010 = vset.pattern.permute.xlu1 %v4173_v48 }
  0xf6   : > { %2265 = vperm.xlu1 %4010, %v4523_v30   ;;  %v879_v63 = vand.u32 4294901760, %v4731_v25  ;;  %v901_v48 = vand.u32 4294901760, %v4754_v46 }
  0xf7   : > { %838 = vmatmul.mubr.f32.gmra.mrb[10].mxu1 %v837_v47  ;;  %2281 = vperm.xlu0 %4009, %v4560_v59  }
  0xf8   : > { %1397 = vmatmul.mubr.f32.gmra.mrb[10].mxu0 %v835_v51  ;;  %843 = vmatprep.mubr.f32.mxu1 %v4170_v24  ;;  %v870_v51 = vand.u32 4294901760, %v869_v60  ;;  %v880_v0 = vsub.f32 %v4731_v25, %v879_v63  ;;  %v902_v47 = vsub.f32 %v4754_v46, %v901_v48 }
  0xf9   : > { %1402 = vmatprep.mubr.f32.mxu0 %v4170_v24 }
  0xfa   : > { %2269 = vperm.xlu1 %4010, %v4416_v33   ;;  %v903_v1 = vand.u32 4294901760, %v902_v47 }
  0xfb   : > { %849 = vmatmul.mubr.f32.gmra.mrb[12].mxu1 %v848_v42  ;;  %2289 = vperm.xlu0 %4009, %v4596_v15  }
  0xfc   : > { %1406 = vmatmul.mubr.f32.gmra.mrb[12].mxu0 %v846_v22  ;;  %854 = vmatprep.mubr.f32.mxu1 %v4170_v24  ;;  %v881_v22 = vand.u32 4294901760, %v880_v0 }
  0xfd   : > { %1411 = vmatprep.mubr.f32.mxu0 %v4170_v24 }
  0xfe   : > { %2277 = vperm.xlu1 %4010, %v4422_v34  }
  0xff   : > { %860 = vmatmul.mubr.f32.gmra.mrb[14].mxu1 %v859_v49  ;;  %2297 = vperm.xlu0 %4009, %v4675_v55   ;;  %v1787_v49 = vlaneseq }
 0x100   : > { %1415 = vmatmul.mubr.f32.gmra.mrb[14].mxu0 %v857_v38  ;;  %865 = vmatprep.mubr.f32.mxu1 %v4170_v24  ;;  %v892_v38 = vand.u32 4294901760, %v891_v27 }
 0x101   : > { %1420 = vmatprep.mubr.f32.mxu0 %v4170_v24 }
 0x102   : > { %2285 = vperm.xlu1 %4010, %v4428_v35  }
 0x103   : > { %871 = vmatmul.mubr.f32.gmra.mrb[16].mxu1 %v870_v51  ;;  %2305 = vperm.xlu0 %4009, %v4698_v2  }
 0x104   : > { %1424 = vmatmul.mubr.f32.gmra.mrb[16].mxu0 %v868_v9  ;;  %876 = vmatprep.mubr.f32.mxu1 %v4170_v24 }
 0x105   : > { %1429 = vmatprep.mubr.f32.mxu0 %v4170_v24 }
 0x106   : > { %2293 = vperm.xlu1 %4010, %v4434_v36  }
 0x107   : > { %882 = vmatmul.mubr.f32.gmra.mrb[18].mxu1 %v881_v22  ;;  %4012 = vset.pattern.permute.xlu0 %v4174_v17 }
 0x108   : > { %1433 = vmatmul.mubr.f32.gmra.mrb[18].mxu0 %v879_v63  ;;  %887 = vmatprep.mubr.f32.mxu1 %v4170_v24  ;;  %v5001_v63 = vand.u32 127, %v1787_v49 }
 0x109   : > { %1438 = vmatprep.mubr.f32.mxu0 %v4170_v24  ;;  %2422 = vperm.xlu0 %4012, %v4523_v30  }
 0x10a   : > { %2301 = vperm.xlu1 %4010, %v4446_v39   ;;  %vm1796_vm4 = vcmp.ge.s32.totalorder %v5001_v63, 17  ;;  %vm1790_vm6 = vcmp.gt.s32.totalorder %v5001_v63, 0 }
 0x10b   : > { %893 = vmatmul.mubr.f32.gmra.mrb[20].mxu1 %v892_v38  ;;  %v1810_v38 = vstv %s1809_s18  ;;  %s7204_s18 = smov %s7203_s8 }
 0x10c   : > { %1442 = vmatmul.mubr.f32.gmra.mrb[20].mxu0 %v890_v3  ;;  %898 = vmatprep.mubr.f32.mxu1 %v4170_v24  ;;  %vm1811_vm10 = vcmp.eq.s32.totalorder %v1810_v38, 1 }
 0x10d   : > { %1447 = vmatprep.mubr.f32.mxu0 %v4170_v24  ;;  %2434 = vperm.xlu0 %4012, %v4422_v34  }
 0x10e   : > { %4011 = vset.pattern.permute.xlu1 %v4174_v17 }
 0x10f   : > { %904 = vmatmul.mubr.f32.gmra.mrb[22].mxu1 %v903_v1  ;;  %2418 = vperm.xlu1 %4011, %v4410_v32  }
 0x110   : > { %1451 = vmatmul.mubr.f32.gmra.mrb[22].mxu0 %v901_v48  ;;  %1014 = vmatprep.mubr.f32.mxu1 %v4170_v24 }
 0x111   : > { %1545 = vmatprep.mubr.f32.mxu0 %v4170_v24  ;;  %2442 = vperm.xlu0 %4012, %v4428_v35  }
 0x113   : > { %1016 = vmatmul.mubr.f32.vlgmr.msra.gmra.mrb[0].mxu1 %v4456_v45  ;;  %2426 = vperm.xlu1 %4011, %v4416_v33  }
 0x114   : > { %3705 = vmatpush1.bf16.msra.mxu1 %v3704_v57  ;;  %1547 = vmatmul.mubr.f32.vlgmr.msra.gmra.mrb[0].mxu0 %v4456_v45 }
 0x115   : > { %3729 = vmatpush1.bf16.msra.mxu0 %v4549_v53  ;;  %3707 = vmatprep.subr.bf16.mxu1 %v3706_v40 }
 0x116   : > { %3731 = vmatprep.subr.bf16.mxu0 %v4590_v23  ;;  %1021 = vmatprep.mubr.f32.mxu1 %v4170_v24 }
 0x117   : > { %1552 = vmatprep.mubr.f32.mxu0 %v4170_v24  ;;  %1023 = vmatmul.mubr.f32.gmra.mrb[2].mxu1 %v4479_v61 }
 0x118   : > { %3709 = vmatpush1.bf16.msra.mxu1 %v3708_v5  ;;  %1554 = vmatmul.mubr.f32.gmra.mrb[2].mxu0 %v4479_v61 }
 0x119   : > { %3733 = vmatpush1.bf16.msra.mxu0 %v4576_v8  ;;  %1028 = vmatprep.mubr.f32.mxu1 %v4170_v24 }
 0x11a   : > { %1559 = vmatprep.mubr.f32.mxu0 %v4170_v24  ;;  %2430 = vperm.xlu1 %4011, %v4528_v31  }
 0x11b   : > { %1030 = vmatmul.mubr.f32.gmra.mrb[4].mxu1 %v4505_v16  ;;  %2450 = vperm.xlu0 %4012, %v4434_v36  }
 0x11c   : > { %1561 = vmatmul.mubr.f32.gmra.mrb[4].mxu0 %v4505_v16  ;;  %1035 = vmatprep.mubr.f32.mxu1 %v4170_v24 }
 0x11d   : > { %1566 = vmatprep.mubr.f32.mxu0 %v4170_v24 }
 0x11e   : > { %2438 = vperm.xlu1 %4011, %v4560_v59  }
 0x11f   : > { %1037 = vmatmul.mubr.f32.gmra.mrb[6].mxu1 %v4538_v44  ;;  %2458 = vperm.xlu0 %4012, %v4446_v39  }
 0x120   : > { %1568 = vmatmul.mubr.f32.gmra.mrb[6].mxu0 %v4538_v44  ;;  %1042 = vmatprep.mubr.f32.mxu1 %v4170_v24 }
 0x121   : > { %1573 = vmatprep.mubr.f32.mxu0 %v4170_v24 }
 0x122   : > { %2446 = vperm.xlu1 %4011, %v4596_v15  }
 0x123   : > { %1044 = vmatmul.mubr.f32.gmra.mrb[8].mxu1 %v4582_v13  ;;  %4013 = vset.pattern.permute.xlu0 %v4175_v6 }
 0x124   : > { %1575 = vmatmul.mubr.f32.gmra.mrb[8].mxu0 %v4582_v13  ;;  %1049 = vmatprep.mubr.f32.mxu1 %v4170_v24 }
 0x125   : > { %1580 = vmatprep.mubr.f32.mxu0 %v4170_v24  ;;  %2490 = vperm.xlu0 %4013, %v4410_v32  }
 0x126   : > { %2454 = vperm.xlu1 %4011, %v4675_v55  }
 0x127   : > { %1051 = vmatmul.mubr.f32.gmra.mrb[10].mxu1 %v4626_v7 }
 0x128   : > { %1582 = vmatmul.mubr.f32.gmra.mrb[10].mxu0 %v4626_v7  ;;  %1056 = vmatprep.mubr.f32.mxu1 %v4170_v24 }
 0x129   : > { %1587 = vmatprep.mubr.f32.mxu0 %v4170_v24  ;;  %2502 = vperm.xlu0 %4013, %v4528_v31  }
 0x12a   : > { %2462 = vperm.xlu1 %4011, %v4698_v2  }
 0x12b   : > { %1058 = vmatmul.mubr.f32.gmra.mrb[12].mxu1 %v4659_v29 }
 0x12c   : > { %1589 = vmatmul.mubr.f32.gmra.mrb[12].mxu0 %v4659_v29  ;;  %1063 = vmatprep.mubr.f32.mxu1 %v4170_v24 }
 0x12d   : > { %1594 = vmatprep.mubr.f32.mxu0 %v4170_v24  ;;  %2510 = vperm.xlu0 %4013, %v4560_v59  }
 0x12e   : > { %4014 = vset.pattern.permute.xlu1 %v4175_v6 }
 0x12f   : > { %1065 = vmatmul.mubr.f32.gmra.mrb[14].mxu1 %v4670_v54  ;;  %2494 = vperm.xlu1 %4014, %v4523_v30  }
 0x130   : > { %1596 = vmatmul.mubr.f32.gmra.mrb[14].mxu0 %v4670_v54  ;;  %1070 = vmatprep.mubr.f32.mxu1 %v4170_v24 }
 0x131   : > { %1601 = vmatprep.mubr.f32.mxu0 %v4170_v24  ;;  %2518 = vperm.xlu0 %4013, %v4596_v15  }
 0x133   : > { %1072 = vmatmul.mubr.f32.gmra.mrb[16].mxu1 %v4702_v26  ;;  %2498 = vperm.xlu1 %4014, %v4416_v33  }
 0x134   : > { %1603 = vmatmul.mubr.f32.gmra.mrb[16].mxu0 %v4702_v26  ;;  %1077 = vmatprep.mubr.f32.mxu1 %v4170_v24 }
 0x135   : > { %1608 = vmatprep.mubr.f32.mxu0 %v4170_v24  ;;  %2526 = vperm.xlu0 %4013, %v4675_v55  }
 0x137   : > { %1079 = vmatmul.mubr.f32.gmra.mrb[18].mxu1 %v4718_v28  ;;  %2506 = vperm.xlu1 %4014, %v4422_v34  }
 0x138   : > { %1610 = vmatmul.mubr.f32.gmra.mrb[18].mxu0 %v4718_v28  ;;  %1084 = vmatprep.mubr.f32.mxu1 %v4170_v24 }
 0x139   : > { %1615 = vmatprep.mubr.f32.mxu0 %v4170_v24  ;;  %2534 = vperm.xlu0 %4013, %v4698_v2  }
 0x13b   : > { %1086 = vmatmul.mubr.f32.gmra.mrb[20].mxu1 %v4733_v43  ;;  %2514 = vperm.xlu1 %4014, %v4428_v35  }
 0x13c   : > { %1617 = vmatmul.mubr.f32.gmra.mrb[20].mxu0 %v4733_v43  ;;  %1091 = vmatprep.mubr.f32.mxu1 %v4170_v24 }
 0x13d   : > { %1622 = vmatprep.mubr.f32.mxu0 %v4170_v24  ;;  %4016 = vset.pattern.permute.xlu0 %v4176_v19 }
 0x13e   : > { %2760 = vperm.xlu0 %4016, %v4523_v30  }
 0x13f   : > { %1093 = vmatmul.mubr.f32.gmra.mrb[22].mxu1 %v4745_v58  ;;  %2522 = vperm.xlu1 %4014, %v4434_v36  }
 0x140   : > { %1624 = vmatmul.mubr.f32.gmra.mrb[22].mxu0 %v4745_v58  ;;  %1179 = vmatprep.mubr.f32.mxu1 %v4170_v24 }
 0x141   : > { %1702 = vmatprep.mubr.f32.mxu0 %v4170_v24 }
 0x142   : > { %2772 = vperm.xlu0 %4016, %v4422_v34   ;;  %v4177_v34 = vmov 6  }
 0x143   : > { %1182 = vmatmul.mubr.f32.vlgmr.msra.gmra.mrb[0].mxu1 %v4465_v50  ;;  %2530 = vperm.xlu1 %4014, %v4446_v39  }
 0x144   : > { %1704 = vmatmul.mubr.f32.vlgmr.msra.gmra.mrb[0].mxu0 %v4456_v45  ;;  %1187 = vmatprep.mubr.f32.mxu1 %v4170_v24 }
 0x145   : > { %1709 = vmatprep.mubr.f32.mxu0 %v4170_v24 }
 0x146   : > { %2780 = vperm.xlu0 %4016, %v4428_v35  }
 0x147   : > { %1190 = vmatmul.mubr.f32.gmra.mrb[2].mxu1 %v4500_v12  ;;  %4015 = vset.pattern.permute.xlu1 %v4176_v19 }
 0x148   : > { %1711 = vmatmul.mubr.f32.gmra.mrb[2].mxu0 %v4479_v61  ;;  %1195 = vmatprep.mubr.f32.mxu1 %v4170_v24  ;;  %v611_v61 = vpop.permute.xlu0 %610 }
 0x149   : > { %1716 = vmatprep.mubr.f32.mxu0 %v4170_v24  ;;  %2756 = vperm.xlu1 %4015, %v4410_v32  }
 0x14a   : > { %2788 = vperm.xlu0 %4016, %v4434_v36  }
 0x14b   : > { %1198 = vmatmul.mubr.f32.gmra.mrb[4].mxu1 %v4535_v41 }
 0x14c   : > { %1718 = vmatmul.mubr.f32.gmra.mrb[4].mxu0 %v4505_v16  ;;  %1203 = vmatprep.mubr.f32.mxu1 %v4170_v24  ;;  %v4932_v12 = vpop.permute.xlu0 %625 }
 0x14d   : > { %1723 = vmatprep.mubr.f32.mxu0 %v4170_v24  ;;  %2764 = vperm.xlu1 %4015, %v4416_v33  }
 0x14e   : > { %2796 = vperm.xlu0 %4016, %v4446_v39  }
 0x14f   : > { %1206 = vmatmul.mubr.f32.gmra.mrb[6].mxu1 %v4580_v10 }
 0x150   : > { %1725 = vmatmul.mubr.f32.gmra.mrb[6].mxu0 %v4538_v44  ;;  %1211 = vmatprep.mubr.f32.mxu1 %v4170_v24 }
 0x151   : > { %1730 = vmatprep.mubr.f32.mxu0 %v4170_v24  ;;  %2768 = vperm.xlu1 %4015, %v4528_v31  }
 0x152   : > { %4017 = vset.pattern.permute.xlu0 %v4177_v34 }
 0x153   : > { %1214 = vmatmul.mubr.f32.gmra.mrb[8].mxu1 %v4624_v4  ;;  %2913 = vperm.xlu0 %4017, %v4410_v32   ;;  %v4916_v32 = vpop.permute.xlu1 %615 }
 0x154   : > { %1732 = vmatmul.mubr.f32.gmra.mrb[8].mxu0 %v4582_v13  ;;  %1219 = vmatprep.mubr.f32.mxu1 %v4170_v24 }
 0x155   : > { %1737 = vmatprep.mubr.f32.mxu0 %v4170_v24  ;;  %2776 = vperm.xlu1 %4015, %v4560_v59  }
 0x157   : > { %1222 = vmatmul.mubr.f32.gmra.mrb[10].mxu1 %v4651_v18  ;;  %v4918_v33 = vpop.permute.xlu1 %620 }
 0x158   : > { %1739 = vmatmul.mubr.f32.gmra.mrb[10].mxu0 %v4626_v7  ;;  %1227 = vmatprep.mubr.f32.mxu1 %v4170_v24 }
 0x159   : > { %1744 = vmatprep.mubr.f32.mxu0 %v4170_v24  ;;  %2784 = vperm.xlu1 %4015, %v4596_v15  }
 0x15b   : > { %1230 = vmatmul.mubr.f32.gmra.mrb[12].mxu1 %v4680_v52  ;;  %v4920_v35 = vpop.permute.xlu1 %630 }
 0x15c   : > { %1746 = vmatmul.mubr.f32.gmra.mrb[12].mxu0 %v4659_v29  ;;  %1235 = vmatprep.mubr.f32.mxu1 %v4170_v24 }
 0x15d   : > { %1751 = vmatprep.mubr.f32.mxu0 %v4170_v24  ;;  %2792 = vperm.xlu1 %4015, %v4675_v55  }
 0x15f   : > { %1238 = vmatmul.mubr.f32.gmra.mrb[14].mxu1 %v4692_v62  ;;  %v4922_v36 = vpop.permute.xlu1 %640 }
 0x160   : > { %1753 = vmatmul.mubr.f32.gmra.mrb[14].mxu0 %v4670_v54  ;;  %1243 = vmatprep.mubr.f32.mxu1 %v4170_v24 }
 0x161   : > { %1758 = vmatprep.mubr.f32.mxu0 %v4170_v24  ;;  %2800 = vperm.xlu1 %4015, %v4698_v2  }
 0x163   : > { %1246 = vmatmul.mubr.f32.gmra.mrb[16].mxu1 %v4716_v11  ;;  %v4924_v39 = vpop.permute.xlu1 %650 }
 0x164   : > { %1760 = vmatmul.mubr.f32.gmra.mrb[16].mxu0 %v4702_v26  ;;  %1251 = vmatprep.mubr.f32.mxu1 %v4170_v24 }
 0x165   : > { %1765 = vmatprep.mubr.f32.mxu0 %v4170_v24  ;;  %4018 = vset.pattern.permute.xlu1 %v4177_v34 }
 0x166   : > { %2917 = vperm.xlu1 %4018, %v4523_v30   ;;  %v4936_v30 = vpop.permute.xlu0 %635 }
 0x167   : > { %1254 = vmatmul.mubr.f32.gmra.mrb[18].mxu1 %v4731_v25  ;;  %v4926_v45 = vpop.permute.xlu1 %660 }
 0x168   : > { %1767 = vmatmul.mubr.f32.gmra.mrb[18].mxu0 %v4718_v28  ;;  %1259 = vmatprep.mubr.f32.mxu1 %v4170_v24 }
 0x169   : > { %1772 = vmatprep.mubr.f32.mxu0 %v4170_v24 }
 0x16a   : > { %v4940_v37 = vpop.permute.xlu0 %645 }
 0x16b   : > { %1262 = vmatmul.mubr.f32.gmra.mrb[20].mxu1 %v4743_v56  ;;  %v4928_v50 = vpop.permute.xlu1 %1886  ;;  %v1800_v56 = vstv %s1799_s15 }
 0x16c   : > { %1774 = vmatmul.mubr.f32.gmra.mrb[20].mxu0 %v4733_v43  ;;  %1267 = vmatprep.mubr.f32.mxu1 %v4170_v24  ;;  %6828 = vst [vmem:[#allocation14_spill] sm:$0xff] %v4928_v50  ;;  %vm1801_vm5 = vcmp.eq.s32.totalorder %v1800_v56, 1 }
 0x16d   : > { %1779 = vmatprep.mubr.f32.mxu0 %v4170_v24  ;;  %vm1802_vm7 = vmor %vm1796_vm4, %vm1801_vm5  ;;  %vm2875_vm4 = vcmask 785408   ;;  %vm2633_vm5 = vcmask 908288  }
 0x16e   : > { %v4944_v44 = vpop.permute.xlu0 %655  ;;  %vm5013_vm8 = vmand %vm1790_vm6, %vm1802_vm7  ;;  %vm3128_vm6 = vcmask 777216   ;;  %vm3213_vm7 = vcmask 769024  }
 0x16f   : > { %1270 = vmatmul.mubr.f32.gmra.mrb[22].mxu1 %v4754_v46  ;;  %v4930_v24 = vpop.permute.xlu1 %1896  ;;  %v1789_v46 = vadd.s32 128, %v5001_v63 }
 0x170   : > { %1781 = vmatmul.mubr.f32.gmra.mrb[22].mxu0 %v4745_v58 }
 0x171   : > { %vm1807_vm9 = vcmp.lt.s32.totalorder %v1789_v46, 145  ;;  %vm1793_vm11 = vcmp.lt.s32.totalorder %v1789_v46, 161 }
 0x172   : > { %v4948_v59 = vpop.permute.xlu0 %665  ;;  %vm1813_vm12 = vmor %vm1807_vm9, %vm1811_vm10 }
 0x173   : > { %v4934_v16 = vpop.permute.xlu1 %1906  ;;  %vm5039_vm13 = vmand %vm1793_vm11, %vm1813_vm12 }
 0x176   : > { %v4952_v10 = vpop.permute.xlu0 %1973 }
 0x177   : > { %v4938_v31 = vpop.permute.xlu1 %1916 }
 0x17a   : > { %v4956_v20 = vpop.permute.xlu0 %1985 }
 0x17b   : > { %v4942_v41 = vpop.permute.xlu1 %1926 }
 0x17e   : > { %v4960_v23 = vpop.permute.xlu0 %1993 }
 0x17f   : > { %v4946_v53 = vpop.permute.xlu1 %1936 }
 0x180   : > { %6829 = vst [vmem:[#allocation15_spill] sm:$0xff] %v4946_v53 }
 0x182   : > { %v4964_v4 = vpop.permute.xlu0 %2001 }
 0x183   : > { %v4950_v8 = vpop.permute.xlu1 %1969 }
 0x186   : > { %v4968_v18 = vpop.permute.xlu0 %2009 }
 0x187   : > { %v4954_v13 = vpop.permute.xlu1 %1977 }
 0x18a   : > { %v4972_v54 = vpop.permute.xlu0 %2261 }
 0x18b   : > { %v4958_v21 = vpop.permute.xlu1 %1981  ;;  %6830 = vst [vmem:[#allocation16_spill] sm:$0xff] %v4972_v54 }
 0x18e   : > { %v4976_v52 = vpop.permute.xlu0 %2273 }
 0x18f   : > { %v4962_v15 = vpop.permute.xlu1 %1989  ;;  %6831 = vst [vmem:[#allocation17_spill] sm:$0xff] %v4976_v52 }
 0x192   : > { %v4980_v2 = vpop.permute.xlu0 %2281 }
 0x193   : > { %v4966_v7 = vpop.permute.xlu1 %1997  ;;  %6833 = vst [vmem:[#allocation19_spill] sm:$0xff] %v4980_v2 }
 0x196   : > { %v4984_v11 = vpop.permute.xlu0 %2289 }
 0x197   : > { %v4970_v29 = vpop.permute.xlu1 %2005  ;;  %6834 = vst [vmem:[#allocation20_spill] sm:$0xff] %v4984_v11 }
 0x19a   : > { %v4988_v42 = vpop.permute.xlu0 %2297 }
 0x19b   : > { %v4974_v55 = vpop.permute.xlu1 %2013  ;;  %6835 = vst [vmem:[#allocation21_spill] sm:$0xff] %v4988_v42 }
 0x19e   : > { %v4992_v25 = vpop.permute.xlu0 %2305 }
 0x19f   : > { %v4978_v62 = vpop.permute.xlu1 %2265  ;;  %6836 = vst [vmem:[#allocation22_spill] sm:$0xff] %v4992_v25 }
 0x1a0   : > { %6832 = vst [vmem:[#allocation18_spill] sm:$0xff] %v4978_v62 }
 0x1a2   : > { %v4997_v14 = vpop.permute.xlu0 %2422 }
 0x1a3   : > { %v4982_v26 = vpop.permute.xlu1 %2269  ;;  %6838 = vst [vmem:[#allocation24_spill] sm:$0xff] %v4997_v14 }
 0x1a6   : > { %v5004_v58 = vpop.permute.xlu0 %2434 }
 0x1a7   : > { %v4986_v28 = vpop.permute.xlu1 %2277 }
 0x1aa   : > { %v5010_v0 = vpop.permute.xlu0 %2442 }
 0x1ab   : > { %v4990_v9 = vpop.permute.xlu1 %2285 }
 0x1af   : > { %v4995_v43 = vpop.permute.xlu1 %2293 }
 0x1b0   : > { %6837 = vst [vmem:[#allocation23_spill] sm:$0xff] %v4995_v43 }
 0x1b3   : > { %v4999_v60 = vpop.permute.xlu1 %2301 }
 0x1b4   : > { %6839 = vst [vmem:[#allocation25_spill] sm:$0xff] %v4999_v60 }
 0x1b7   : > { %v5007_v51 = vpop.permute.xlu1 %2418 }
 0x1b8   : > { %6840 = vst [vmem:[#allocation26_spill] sm:$0xff] %v5007_v51 }
 0x1bb   : > { %v5017_v40 = vpop.permute.xlu1 %2426 }
 0x216   : > { %v1183_v3 = vpop.f32.mrb[0].mxu1 }
 0x217   : > { %v3734_v22 = vadd.f32 %v1183_v3, %v611_v61  ;;  %v1705_v27 = vpop.f32.mrb[0].mxu0  ;;  %v1185_v48 = vpop.f32.mrb[1].mxu1 }
 0x218   : > { %v3736_v1 = vadd.f32 %v1185_v48, %v611_v61  ;;  %v1707_v17 = vpop.f32.mrb[1].mxu0  ;;  %v5024_v3 = vpop.permute.xlu0 %2450 }
 0x219   : > { %v3735_v57 = vadd.f32 %v3734_v22, %v1705_v27  ;;  %6844 = vst [vmem:[#allocation28_spill] sm:$0xff] %v5024_v3 }
 0x21a   : > { %v3737_v5 = vadd.f32 %v3736_v1, %v1707_v17  ;;  %v1191_v6 = vpop.f32.mrb[2].mxu1 }
 0x21b   : > { %v5021_v19 = vsel %vm5013_vm8, %v3735_v57, 0.0  ;;  %v3738_v34 = vadd.f32 %v1191_v6, %v4916_v32  ;;  %v1712_v49 = vpop.f32.mrb[2].mxu0  ;;  %v1193_v56 = vpop.f32.mrb[3].mxu1 }
 0x21c   : > { %6843 = vst [vmem:[#allocation27_spill] sm:$0xff] %v5021_v19  ;;  %v3740_v61 = vadd.f32 %v1193_v56, %v4916_v32  ;;  %v1714_v48 = vpop.f32.mrb[3].mxu0  ;;  %2332 = vrot.lane.b32.xlu1 %v5021_v19, %s4178_s20  ;;  %2175 = vrot.lane.b32.xlu0 %v5021_v19, %s4179_s0  ;;  %v5037_v57 = vpop.permute.xlu1 %2430 }
 0x21d   : > { %v5032_v22 = vadd.f32 %v3738_v34, %v1712_v49  ;;  %6845 = vst [vmem:[#allocation29_spill] sm:$0xff] %v5037_v57  ;;  %v5050_v34 = vpop.permute.xlu0 %2458 }
 0x21e   : > { %v5034_v27 = vadd.f32 %v3740_v61, %v1714_v48  ;;  %v1199_v38 = vpop.f32.mrb[4].mxu1  ;;  %6848 = vst [vmem:[#allocation30_spill] sm:$0xff] %v5050_v34  ;;  %v5056_v48 = vsel %vm5039_vm13, %v3737_v5, 0.0 }
 0x21f   : > { %v3742_v1 = vadd.f32 %v1199_v38, %v4918_v33  ;;  %v1719_v32 = vpop.f32.mrb[4].mxu0  ;;  %v1201_v17 = vpop.f32.mrb[5].mxu1  ;;  %6849 = vst [vmem:[#allocation31_spill] sm:$0xff] %v5056_v48 }
 0x220   : > { %v3744_v56 = vadd.f32 %v1201_v17, %v4918_v33  ;;  %v1721_v25 = vpop.f32.mrb[5].mxu0  ;;  %2670 = vrot.lane.b32.xlu1 %v5021_v19, %s4180_s29  ;;  %2827 = vrot.lane.b32.xlu0 %v5021_v19, %s4181_s30 }
 0x221   : > { %v5048_v46 = vadd.f32 %v3742_v1, %v1719_v32  ;;  %v5064_v1 = vpop.permute.xlu1 %2438 }
 0x222   : > { %v5052_v49 = vadd.f32 %v3744_v56, %v1721_v25  ;;  %v1207_v61 = vpop.f32.mrb[6].mxu1  ;;  %6850 = vst [vmem:[#allocation32_spill] sm:$0xff] %v5064_v1 }
 0x223   : > { %v3746_v33 = vadd.f32 %v1207_v61, %v4932_v12  ;;  %v1726_v38 = vpop.f32.mrb[6].mxu0  ;;  %v1209_v17 = vpop.f32.mrb[7].mxu1 }
 0x224   : > { %v3748_v42 = vadd.f32 %v1209_v17, %v4932_v12  ;;  %v1728_v11 = vpop.f32.mrb[7].mxu0  ;;  %2177 = vrot.lane.b32.xlu1 %v5056_v48, %s4179_s0  ;;  %2334 = vrot.lane.b32.xlu0 %v5056_v48, %s4178_s20  ;;  %v5228_v47 = vsel %vm5039_vm13, %v5052_v49, 0.0 }
 0x225   : > { %v3747_v25 = vadd.f32 %v3746_v33, %v1726_v38  ;;  %v5088_v14 = vpop.permute.xlu1 %2446  ;;  %6871 = vst [vmem:[#allocation53_spill] sm:$0xff] %v5228_v47 }
 0x226   : > { %v3749_v32 = vadd.f32 %v3748_v42, %v1728_v11  ;;  %v1215_v56 = vpop.f32.mrb[8].mxu1  ;;  %v2491_v11 = vpop.permute.xlu0 %2490  ;;  %6853 = vst [vmem:[#allocation35_spill] sm:$0xff] %v5088_v14  ;;  %v2017_v14 = vmul.f32 %v4950_v8, %v5056_v48 }
 0x227   : > { %v5068_v5 = vsel %vm5013_vm8, %v3747_v25, 0.0  ;;  %v3750_v61 = vadd.f32 %v1215_v56, %v4920_v35  ;;  %v1733_v2 = vpop.f32.mrb[8].mxu0  ;;  %v1217_v12 = vpop.f32.mrb[9].mxu1  ;;  %v2537_v33 = vmul.f32 %v2491_v11, %v5021_v19  ;;  %v2016_v56 = vmul.f32 %v4950_v8, %v5021_v19 }
 0x228   : > { %6851 = vst [vmem:[#allocation33_spill] sm:$0xff] %v5068_v5  ;;  %v5073_v17 = vsel %vm5039_vm13, %v3749_v32, 0.0  ;;  %v3752_v57 = vadd.f32 %v1217_v12, %v4920_v35  ;;  %v1735_v52 = vpop.f32.mrb[9].mxu0  ;;  %2829 = vrot.lane.b32.xlu1 %v5056_v48, %s4181_s30  ;;  %2672 = vrot.lane.b32.xlu0 %v5056_v48, %s4180_s29  ;;  %v2538_v62 = vmul.f32 %v2491_v11, %v5056_v48 }
 0x229   : > { %6852 = vst [vmem:[#allocation34_spill] sm:$0xff] %v5073_v17  ;;  %v3751_v42 = vadd.f32 %v3750_v61, %v1733_v2  ;;  %v5112_v11 = vpop.permute.xlu1 %2454 }
 0x22a   : > { %v3753_v38 = vadd.f32 %v3752_v57, %v1735_v52  ;;  %v1223_v25 = vpop.f32.mrb[10].mxu1  ;;  %6857 = vst [vmem:[#allocation39_spill] sm:$0xff] %v5112_v11 }
 0x22b   : > { %v5085_v32 = vsel %vm5013_vm8, %v3751_v42, 0.0  ;;  %v3754_v35 = vadd.f32 %v1223_v25, %v4936_v30  ;;  %v1740_v12 = vpop.f32.mrb[10].mxu0  ;;  %v1225_v1 = vpop.f32.mrb[11].mxu1 }
 0x22c   : > { %v5092_v2 = vsel %vm5039_vm13, %v3753_v38, 0.0  ;;  %v3756_v52 = vadd.f32 %v1225_v1, %v4936_v30  ;;  %v1742_v57 = vpop.f32.mrb[11].mxu0  ;;  %2064 = vrot.lane.b32.xlu0 %v2016_v56, %s4182_s25  ;;  %2585 = vrot.lane.b32.xlu1 %v2537_v33, %s4183_s13 }
 0x22d   : > { %6854 = vst [vmem:[#allocation36_spill] sm:$0xff] %v5092_v2  ;;  %v3755_v61 = vadd.f32 %v3754_v35, %v1740_v12 }
 0x22e   : > { %v3757_v42 = vadd.f32 %v3756_v52, %v1742_v57  ;;  %v1231_v25 = vpop.f32.mrb[12].mxu1  ;;  %v5117_v57 = vsel %vm5013_vm8, %v5032_v22, 0.0 }
 0x22f   : > { %v5102_v38 = vsel %vm5013_vm8, %v3755_v61, 0.0  ;;  %v3758_v30 = vadd.f32 %v1231_v25, %v4922_v36  ;;  %v1747_v1 = vpop.f32.mrb[12].mxu0  ;;  %v1233_v51 = vpop.f32.mrb[13].mxu1  ;;  %6858 = vst [vmem:[#allocation40_spill] sm:$0xff] %v5117_v57 }
 0x230   : > { %6855 = vst [vmem:[#allocation37_spill] sm:$0xff] %v5102_v38  ;;  %v5107_v56 = vsel %vm5039_vm13, %v3757_v42, 0.0  ;;  %v3760_v33 = vadd.f32 %v1233_v51, %v4922_v36  ;;  %v1749_v35 = vpop.f32.mrb[13].mxu0  ;;  %2587 = vrot.lane.b32.xlu0 %v2538_v62, %s4183_s13  ;;  %2066 = vrot.lane.b32.xlu1 %v2017_v14, %s4182_s25 }
 0x231   : > { %6856 = vst [vmem:[#allocation38_spill] sm:$0xff] %v5107_v56  ;;  %v3759_v8 = vadd.f32 %v3758_v30, %v1747_v1 }
 0x232   : > { %v3761_v12 = vadd.f32 %v3760_v33, %v1749_v35  ;;  %v1239_v52 = vpop.f32.mrb[14].mxu1 }
 0x233   : > { %v5121_v61 = vsel %vm5013_vm8, %v3759_v8, 0.0  ;;  %v3762_v36 = vadd.f32 %v1239_v52, %v4940_v37  ;;  %v1754_v51 = vpop.f32.mrb[14].mxu0  ;;  %v1241_v62 = vpop.f32.mrb[15].mxu1 }
 0x234   : > { %v5126_v14 = vsel %vm5039_vm13, %v3761_v12, 0.0  ;;  %v3764_v42 = vadd.f32 %v1241_v62, %v4940_v37  ;;  %v1756_v25 = vpop.f32.mrb[15].mxu0  ;;  %2179 = vrot.lane.b32.xlu0 %v5117_v57, %s4179_s0  ;;  %2336 = vrot.lane.b32.xlu1 %v5117_v57, %s4178_s20  ;;  %v5138_v52 = vpop.permute.xlu1 %2462 }
 0x235   : > { %6859 = vst [vmem:[#allocation41_spill] sm:$0xff] %v5126_v14  ;;  %v3763_v22 = vadd.f32 %v3762_v36, %v1754_v51  ;;  %6861 = vst [vmem:[#allocation43_spill] sm:$0xff] %v5138_v52 }
 0x236   : > { %v3765_v30 = vadd.f32 %v3764_v42, %v1756_v25  ;;  %v1247_v1 = vpop.f32.mrb[16].mxu1  ;;  %v5152_v25 = vsel %vm5039_vm13, %v5034_v27, 0.0 }
 0x237   : > { %v5135_v33 = vsel %vm5013_vm8, %v3763_v22, 0.0  ;;  %v3766_v35 = vadd.f32 %v1247_v1, %v4924_v39  ;;  %v1761_v8 = vpop.f32.mrb[16].mxu0  ;;  %v1249_v12 = vpop.f32.mrb[17].mxu1  ;;  %6863 = vst [vmem:[#allocation45_spill] sm:$0xff] %v5152_v25 }
 0x238   : > { %6860 = vst [vmem:[#allocation42_spill] sm:$0xff] %v5135_v33  ;;  %v5142_v37 = vsel %vm5039_vm13, %v3765_v30, 0.0  ;;  %v3768_v62 = vadd.f32 %v1249_v12, %v4924_v39  ;;  %v1763_v11 = vpop.f32.mrb[17].mxu0  ;;  %2831 = vrot.lane.b32.xlu0 %v5117_v57, %s4181_s30  ;;  %2674 = vrot.lane.b32.xlu1 %v5117_v57, %s4180_s29 }
 0x239   : > { %6862 = vst [vmem:[#allocation44_spill] sm:$0xff] %v5142_v37  ;;  %v3767_v36 = vadd.f32 %v3766_v35, %v1761_v8  ;;  %v2495_v8 = vpop.permute.xlu1 %2494 }
 0x23a   : > { %v3769_v51 = vadd.f32 %v3768_v62, %v1763_v11  ;;  %v1255_v42 = vpop.f32.mrb[18].mxu1 }
 0x23b   : > { %v5156_v22 = vsel %vm5013_vm8, %v3767_v36, 0.0  ;;  %v3770_v39 = vadd.f32 %v1255_v42, %v4944_v44  ;;  %v1768_v30 = vpop.f32.mrb[18].mxu0  ;;  %v1257_v1 = vpop.f32.mrb[19].mxu1 }
 0x23c   : > { %v5161_v12 = vsel %vm5039_vm13, %v3769_v51, 0.0  ;;  %v3772_v11 = vadd.f32 %v1257_v1, %v4944_v44  ;;  %v1770_v35 = vpop.f32.mrb[19].mxu0  ;;  %2338 = vrot.lane.b32.xlu0 %v5152_v25, %s4178_s20  ;;  %2181 = vrot.lane.b32.xlu1 %v5152_v25, %s4179_s0 }
 0x23d   : > { %6864 = vst [vmem:[#allocation46_spill] sm:$0xff] %v5161_v12  ;;  %v3771_v27 = vadd.f32 %v3770_v39, %v1768_v30  ;;  %v2539_v30 = vmul.f32 %v2495_v8, %v5117_v57 }
 0x23e   : > { %v3773_v62 = vadd.f32 %v3772_v11, %v1770_v35  ;;  %v1263_v36 = vpop.f32.mrb[20].mxu1 }
 0x23f   : > { %v5170_v42 = vsel %vm5013_vm8, %v3771_v27, 0.0  ;;  %v3774_v51 = vadd.f32 %v1263_v36, %v4926_v45  ;;  %v1775_v52 = vpop.f32.mrb[20].mxu0  ;;  %v1265_v54 = vpop.f32.mrb[21].mxu1  ;;  %v2018_v27 = vmul.f32 %v4952_v10, %v5117_v57 }
 0x240   : > { %6865 = vst [vmem:[#allocation47_spill] sm:$0xff] %v5170_v42  ;;  %v5175_v44 = vsel %vm5039_vm13, %v3773_v62, 0.0  ;;  %v3776_v1 = vadd.f32 %v1265_v54, %v4926_v45  ;;  %v1777_v50 = vpop.f32.mrb[21].mxu0  ;;  %2676 = vrot.lane.b32.xlu0 %v5152_v25, %s4180_s29  ;;  %2833 = vrot.lane.b32.xlu1 %v5152_v25, %s4181_s30 }
 0x241   : > { %6866 = vst [vmem:[#allocation48_spill] sm:$0xff] %v5175_v44  ;;  %v3775_v39 = vadd.f32 %v3774_v51, %v1775_v52 }
 0x242   : > { %v3777_v11 = vadd.f32 %v3776_v1, %v1777_v50  ;;  %v1271_v35 = vpop.f32.mrb[22].mxu1  ;;  %v2540_v1 = vmul.f32 %v2495_v8, %v5152_v25  ;;  %v2499_v8 = vpop.permute.xlu1 %2498 }
 0x243   : > { %v5187_v62 = vsel %vm5013_vm8, %v3775_v39, 0.0  ;;  %v3778_v45 = vadd.f32 %v1271_v35, %v4948_v59  ;;  %v1782_v54 = vpop.f32.mrb[22].mxu0  ;;  %v1273_v36 = vpop.f32.mrb[23].mxu1  ;;  %v2019_v35 = vmul.f32 %v4952_v10, %v5152_v25 }
 0x244   : > { %v5192_v48 = vsel %vm5039_vm13, %v3777_v11, 0.0  ;;  %v3780_v52 = vadd.f32 %v1273_v36, %v4948_v59  ;;  %v1784_v51 = vpop.f32.mrb[23].mxu0  ;;  %2068 = vrot.lane.b32.xlu0 %v2018_v27, %s4182_s25  ;;  %2589 = vrot.lane.b32.xlu1 %v2539_v30, %s4183_s13  ;;  %v5213_v59 = vsel %vm5013_vm8, %v5048_v46, 0.0  ;;  %v2503_v10 = vpop.permute.xlu0 %2502 }
 0x245   : > { %6867 = vst [vmem:[#allocation49_spill] sm:$0xff] %v5192_v48  ;;  %v3779_v50 = vadd.f32 %v3778_v45, %v1782_v54  ;;  %6870 = vst [vmem:[#allocation52_spill] sm:$0xff] %v5213_v59  ;;  %v2541_v49 = vmul.f32 %v2499_v8, %v5213_v59  ;;  %v2020_v54 = vmul.f32 %v4954_v13, %v5213_v59 }
 0x246   : > { %v3781_v39 = vadd.f32 %v3780_v52, %v1784_v51  ;;  %v5219_v30 = vpop.permute.xlu1 %2506  ;;  %v2542_v52 = vmul.f32 %v2499_v8, %v5228_v47  ;;  %v2021_v51 = vmul.f32 %v4954_v13, %v5228_v47 }
 0x247   : > { %v5202_v57 = vsel %vm5013_vm8, %v3779_v50, 0.0 }
 0x248   : > { %6868 = vst [vmem:[#allocation50_spill] sm:$0xff] %v5202_v57  ;;  %v5206_v11 = vsel %vm5039_vm13, %v3781_v39, 0.0  ;;  %2591 = vrot.lane.b32.xlu0 %v2540_v1, %s4183_s13  ;;  %2070 = vrot.lane.b32.xlu1 %v2019_v35, %s4182_s25  ;;  %v5230_v46 = vpop.permute.xlu0 %2510 }
 0x249   : > { %6869 = vst [vmem:[#allocation51_spill] sm:$0xff] %v5206_v11 }
 0x24a   : > { %v5232_v27 = vpop.permute.xlu1 %2514 }
 0x24c   : > { %2183 = vrot.lane.b32.xlu0 %v5213_v59, %s4179_s0  ;;  %2340 = vrot.lane.b32.xlu1 %v5213_v59, %s4178_s20  ;;  %v5244_v6 = vpop.permute.xlu0 %2518 }
 0x24e   : > { %v5238_v45 = vpop.permute.xlu1 %2522 }
 0x250   : > { %2835 = vrot.lane.b32.xlu0 %v5213_v59, %s4181_s30  ;;  %2678 = vrot.lane.b32.xlu1 %v5213_v59, %s4180_s29  ;;  %v5256_v50 = vpop.permute.xlu0 %2526 }
 0x251   : > { %v2556_v34 = vmul.f32 %v5256_v50, %v5175_v44 }
 0x252   : > { %v5249_v36 = vpop.permute.xlu1 %2530 }
 0x254   : > { %2342 = vrot.lane.b32.xlu0 %v5228_v47, %s4178_s20  ;;  %2185 = vrot.lane.b32.xlu1 %v5228_v47, %s4179_s0  ;;  %v5266_v39 = vpop.permute.xlu0 %2534 }
 0x256   : > { %v5260_v1 = vpop.permute.xlu1 %2756 }
 0x257   : > { %6872 = vst [vmem:[#allocation54_spill] sm:$0xff] %v5260_v1 }
 0x258   : > { %2680 = vrot.lane.b32.xlu0 %v5228_v47, %s4180_s29  ;;  %2837 = vrot.lane.b32.xlu1 %v5228_v47, %s4181_s30  ;;  %v5274_v13 = vpop.permute.xlu0 %2760 }
 0x259   : > { %6873 = vst [vmem:[#allocation55_spill] sm:$0xff] %v5274_v13  ;;  %v2023_v13 = vmul.f32 %v4958_v21, %v5073_v17 }
 0x25a   : > { %v5268_v35 = vpop.permute.xlu1 %2764 }
 0x25c   : > { %2072 = vrot.lane.b32.xlu0 %v2020_v54, %s4182_s25  ;;  %2593 = vrot.lane.b32.xlu1 %v2541_v49, %s4183_s13  ;;  %v5286_v49 = vpop.permute.xlu0 %2772 }
 0x25d   : > { %6875 = vst [vmem:[#allocation57_spill] sm:$0xff] %v5286_v49  ;;  %v5712_v49 = vld [vmem:[%s6741_s5 + $0x18] sm:$0xff] }
 0x25e   : > { %v5276_v8 = vpop.permute.xlu1 %2768  ;;  %6943 = vst [vmem:[#allocation125_spill] sm:$0xff] %v5712_v49 }
 0x25f   : > { %6874 = vst [vmem:[#allocation56_spill] sm:$0xff] %v5276_v8  ;;  %v2544_v8 = vmul.f32 %v2503_v10, %v5073_v17 }
 0x260   : > { %2595 = vrot.lane.b32.xlu0 %v2542_v52, %s4183_s13  ;;  %2074 = vrot.lane.b32.xlu1 %v2021_v51, %s4182_s25  ;;  %v2022_v52 = vmul.f32 %v4958_v21, %v5068_v5  ;;  %v2543_v51 = vmul.f32 %v2503_v10, %v5068_v5  ;;  %v5298_v1 = vpop.permute.xlu0 %2780 }
 0x261   : > { %6877 = vst [vmem:[#allocation59_spill] sm:$0xff] %v5298_v1 }
 0x262   : > { %v5288_v54 = vpop.permute.xlu1 %2776 }
 0x263   : > { %6876 = vst [vmem:[#allocation58_spill] sm:$0xff] %v5288_v54 }
 0x264   : > { %2187 = vrot.lane.b32.xlu0 %v5068_v5, %s4179_s0  ;;  %2344 = vrot.lane.b32.xlu1 %v5068_v5, %s4178_s20 }
 0x266   : > { %v5300_v47 = vpop.permute.xlu1 %2784 }
 0x267   : > { %6878 = vst [vmem:[#allocation60_spill] sm:$0xff] %v5300_v47  ;;  %v2546_v47 = vmul.f32 %v5219_v30, %v5092_v2 }
 0x268   : > { %2839 = vrot.lane.b32.xlu0 %v5068_v5, %s4181_s30  ;;  %2682 = vrot.lane.b32.xlu1 %v5068_v5, %s4180_s29 }
 0x26a   : > { %v5310_v10 = vpop.permute.xlu1 %2792 }
 0x26b   : > { %6880 = vst [vmem:[#allocation62_spill] sm:$0xff] %v5310_v10  ;;  %v2545_v10 = vmul.f32 %v5219_v30, %v5085_v32 }
 0x26c   : > { %2346 = vrot.lane.b32.xlu0 %v5073_v17, %s4178_s20  ;;  %2189 = vrot.lane.b32.xlu1 %v5073_v17, %s4179_s0 }
 0x270   : > { %2684 = vrot.lane.b32.xlu0 %v5073_v17, %s4180_s29  ;;  %2841 = vrot.lane.b32.xlu1 %v5073_v17, %s4181_s30 }
 0x274   : > { %2076 = vrot.lane.b32.xlu0 %v2022_v52, %s4182_s25  ;;  %2597 = vrot.lane.b32.xlu1 %v2543_v51, %s4183_s13  ;;  %v5308_v52 = vpop.permute.xlu0 %2788 }
 0x275   : > { %6879 = vst [vmem:[#allocation61_spill] sm:$0xff] %v5308_v52  ;;  %v2035_v52 = vmul.f32 %v4970_v29, %v5175_v44 }
 0x278   : > { %2599 = vrot.lane.b32.xlu0 %v2544_v8, %s4183_s13  ;;  %2078 = vrot.lane.b32.xlu1 %v2023_v13, %s4182_s25  ;;  %v5316_v21 = vpop.permute.xlu0 %2796  ;;  %v5318_v8 = vpop.permute.xlu1 %2800 }
 0x279   : > { %6881 = vst [vmem:[#allocation63_spill] sm:$0xff] %v5316_v21  ;;  %6882 = vst [vmem:[#allocation64_spill] sm:$0xff] %v5318_v8  ;;  %v2024_v8 = vmul.f32 %v4956_v20, %v5085_v32 }
 0x27c   : > { %2191 = vrot.lane.b32.xlu0 %v5085_v32, %s4179_s0  ;;  %2348 = vrot.lane.b32.xlu1 %v5085_v32, %s4178_s20  ;;  %v5328_v13 = vpop.permute.xlu1 %2917  ;;  %v5330_v51 = vpop.permute.xlu0 %2913 }
 0x27d   : > { %6883 = vst [vmem:[#allocation65_spill] sm:$0xff] %v5328_v13  ;;  %6884 = vst [vmem:[#allocation66_spill] sm:$0xff] %v5330_v51  ;;  %v2025_v13 = vmul.f32 %v4956_v20, %v5092_v2 }
 0x280   : > { %2843 = vrot.lane.b32.xlu0 %v5085_v32, %s4181_s30  ;;  %2686 = vrot.lane.b32.xlu1 %v5085_v32, %s4180_s29 }
 0x284   : > { %2350 = vrot.lane.b32.xlu0 %v5092_v2, %s4178_s20  ;;  %2193 = vrot.lane.b32.xlu1 %v5092_v2, %s4179_s0 }
 0x288   : > { %2688 = vrot.lane.b32.xlu0 %v5092_v2, %s4180_s29  ;;  %2845 = vrot.lane.b32.xlu1 %v5092_v2, %s4181_s30  ;;  %v2552_v2 = vmul.f32 %v5244_v6, %v5142_v37 }
 0x28c   : > { %2080 = vrot.lane.b32.xlu0 %v2024_v8, %s4182_s25  ;;  %2601 = vrot.lane.b32.xlu1 %v2545_v10, %s4183_s13 }
 0x28e   : > { %v5340_v54 = vpop.permute.xlu1 %2332  ;;  %v5342_v17 = vpop.permute.xlu0 %2175 }
 0x28f   : > { %6885 = vst [vmem:[#allocation67_spill] sm:$0xff] %v5340_v54  ;;  %6886 = vst [vmem:[#allocation68_spill] sm:$0xff] %v5342_v17  ;;  %v2551_v17 = vmul.f32 %v5244_v6, %v5135_v33 }
 0x290   : > { %2603 = vrot.lane.b32.xlu0 %v2546_v47, %s4183_s13  ;;  %2082 = vrot.lane.b32.xlu1 %v2025_v13, %s4182_s25 }
 0x292   : > { %v5348_v51 = vpop.permute.xlu1 %2670  ;;  %v5350_v5 = vpop.permute.xlu0 %2827 }
 0x293   : > { %6887 = vst [vmem:[#allocation69_spill] sm:$0xff] %v5348_v51  ;;  %6888 = vst [vmem:[#allocation70_spill] sm:$0xff] %v5350_v5  ;;  %v2026_v51 = vmul.f32 %v4962_v15, %v5102_v38 }
 0x294   : > { %2195 = vrot.lane.b32.xlu0 %v5102_v38, %s4179_s0  ;;  %2352 = vrot.lane.b32.xlu1 %v5102_v38, %s4178_s20 }
 0x296   : > { %v5356_v30 = vpop.permute.xlu1 %2177  ;;  %v5358_v10 = vpop.permute.xlu0 %2334 }
 0x297   : > { %6889 = vst [vmem:[#allocation71_spill] sm:$0xff] %v5356_v30  ;;  %6890 = vst [vmem:[#allocation72_spill] sm:$0xff] %v5358_v10  ;;  %v2548_v10 = vmul.f32 %v5230_v46, %v5107_v56  ;;  %v2030_v30 = vmul.f32 %v4966_v7, %v5135_v33 }
 0x298   : > { %2847 = vrot.lane.b32.xlu0 %v5102_v38, %s4181_s30  ;;  %2690 = vrot.lane.b32.xlu1 %v5102_v38, %s4180_s29 }
 0x29a   : > { %v5364_v20 = vpop.permute.xlu1 %2829  ;;  %v5366_v47 = vpop.permute.xlu0 %2672 }
 0x29b   : > { %6891 = vst [vmem:[#allocation73_spill] sm:$0xff] %v5364_v20  ;;  %6892 = vst [vmem:[#allocation74_spill] sm:$0xff] %v5366_v47  ;;  %v2547_v47 = vmul.f32 %v5230_v46, %v5102_v38  ;;  %v2031_v38 = vmul.f32 %v4966_v7, %v5142_v37 }
 0x29c   : > { %2354 = vrot.lane.b32.xlu0 %v5107_v56, %s4178_s20  ;;  %2197 = vrot.lane.b32.xlu1 %v5107_v56, %s4179_s0 }
 0x29e   : > { %v5372_v8 = vpop.permute.xlu1 %2585  ;;  %v5374_v13 = vpop.permute.xlu0 %2064 }
 0x29f   : > { %6893 = vst [vmem:[#allocation75_spill] sm:$0xff] %v5372_v8  ;;  %6894 = vst [vmem:[#allocation76_spill] sm:$0xff] %v5374_v13 }
 0x2a0   : > { %2692 = vrot.lane.b32.xlu0 %v5107_v56, %s4180_s29  ;;  %2849 = vrot.lane.b32.xlu1 %v5107_v56, %s4181_s30 }
 0x2a2   : > { %v5380_v5 = vpop.permute.xlu1 %2066  ;;  %v5382_v20 = vpop.permute.xlu0 %2587 }
 0x2a3   : > { %6895 = vst [vmem:[#allocation77_spill] sm:$0xff] %v5380_v5  ;;  %6896 = vst [vmem:[#allocation78_spill] sm:$0xff] %v5382_v20  ;;  %v2027_v20 = vmul.f32 %v4962_v15, %v5107_v56 }
 0x2a4   : > { %2084 = vrot.lane.b32.xlu0 %v2026_v51, %s4182_s25  ;;  %2605 = vrot.lane.b32.xlu1 %v2547_v47, %s4183_s13 }
 0x2a6   : > { %v5390_v8 = vpop.permute.xlu1 %2336  ;;  %v5392_v54 = vpop.permute.xlu0 %2179 }
 0x2a7   : > { %6897 = vst [vmem:[#allocation79_spill] sm:$0xff] %v5390_v8  ;;  %6898 = vst [vmem:[#allocation80_spill] sm:$0xff] %v5392_v54 }
 0x2a8   : > { %2607 = vrot.lane.b32.xlu0 %v2548_v10, %s4183_s13  ;;  %2086 = vrot.lane.b32.xlu1 %v2027_v20, %s4182_s25 }
 0x2aa   : > { %v5400_v13 = vpop.permute.xlu1 %2674  ;;  %v5402_v5 = vpop.permute.xlu0 %2831 }
 0x2ab   : > { %6899 = vst [vmem:[#allocation81_spill] sm:$0xff] %v5400_v13  ;;  %6900 = vst [vmem:[#allocation82_spill] sm:$0xff] %v5402_v5  ;;  %v2549_v13 = vmul.f32 %v5232_v27, %v5121_v61 }
 0x2ac   : > { %2199 = vrot.lane.b32.xlu0 %v5121_v61, %s4179_s0  ;;  %2356 = vrot.lane.b32.xlu1 %v5121_v61, %s4178_s20 }
 0x2ae   : > { %v5408_v51 = vpop.permute.xlu1 %2181  ;;  %v5410_v46 = vpop.permute.xlu0 %2338 }
 0x2af   : > { %6901 = vst [vmem:[#allocation83_spill] sm:$0xff] %v5408_v51  ;;  %6902 = vst [vmem:[#allocation84_spill] sm:$0xff] %v5410_v46  ;;  %v2029_v46 = vmul.f32 %v4960_v23, %v5126_v14 }
 0x2b0   : > { %2851 = vrot.lane.b32.xlu0 %v5121_v61, %s4181_s30  ;;  %2694 = vrot.lane.b32.xlu1 %v5121_v61, %s4180_s29 }
 0x2b2   : > { %v5416_v15 = vpop.permute.xlu1 %2833  ;;  %v5418_v10 = vpop.permute.xlu0 %2676 }
 0x2b3   : > { %6903 = vst [vmem:[#allocation85_spill] sm:$0xff] %v5416_v15  ;;  %6904 = vst [vmem:[#allocation86_spill] sm:$0xff] %v5418_v10  ;;  %v2028_v15 = vmul.f32 %v4960_v23, %v5121_v61 }
 0x2b4   : > { %2358 = vrot.lane.b32.xlu0 %v5126_v14, %s4178_s20  ;;  %2201 = vrot.lane.b32.xlu1 %v5126_v14, %s4179_s0 }
 0x2b6   : > { %v5424_v20 = vpop.permute.xlu1 %2589  ;;  %v5426_v47 = vpop.permute.xlu0 %2068 }
 0x2b7   : > { %6905 = vst [vmem:[#allocation87_spill] sm:$0xff] %v5424_v20  ;;  %6906 = vst [vmem:[#allocation88_spill] sm:$0xff] %v5426_v47  ;;  %v2550_v20 = vmul.f32 %v5232_v27, %v5126_v14 }
 0x2b8   : > { %2696 = vrot.lane.b32.xlu0 %v5126_v14, %s4180_s29  ;;  %2853 = vrot.lane.b32.xlu1 %v5126_v14, %s4181_s30 }
 0x2ba   : > { %v5434_v10 = vpop.permute.xlu1 %2070  ;;  %v5436_v5 = vpop.permute.xlu0 %2591 }
 0x2bb   : > { %6907 = vst [vmem:[#allocation89_spill] sm:$0xff] %v5434_v10  ;;  %6908 = vst [vmem:[#allocation90_spill] sm:$0xff] %v5436_v5 }
 0x2bc   : > { %2609 = vrot.lane.b32.xlu1 %v2549_v13, %s4183_s13  ;;  %2088 = vrot.lane.b32.xlu0 %v2028_v15, %s4182_s25 }
 0x2be   : > { %v5444_v47 = vpop.permute.xlu1 %2340  ;;  %v5446_v8 = vpop.permute.xlu0 %2183 }
 0x2c0   : > { %2090 = vrot.lane.b32.xlu1 %v2029_v46, %s4182_s25  ;;  %2611 = vrot.lane.b32.xlu0 %v2550_v20, %s4183_s13 }
 0x2c2   : > { %v5452_v5 = vpop.permute.xlu1 %2678  ;;  %v5454_v10 = vpop.permute.xlu0 %2835 }
 0x2c4   : > { %2360 = vrot.lane.b32.xlu1 %v5135_v33, %s4178_s20  ;;  %2203 = vrot.lane.b32.xlu0 %v5135_v33, %s4179_s0 }
 0x2c6   : > { %v5460_v27 = vpop.permute.xlu1 %2185  ;;  %v5462_v13 = vpop.permute.xlu0 %2342 }
 0x2c8   : > { %2698 = vrot.lane.b32.xlu1 %v5135_v33, %s4180_s29  ;;  %2855 = vrot.lane.b32.xlu0 %v5135_v33, %s4181_s30 }
 0x2ca   : > { %v5468_v23 = vpop.permute.xlu1 %2837  ;;  %v5470_v46 = vpop.permute.xlu0 %2680 }
 0x2cc   : > { %2205 = vrot.lane.b32.xlu1 %v5142_v37, %s4179_s0  ;;  %2362 = vrot.lane.b32.xlu0 %v5142_v37, %s4178_s20 }
 0x2ce   : > { %v5476_v15 = vpop.permute.xlu1 %2593  ;;  %v5478_v20 = vpop.permute.xlu0 %2072 }
 0x2d0   : > { %2857 = vrot.lane.b32.xlu1 %v5142_v37, %s4181_s30  ;;  %2700 = vrot.lane.b32.xlu0 %v5142_v37, %s4180_s29  ;;  %v2034_v37 = vmul.f32 %v4970_v29, %v5170_v42 }
 0x2d2   : > { %v5484_v54 = vpop.permute.xlu1 %2074  ;;  %v5486_v51 = vpop.permute.xlu0 %2595 }
 0x2d4   : > { %2613 = vrot.lane.b32.xlu1 %v2551_v17, %s4183_s13  ;;  %2092 = vrot.lane.b32.xlu0 %v2030_v30, %s4182_s25 }
 0x2d6   : > { %v5494_v14 = vpop.permute.xlu1 %2344  ;;  %v5496_v56 = vpop.permute.xlu0 %2187 }
 0x2d7   : > { %6909 = vst [vmem:[#allocation91_spill] sm:$0xff] %v5494_v14  ;;  %6910 = vst [vmem:[#allocation92_spill] sm:$0xff] %v5496_v56 }
 0x2d8   : > { %2094 = vrot.lane.b32.xlu1 %v2031_v38, %s4182_s25  ;;  %2615 = vrot.lane.b32.xlu0 %v2552_v2, %s4183_s13 }
 0x2da   : > { %v5504_v25 = vpop.permute.xlu1 %2682  ;;  %v5506_v33 = vpop.permute.xlu0 %2839 }
 0x2db   : > { %6911 = vst [vmem:[#allocation93_spill] sm:$0xff] %v5504_v25  ;;  %6912 = vst [vmem:[#allocation94_spill] sm:$0xff] %v5506_v33  ;;  %v2553_v33 = vmul.f32 %v5238_v45, %v5156_v22 }
 0x2dc   : > { %2364 = vrot.lane.b32.xlu1 %v5156_v22, %s4178_s20  ;;  %2207 = vrot.lane.b32.xlu0 %v5156_v22, %s4179_s0 }
 0x2de   : > { %v5512_v17 = vpop.permute.xlu1 %2189  ;;  %v5514_v7 = vpop.permute.xlu0 %2346 }
 0x2df   : > { %6913 = vst [vmem:[#allocation95_spill] sm:$0xff] %v5512_v17  ;;  %6914 = vst [vmem:[#allocation96_spill] sm:$0xff] %v5514_v7  ;;  %v2033_v7 = vmul.f32 %v4964_v4, %v5161_v12 }
 0x2e0   : > { %2702 = vrot.lane.b32.xlu1 %v5156_v22, %s4180_s29  ;;  %2859 = vrot.lane.b32.xlu0 %v5156_v22, %s4181_s30 }
 0x2e2   : > { %v5520_v2 = vpop.permute.xlu1 %2841  ;;  %v5522_v38 = vpop.permute.xlu0 %2684 }
 0x2e3   : > { %6915 = vst [vmem:[#allocation97_spill] sm:$0xff] %v5520_v2  ;;  %6916 = vst [vmem:[#allocation98_spill] sm:$0xff] %v5522_v38  ;;  %v2032_v38 = vmul.f32 %v4964_v4, %v5156_v22 }
 0x2e4   : > { %2209 = vrot.lane.b32.xlu1 %v5161_v12, %s4179_s0  ;;  %2366 = vrot.lane.b32.xlu0 %v5161_v12, %s4178_s20 }
 0x2e6   : > { %v5528_v6 = vpop.permute.xlu1 %2597  ;;  %v5530_v30 = vpop.permute.xlu0 %2076 }
 0x2e7   : > { %6917 = vst [vmem:[#allocation99_spill] sm:$0xff] %v5528_v6  ;;  %6918 = vst [vmem:[#allocation100_spill] sm:$0xff] %v5530_v30  ;;  %v2554_v6 = vmul.f32 %v5238_v45, %v5161_v12 }
 0x2e8   : > { %2861 = vrot.lane.b32.xlu1 %v5161_v12, %s4181_s30  ;;  %2704 = vrot.lane.b32.xlu0 %v5161_v12, %s4180_s29  ;;  %v2555_v12 = vmul.f32 %v5256_v50, %v5170_v42 }
 0x2ea   : > { %v5538_v2 = vpop.permute.xlu1 %2078  ;;  %v5540_v25 = vpop.permute.xlu0 %2599 }
 0x2eb   : > { %6919 = vst [vmem:[#allocation101_spill] sm:$0xff] %v5538_v2  ;;  %6920 = vst [vmem:[#allocation102_spill] sm:$0xff] %v5540_v25 }
 0x2ec   : > { %2617 = vrot.lane.b32.xlu1 %v2553_v33, %s4183_s13  ;;  %2096 = vrot.lane.b32.xlu0 %v2032_v38, %s4182_s25 }
 0x2ee   : > { %v5548_v30 = vpop.permute.xlu1 %2348  ;;  %v5550_v14 = vpop.permute.xlu0 %2191 }
 0x2f0   : > { %2098 = vrot.lane.b32.xlu1 %v2033_v7, %s4182_s25  ;;  %2619 = vrot.lane.b32.xlu0 %v2554_v6, %s4183_s13 }
 0x2f2   : > { %v5556_v25 = vpop.permute.xlu1 %2686  ;;  %v5558_v2 = vpop.permute.xlu0 %2843 }
 0x2f3   : > { %6921 = vst [vmem:[#allocation103_spill] sm:$0xff] %v5558_v2  ;;  %v4184_v2 = vmov 7  }
 0x2f4   : > { %2368 = vrot.lane.b32.xlu1 %v5170_v42, %s4178_s20  ;;  %2211 = vrot.lane.b32.xlu0 %v5170_v42, %s4179_s0 }
 0x2f6   : > { %v5564_v33 = vpop.permute.xlu1 %2193  ;;  %v5566_v45 = vpop.permute.xlu0 %2350 }
 0x2f8   : > { %2706 = vrot.lane.b32.xlu1 %v5170_v42, %s4180_s29  ;;  %2863 = vrot.lane.b32.xlu0 %v5170_v42, %s4181_s30 }
 0x2fa   : > { %v5572_v4 = vpop.permute.xlu1 %2845  ;;  %v5574_v7 = vpop.permute.xlu0 %2688 }
 0x2fb   : > { %6922 = vst [vmem:[#allocation104_spill] sm:$0xff] %v5572_v4 }
 0x2fc   : > { %2213 = vrot.lane.b32.xlu1 %v5175_v44, %s4179_s0  ;;  %2370 = vrot.lane.b32.xlu0 %v5175_v44, %s4178_s20 }
 0x2fe   : > { %v5580_v38 = vpop.permute.xlu1 %2601  ;;  %v5582_v6 = vpop.permute.xlu0 %2080 }
 0x2ff   : > { %6923 = vst [vmem:[#allocation105_spill] sm:$0xff] %v5580_v38 }
 0x300   : > { %2865 = vrot.lane.b32.xlu1 %v5175_v44, %s4181_s30  ;;  %2708 = vrot.lane.b32.xlu0 %v5175_v44, %s4180_s29  ;;  %v2038_v44 = vmul.f32 %v4974_v55, %v5202_v57 }
 0x302   : > { %v5588_v56 = vpop.permute.xlu1 %2082  ;;  %v5590_v17 = vpop.permute.xlu0 %2603 }
 0x303   : > { %6924 = vst [vmem:[#allocation106_spill] sm:$0xff] %v5590_v17 }
 0x304   : > { %2621 = vrot.lane.b32.xlu1 %v2555_v12, %s4183_s13  ;;  %2100 = vrot.lane.b32.xlu0 %v2034_v37, %s4182_s25 }
 0x306   : > { %v5598_v19 = vpop.permute.xlu1 %2352  ;;  %v5600_v21 = vpop.permute.xlu0 %2195 }
 0x307   : > { %6925 = vst [vmem:[#allocation107_spill] sm:$0xff] %v5598_v19  ;;  %6926 = vst [vmem:[#allocation108_spill] sm:$0xff] %v5600_v21 }
 0x308   : > { %2102 = vrot.lane.b32.xlu1 %v2035_v52, %s4182_s25  ;;  %2623 = vrot.lane.b32.xlu0 %v2556_v34, %s4183_s13 }
 0x30a   : > { %v5608_v1 = vpop.permute.xlu1 %2690  ;;  %v5610_v42 = vpop.permute.xlu0 %2847 }
 0x30b   : > { %6927 = vst [vmem:[#allocation109_spill] sm:$0xff] %v5608_v1  ;;  %6928 = vst [vmem:[#allocation110_spill] sm:$0xff] %v5610_v42  ;;  %v2557_v42 = vmul.f32 %v5249_v36, %v5187_v62 }
 0x30c   : > { %2372 = vrot.lane.b32.xlu1 %v5187_v62, %s4178_s20  ;;  %2215 = vrot.lane.b32.xlu0 %v5187_v62, %s4179_s0 }
 0x30e   : > { %v5616_v37 = vpop.permute.xlu1 %2197  ;;  %v5618_v29 = vpop.permute.xlu0 %2354 }
 0x30f   : > { %6929 = vst [vmem:[#allocation111_spill] sm:$0xff] %v5616_v37  ;;  %6930 = vst [vmem:[#allocation112_spill] sm:$0xff] %v5618_v29  ;;  %v2037_v29 = vmul.f32 %v4968_v18, %v5192_v48 }
 0x310   : > { %2710 = vrot.lane.b32.xlu1 %v5187_v62, %s4180_s29  ;;  %2867 = vrot.lane.b32.xlu0 %v5187_v62, %s4181_s30 }
 0x312   : > { %v5624_v34 = vpop.permute.xlu1 %2849  ;;  %v5626_v12 = vpop.permute.xlu0 %2692 }
 0x313   : > { %6931 = vst [vmem:[#allocation113_spill] sm:$0xff] %v5624_v34  ;;  %6932 = vst [vmem:[#allocation114_spill] sm:$0xff] %v5626_v12  ;;  %v2036_v12 = vmul.f32 %v4968_v18, %v5187_v62 }
 0x314   : > { %2217 = vrot.lane.b32.xlu1 %v5192_v48, %s4179_s0  ;;  %2374 = vrot.lane.b32.xlu0 %v5192_v48, %s4178_s20 }
 0x316   : > { %v5632_v50 = vpop.permute.xlu1 %2605  ;;  %v5634_v52 = vpop.permute.xlu0 %2084 }
 0x317   : > { %6933 = vst [vmem:[#allocation115_spill] sm:$0xff] %v5632_v50  ;;  %6934 = vst [vmem:[#allocation116_spill] sm:$0xff] %v5634_v52  ;;  %v2558_v50 = vmul.f32 %v5249_v36, %v5192_v48 }
 0x318   : > { %2869 = vrot.lane.b32.xlu1 %v5192_v48, %s4181_s30  ;;  %2712 = vrot.lane.b32.xlu0 %v5192_v48, %s4180_s29  ;;  %v2559_v48 = vmul.f32 %v5266_v39, %v5202_v57 }
 0x31a   : > { %v5642_v34 = vpop.permute.xlu1 %2086  ;;  %v5644_v1 = vpop.permute.xlu0 %2607 }
 0x31b   : > { %6935 = vst [vmem:[#allocation117_spill] sm:$0xff] %v5642_v34  ;;  %6936 = vst [vmem:[#allocation118_spill] sm:$0xff] %v5644_v1 }
 0x31c   : > { %2625 = vrot.lane.b32.xlu1 %v2557_v42, %s4183_s13  ;;  %2104 = vrot.lane.b32.xlu0 %v2036_v12, %s4182_s25 }
 0x31e   : > { %v5652_v52 = vpop.permute.xlu1 %2356  ;;  %v5654_v19 = vpop.permute.xlu0 %2199 }
 0x320   : > { %2106 = vrot.lane.b32.xlu1 %v2037_v29, %s4182_s25  ;;  %2627 = vrot.lane.b32.xlu0 %v2558_v50, %s4183_s13 }
 0x322   : > { %v5660_v1 = vpop.permute.xlu1 %2694  ;;  %v5662_v34 = vpop.permute.xlu0 %2851 }
 0x323   : > { %6937 = vst [vmem:[#allocation119_spill] sm:$0xff] %v5662_v34 }
 0x324   : > { %2376 = vrot.lane.b32.xlu1 %v5202_v57, %s4178_s20  ;;  %2219 = vrot.lane.b32.xlu0 %v5202_v57, %s4179_s0 }
 0x326   : > { %v5668_v42 = vpop.permute.xlu1 %2201  ;;  %v5670_v36 = vpop.permute.xlu0 %2358 }
 0x328   : > { %2714 = vrot.lane.b32.xlu1 %v5202_v57, %s4180_s29  ;;  %2871 = vrot.lane.b32.xlu0 %v5202_v57, %s4181_s30 }
 0x32a   : > { %v5676_v18 = vpop.permute.xlu1 %2853  ;;  %v5678_v29 = vpop.permute.xlu0 %2696 }
 0x32b   : > { %6938 = vst [vmem:[#allocation120_spill] sm:$0xff] %v5676_v18  ;;  %v2039_v18 = vmul.f32 %v4974_v55, %v5206_v11  ;;  %v5728_v55 = vld [vmem:[%s6741_s5 + $0x28] sm:$0xff] }
 0x32c   : > { %2221 = vrot.lane.b32.xlu1 %v5206_v11, %s4179_s0  ;;  %2378 = vrot.lane.b32.xlu0 %v5206_v11, %s4178_s20  ;;  %6947 = vst [vmem:[#allocation129_spill] sm:$0xff] %v5728_v55  ;;  %s6669_s20 = scalar_lea.hbm %s7203_s8, %s3636_s14  ;;  %s3467_s0 = scalar_lea.sflag [#allocation6], %s4381_s23 }
 0x32e   : > { %v5684_v12 = vpop.permute.xlu1 %2609  ;;  %v5686_v50 = vpop.permute.xlu0 %2088 }
 0x32f   : > { %6939 = vst [vmem:[#allocation121_spill] sm:$0xff] %v5684_v12 }
 0x330   : > { %2873 = vrot.lane.b32.xlu1 %v5206_v11, %s4181_s30  ;;  %2716 = vrot.lane.b32.xlu0 %v5206_v11, %s4180_s29  ;;  %s4188_s30 = smov [#allocation5]  }
 0x332   : > { %v5692_v21 = vpop.permute.xlu1 %2090  ;;  %v5694_v37 = vpop.permute.xlu0 %2611 }
 0x333   : > { %6940 = vst [vmem:[#allocation122_spill] sm:$0xff] %v5694_v37 }
 0x334   : > { %2629 = vrot.lane.b32.xlu1 %v2559_v48, %s4183_s13  ;;  %2108 = vrot.lane.b32.xlu0 %v2038_v44, %s4182_s25  ;;  %v5722_v44 = vld [vmem:[%s6741_s5 + $0x10] sm:$0xff] }
 0x335   : > { %6946 = vst [vmem:[#allocation128_spill] sm:$0xff] %v5722_v44 }
 0x336   : > { %v5702_v60 = vpop.permute.xlu1 %2360  ;;  %v5704_v34 = vpop.permute.xlu0 %2203 }
 0x337   : > { %6941 = vst [vmem:[#allocation123_spill] sm:$0xff] %v5702_v60  ;;  %6942 = vst [vmem:[#allocation124_spill] sm:$0xff] %v5704_v34 }
 0x338   : > { %2110 = vrot.lane.b32.xlu1 %v2039_v18, %s4182_s25  ;;  %2925 = vperm.xlu0 %4017, %v5712_v49   ;;  %s4041_s25 = sshll.u32 %s4188_s30, 4  ;;  %s4042_s25 = int_to_ptr.vmem [resolvable:$false] %s4041_s25 }
 0x33a   : > { %v5715_v57 = vpop.permute.xlu1 %2698  ;;  %v5717_v48 = vpop.permute.xlu0 %2855 }
 0x33b   : > { %6944 = vst [vmem:[#allocation126_spill] sm:$0xff] %v5715_v57  ;;  %6945 = vst [vmem:[#allocation127_spill] sm:$0xff] %v5717_v48  ;;  %v5738_v48 = vld [vmem:[%s6741_s5 + $0x20] sm:$0xff]  ;;  %v5744_v57 = vld [vmem:[%s6741_s5 + $0x38] sm:$0xff] }
 0x33c   : > { %2921 = vperm.xlu1 %4018, %v5722_v44   ;;  %2933 = vperm.xlu0 %4017, %v5728_v55   ;;  %6950 = vst [vmem:[#allocation132_spill] sm:$0xff] %v5738_v48  ;;  %6951 = vst [vmem:[#allocation133_spill] sm:$0xff] %v5744_v57 }
 0x33e   : > { %v5731_v18 = vpop.permute.xlu1 %2205  ;;  %v5733_v60 = vpop.permute.xlu0 %2362 }
 0x33f   : > { %6948 = vst [vmem:[#allocation130_spill] sm:$0xff] %v5731_v18  ;;  %6949 = vst [vmem:[#allocation131_spill] sm:$0xff] %v5733_v60  ;;  %v5754_v60 = vld [vmem:[%s6741_s5 + $0x30] sm:$0xff]  ;;  %v5760_v18 = vld [vmem:[%s6741_s5 + $0x48] sm:$0xff] }
 0x340   : > { %2929 = vperm.xlu1 %4018, %v5738_v48   ;;  %2941 = vperm.xlu0 %4017, %v5744_v57   ;;  %6954 = vst [vmem:[#allocation136_spill] sm:$0xff] %v5754_v60  ;;  %6955 = vst [vmem:[#allocation137_spill] sm:$0xff] %v5760_v18 }
 0x342   : > { %v5747_v34 = vpop.permute.xlu1 %2857  ;;  %v5749_v3 = vpop.permute.xlu0 %2700 }
 0x343   : > { %6952 = vst [vmem:[#allocation134_spill] sm:$0xff] %v5747_v34  ;;  %6953 = vst [vmem:[#allocation135_spill] sm:$0xff] %v5749_v3  ;;  %v5770_v34 = vld [vmem:[%s6741_s5 + $0x40] sm:$0xff]  ;;  %v5776_v3 = vld [vmem:[%s6741_s5 + $0x58] sm:$0xff] }
 0x344   : > { %2937 = vperm.xlu1 %4018, %v5754_v60   ;;  %2949 = vperm.xlu0 %4017, %v5760_v18   ;;  %6958 = vst [vmem:[#allocation140_spill] sm:$0xff] %v5770_v34  ;;  %6959 = vst [vmem:[#allocation141_spill] sm:$0xff] %v5776_v3 }
 0x346   : > { %v5763_v12 = vpop.permute.xlu1 %2613  ;;  %v5765_v37 = vpop.permute.xlu0 %2092 }
 0x347   : > { %6956 = vst [vmem:[#allocation138_spill] sm:$0xff] %v5763_v12  ;;  %6957 = vst [vmem:[#allocation139_spill] sm:$0xff] %v5765_v37  ;;  %v2560_v12 = vmul.f32 %v5266_v39, %v5206_v11  ;;  %v5788_v37 = vld [vmem:[%s6741_s5 + $0x50] sm:$0xff]  ;;  %v5799_v39 = vld [vmem:[%s6741_s5 + $0x8] sm:$0xff] }
 0x348   : > { %2945 = vperm.xlu1 %4018, %v5770_v34   ;;  %2957 = vperm.xlu0 %4017, %v5776_v3   ;;  %6962 = vst [vmem:[#allocation144_spill] sm:$0xff] %v5788_v37  ;;  %6963 = vst [vmem:[#allocation145_spill] sm:$0xff] %v5799_v39 }
 0x34a   : > { %v5779_v38 = vpop.permute.xlu1 %2094  ;;  %v5781_v17 = vpop.permute.xlu0 %2615 }
 0x34b   : > { %6960 = vst [vmem:[#allocation142_spill] sm:$0xff] %v5779_v38  ;;  %6961 = vst [vmem:[#allocation143_spill] sm:$0xff] %v5781_v17  ;;  %v5805_v17 = vld [vmem:[%s6741_s5] sm:$0xff] }
 0x34c   : > { %2953 = vperm.xlu1 %4018, %v5788_v37   ;;  %2631 = vrot.lane.b32.xlu0 %v2560_v12, %s4183_s13  ;;  %6964 = vst [vmem:[#allocation146_spill] sm:$0xff] %v5805_v17  ;;  %s4186_s13 = smov 95  }
 0x34d   : > { %4020 = vset.pattern.permute.xlu0 %v4184_v2 }
 0x34e   : > { %v5792_v4 = vpop.permute.xlu1 %2364  ;;  %v5794_v43 = vpop.permute.xlu0 %2207 }
 0x350   : > { %4019 = vset.pattern.permute.xlu1 %v4184_v2  ;;  %2989 = vperm.xlu0 %4020, %v5799_v39  }
 0x351   : > { %2985 = vperm.xlu1 %4019, %v5805_v17  }
 0x352   : > { %v5808_v12 = vpop.permute.xlu1 %2702  ;;  %v5810_v38 = vpop.permute.xlu0 %2859 }
 0x353   : > { %6965 = vst [vmem:[#allocation147_spill] sm:$0xff] %v5808_v12  ;;  %6966 = vst [vmem:[#allocation148_spill] sm:$0xff] %v5810_v38 }
 0x354   : > { %3001 = vperm.xlu0 %4020, %v5738_v48  }
 0x355   : > { %2993 = vperm.xlu1 %4019, %v5722_v44  }
 0x356   : > { %v5814_v2 = vpop.permute.xlu1 %2209  ;;  %v5816_v11 = vpop.permute.xlu0 %2366 }
 0x358   : > { %3009 = vperm.xlu0 %4020, %v5754_v60  }
 0x359   : > { %2997 = vperm.xlu1 %4019, %v5712_v49  }
 0x35a   : > { %v5820_v39 = vpop.permute.xlu1 %2861  ;;  %v5822_v53 = vpop.permute.xlu0 %2704 }
 0x35b   : > { %6967 = vst [vmem:[#allocation149_spill] sm:$0xff] %v5820_v39  ;;  %6968 = vst [vmem:[#allocation150_spill] sm:$0xff] %v5822_v53 }
 0x35c   : > { %3017 = vperm.xlu0 %4020, %v5770_v34  }
 0x35d   : > { %3005 = vperm.xlu1 %4019, %v5728_v55  }
 0x35e   : > { %v5826_v17 = vpop.permute.xlu1 %2617  ;;  %v5828_v48 = vpop.permute.xlu0 %2096 }
 0x35f   : > { %6969 = vst [vmem:[#allocation151_spill] sm:$0xff] %v5826_v17 }
 0x360   : > { %3025 = vperm.xlu0 %4020, %v5788_v37  }
 0x361   : > { %3013 = vperm.xlu1 %4019, %v5744_v57  }
 0x362   : > { %v5832_v44 = vpop.permute.xlu1 %2098  ;;  %v5834_v60 = vpop.permute.xlu0 %2619 }
 0x363   : > { %6970 = vst [vmem:[#allocation152_spill] sm:$0xff] %v5834_v60 }
 0x365   : > { %3021 = vperm.xlu1 %4019, %v5760_v18  }
 0x366   : > { %v5837_v49 = vpop.permute.xlu1 %2368  ;;  %v5839_v38 = vpop.permute.xlu0 %2211 }
 0x367   : > { %6971 = vst [vmem:[#allocation153_spill] sm:$0xff] %v5837_v49  ;;  %6972 = vst [vmem:[#allocation154_spill] sm:$0xff] %v5839_v38 }
 0x369   : > { %3029 = vperm.xlu1 %4019, %v5776_v3  }
 0x36a   : > { %v5842_v34 = vpop.permute.xlu1 %2706  ;;  %v5844_v55 = vpop.permute.xlu0 %2863 }
 0x36b   : > { %6973 = vst [vmem:[#allocation155_spill] sm:$0xff] %v5842_v34  ;;  %6974 = vst [vmem:[#allocation156_spill] sm:$0xff] %v5844_v55 }
 0x36e   : > { %v5846_v39 = vpop.permute.xlu1 %2213  ;;  %v5848_v37 = vpop.permute.xlu0 %2370 }
 0x36f   : > { %6975 = vst [vmem:[#allocation157_spill] sm:$0xff] %v5846_v39  ;;  %6976 = vst [vmem:[#allocation158_spill] sm:$0xff] %v5848_v37 }
 0x372   : > { %v5850_v57 = vpop.permute.xlu1 %2865  ;;  %v5852_v17 = vpop.permute.xlu0 %2708 }
 0x373   : > { %6977 = vst [vmem:[#allocation159_spill] sm:$0xff] %v5850_v57  ;;  %6978 = vst [vmem:[#allocation160_spill] sm:$0xff] %v5852_v17 }
 0x376   : > { %v5854_v60 = vpop.permute.xlu1 %2621  ;;  %v5856_v18 = vpop.permute.xlu0 %2100 }
 0x377   : > { %6979 = vst [vmem:[#allocation161_spill] sm:$0xff] %v5854_v60  ;;  %6980 = vst [vmem:[#allocation162_spill] sm:$0xff] %v5856_v18 }
 0x37a   : > { %v5858_v49 = vpop.permute.xlu1 %2102  ;;  %v5860_v38 = vpop.permute.xlu0 %2623 }
 0x37b   : > { %6981 = vst [vmem:[#allocation163_spill] sm:$0xff] %v5858_v49  ;;  %6982 = vst [vmem:[#allocation164_spill] sm:$0xff] %v5860_v38 }
 0x37e   : > { %v5862_v3 = vpop.permute.xlu1 %2372  ;;  %v5864_v34 = vpop.permute.xlu0 %2215 }
 0x37f   : > { %6983 = vst [vmem:[#allocation165_spill] sm:$0xff] %v5862_v3 }
 0x382   : > { %v5866_v55 = vpop.permute.xlu1 %2710  ;;  %v5868_v39 = vpop.permute.xlu0 %2867 }
 0x383   : > { %6984 = vst [vmem:[#allocation166_spill] sm:$0xff] %v5866_v55  ;;  %6985 = vst [vmem:[#allocation167_spill] sm:$0xff] %v5868_v39  ;;  %v1848_v39 = vand.u32 15, %v5001_v63  ;;  %v2115_v63 = vsel %vm2112_vm0, %v5478_v20, %v5484_v54 }
 0x385   : > { %vm5895_vm14 = vcmp.ne.s32.totalorder %v1848_v39, 0  ;;  %vm5910_vm1 = vcmp.ne.s32.totalorder %v1848_v39, 15 }
 0x386   : > { %v5870_v37 = vpop.permute.xlu1 %2217  ;;  %v5872_v57 = vpop.permute.xlu0 %2374  ;;  %v1876_v54 = vsel %vm5895_vm14, %v5085_v32, 0.0 }
 0x387   : > { %6986 = vst [vmem:[#allocation168_spill] sm:$0xff] %v5872_v57 }
 0x38a   : > { %v5874_v17 = vpop.permute.xlu1 %2869  ;;  %v5876_v60 = vpop.permute.xlu0 %2712 }
 0x38b   : > { %6987 = vst [vmem:[#allocation169_spill] sm:$0xff] %v5874_v17 }
 0x38e   : > { %v5878_v18 = vpop.permute.xlu1 %2625  ;;  %v5880_v49 = vpop.permute.xlu0 %2104 }
 0x38f   : > { %6988 = vst [vmem:[#allocation170_spill] sm:$0xff] %v5878_v18  ;;  %v1874_v18 = vsel %vm5895_vm14, %v5213_v59, 0.0 }
 0x392   : > { %v5882_v38 = vpop.permute.xlu1 %2106  ;;  %v5884_v12 = vpop.permute.xlu0 %2627 }
 0x393   : > { %6989 = vst [vmem:[#allocation171_spill] sm:$0xff] %v5884_v12  ;;  %v1946_v12 = vmul.f32 %v4930_v24, %v1874_v18  ;;  %v2228_v24 = vsel %vm2223_vm15, %v5550_v14, %v5564_v33  ;;  %v1878_v18 = vsel %vm5895_vm14, %v5121_v61, 0.0  ;;  %v2230_v14 = vsel %vm2223_vm15, %v5654_v19, %v5668_v42 }
 0x394   : > { %v2252_v33 = vsel %vm5910_vm1, %v2228_v24, 0.0  ;;  %v2385_v19 = vsel %vm2380_vm2, %v5548_v30, %v5566_v45  ;;  %v2721_v42 = vsel %vm2718_vm3, %v5452_v5, %v5470_v46 }
 0x395   : > { %v2409_v5 = vsel %vm5895_vm14, %v2385_v19, 0.0  ;;  %v2745_v45 = vsel %vm5910_vm1, %v2721_v42, 0.0 }
 0x396   : > { %v5886_v53 = vpop.permute.xlu1 %2376  ;;  %v5888_v55 = vpop.permute.xlu0 %2219 }
 0x397   : > { %6990 = vst [vmem:[#allocation172_spill] sm:$0xff] %v5886_v53  ;;  %6991 = vst [vmem:[#allocation173_spill] sm:$0xff] %v5888_v55  ;;  %v2226_v53 = vsel %vm2223_vm15, %v5446_v8, %v5460_v27  ;;  %v2383_v8 = vsel %vm2380_vm2, %v5444_v47, %v5462_v13  ;;  %v2139_v27 = vadd.f32 %v2115_v63, %v1946_v12 }
 0x398   : > { %v2250_v59 = vsel %vm5910_vm1, %v2226_v53, 0.0  ;;  %v2407_v47 = vsel %vm5895_vm14, %v2383_v8, 0.0  ;;  %v2117_v13 = vsel %vm2112_vm0, %v5582_v6, %v5588_v56  ;;  %v1950_v12 = vmul.f32 %v4938_v31, %v1878_v18 }
 0x399   : > { %v2310_v20 = vmul.f32 %v4982_v26, %v2250_v59  ;;  %v1948_v26 = vmul.f32 %v4934_v16, %v1876_v54  ;;  %v2119_v63 = vsel %vm2112_vm0, %v5686_v50, %v5692_v21  ;;  %v1880_v56 = vsel %vm5895_vm14, %v5156_v22, 0.0 }
 0x39a   : > { %v5891_v3 = vpop.permute.xlu1 %2714  ;;  %v5893_v57 = vpop.permute.xlu0 %2871  ;;  %v2467_v16 = vmul.f32 %v5017_v40, %v2407_v47  ;;  %v2254_v31 = vsel %vm5910_vm1, %v2230_v14, 0.0  ;;  %v4185_v8 = vmov 8   ;;  %v2312_v50 = vmul.f32 %v4986_v28, %v2252_v33 }
 0x39b   : > { %6992 = vst [vmem:[#allocation174_spill] sm:$0xff] %v5891_v3  ;;  %6993 = vst [vmem:[#allocation175_spill] sm:$0xff] %v5893_v57  ;;  %v2322_v39 = vadd.f32 %v2310_v20, %v2139_v27  ;;  %v2141_v6 = vadd.f32 %v2117_v13, %v1948_v26  ;;  %4022 = vset.pattern.permute.xlu1 %v4185_v8  ;;  %4021 = vset.pattern.permute.xlu0 %v4185_v8 }
 0x39c   : > { %v2387_v40 = vsel %vm2380_vm2, %v5652_v52, %v5670_v36  ;;  %v2143_v27 = vadd.f32 %v2119_v63, %v1950_v12  ;;  %v1952_v46 = vmul.f32 %v4942_v41, %v1880_v56  ;;  %v2314_v28 = vmul.f32 %v4990_v9, %v2254_v31  ;;  %v7001_v63 = vld [vmem:[#allocation104_spill] sm:$0xff]  ;;  %v7002_v56 = vld [vmem:[#allocation103_spill] sm:$0xff] }
 0x39d   : > { %v2479_v21 = vadd.f32 %v2467_v16, %v2322_v39  ;;  %v2324_v54 = vadd.f32 %v2312_v50, %v2141_v6  ;;  %v2232_v52 = vsel %vm2223_vm15, %v5794_v43, %v5814_v2  ;;  %v2636_v20 = vsel %vm2633_vm5, %v5476_v15, %v5486_v51  ;;  %v7006_v50 = vld [vmem:[#allocation121_spill] sm:$0xff] }
 0x39e   : > { %v5905_v55 = vpop.permute.xlu1 %2221  ;;  %v5915_v57 = vpop.permute.xlu0 %2378  ;;  %v2411_v24 = vsel %vm5895_vm14, %v2387_v40, 0.0  ;;  %v2121_v41 = vsel %vm2112_vm0, %v5828_v48, %v5832_v44  ;;  %v1882_v9 = vsel %vm5895_vm14, %v5187_v62, 0.0  ;;  %v2878_v43 = vsel %vm2875_vm4, %v5454_v10, %v5468_v23 }
 0x39f   : > { %v2660_v2 = vadd.f32 %v2636_v20, %v2479_v21  ;;  %v2469_v18 = vmul.f32 %v5004_v58, %v2409_v5  ;;  %v2326_v47 = vadd.f32 %v2314_v28, %v2143_v27  ;;  %v2805_v51 = vmul.f32 %v5268_v35, %v2745_v45  ;;  %v7005_v21 = vld [vmem:[#allocation122_spill] sm:$0xff]  ;;  %v7007_v27 = vld [vmem:[#allocation168_spill] sm:$0xff]  ;;  %v7008_v5 = vld [vmem:[#allocation165_spill] sm:$0xff] }
 0x3a0   : > { %v2723_v15 = vsel %vm2718_vm3, %v5556_v25, %v5574_v7  ;;  %v2256_v48 = vsel %vm5910_vm1, %v2232_v52, 0.0  ;;  %v2471_v13 = vmul.f32 %v5010_v0, %v2411_v24  ;;  %v2389_v10 = vsel %vm2380_vm2, %v5792_v4, %v5816_v11  ;;  %v6999_v7 = vld [vmem:[#allocation15_spill] sm:$0xff]  ;;  %v7009_v52 = vld [vmem:[#allocation28_spill] sm:$0xff] }
 0x3a1   : > { %v2481_v44 = vadd.f32 %v2469_v18, %v2324_v54  ;;  %v2145_v23 = vadd.f32 %v2121_v41, %v1952_v46  ;;  %v2725_v35 = vsel %vm2718_vm3, %v5660_v1, %v5678_v29  ;;  %v2234_v25 = vsel %vm2223_vm15, %v5864_v34, %v5870_v37  ;;  %v7000_v11 = vld [vmem:[#allocation23_spill] sm:$0xff]  ;;  %v7003_v34 = vld [vmem:[#allocation106_spill] sm:$0xff]  ;;  %v7004_v29 = vld [vmem:[#allocation105_spill] sm:$0xff] }
 0x3a2   : > { %v5932_v53 = vpop.permute.xlu1 %2873  ;;  %v5943_v59 = vpop.permute.xlu0 %2716  ;;  %v1954_v26 = vmul.f32 %v6999_v7, %v1882_v9  ;;  %v2902_v0 = vsel %vm5895_vm14, %v2878_v43, 0.0  ;;  %v2483_v14 = vadd.f32 %v2471_v13, %v2326_v47  ;;  %v2316_v4 = vmul.f32 %v7000_v11, %v2256_v48  ;;  %v7010_v41 = vld [vmem:[#allocation57_spill] sm:$0xff]  ;;  %v7011_v43 = vld [vmem:[#allocation120_spill] sm:$0xff]  ;;  %v7014_v48 = vld [vmem:[#allocation59_spill] sm:$0xff] }
 0x3a3   : > { %v2123_v33 = vsel %vm2112_vm0, %v5880_v49, %v5882_v38  ;;  %v2817_v12 = vadd.f32 %v2805_v51, %v2660_v2  ;;  %v2880_v1 = vsel %vm2875_vm4, %v7002_v56, %v7001_v63  ;;  %v2747_v37 = vsel %vm5910_vm1, %v2723_v15, 0.0  ;;  %v7012_v2 = vld [vmem:[#allocation119_spill] sm:$0xff]  ;;  %v7013_v47 = vld [vmem:[#allocation25_spill] sm:$0xff]  ;;  %v7015_v13 = vld [vmem:[#allocation150_spill] sm:$0xff] }
 0x3a4   : > { %v2638_v16 = vsel %vm2633_vm5, %v7004_v29, %v7003_v34  ;;  %v2413_v19 = vsel %vm5895_vm14, %v2389_v10, 0.0  ;;  %v2749_v42 = vsel %vm5910_vm1, %v2725_v35, 0.0  ;;  %v2328_v49 = vadd.f32 %v2316_v4, %v2145_v23  ;;  %v7016_v10 = vld [vmem:[#allocation147_spill] sm:$0xff] }
 0x3a5   : > { %v2662_v6 = vadd.f32 %v2638_v16, %v2481_v44  ;;  %v2258_v38 = vsel %vm5910_vm1, %v2234_v25, 0.0  ;;  %v2640_v40 = vsel %vm2633_vm5, %v7006_v50, %v7005_v21  ;;  %v2391_v46 = vsel %vm2380_vm2, %v7008_v5, %v7007_v27  ;;  %v7020_v34 = vld [vmem:[#allocation151_spill] sm:$0xff]  ;;  %v7021_v16 = vld [vmem:[#allocation30_spill] sm:$0xff] }
 0x3a6   : > { %v5967_v30 = vpop.permute.xlu1 %2629  ;;  %v5978_v36 = vpop.permute.xlu0 %2108  ;;  %v2147_v45 = vadd.f32 %v2123_v33, %v1954_v26  ;;  %v2664_v28 = vadd.f32 %v2640_v40, %v2483_v14  ;;  %v2473_v20 = vmul.f32 %v7009_v52, %v2413_v19  ;;  %v2904_v24 = vsel %vm5895_vm14, %v2880_v1, 0.0  ;;  %v7018_v14 = vld [vmem:[#allocation156_spill] sm:$0xff]  ;;  %v7024_v21 = vld [vmem:[#allocation166_spill] sm:$0xff] }
 0x3a7   : > { %6998 = vst [vmem:[#allocation176_spill] sm:$0xff] %v5967_v30  ;;  %v2807_v9 = vmul.f32 %v7010_v41, %v2747_v37  ;;  %v2882_v18 = vsel %vm2875_vm4, %v7012_v2, %v7011_v43  ;;  %v2318_v51 = vmul.f32 %v7013_v47, %v2258_v38  ;;  %v2809_v44 = vmul.f32 %v7014_v48, %v2749_v42  ;;  %v7019_v37 = vld [vmem:[#allocation152_spill] sm:$0xff]  ;;  %v7028_v43 = vld [vmem:[#allocation171_spill] sm:$0xff]  ;;  %v7029_v2 = vld [vmem:[#allocation170_spill] sm:$0xff] }
 0x3a8   : > { %v2727_v23 = vsel %vm2718_vm3, %v7016_v10, %v7015_v13  ;;  %v2485_v35 = vadd.f32 %v2473_v20, %v2328_v49  ;;  %v2415_v25 = vsel %vm5895_vm14, %v2391_v46, 0.0  ;;  %v2906_v56 = vsel %vm5895_vm14, %v2882_v18, 0.0  ;;  %v7022_v49 = vld [vmem:[#allocation149_spill] sm:$0xff]  ;;  %v7023_v38 = vld [vmem:[#allocation148_spill] sm:$0xff]  ;;  %v7031_v13 = vld [vmem:[#allocation167_spill] sm:$0xff] }
 0x3a9   : > { %v2330_v4 = vadd.f32 %v2318_v51, %v2147_v45  ;;  %v2819_v33 = vadd.f32 %v2807_v9, %v2662_v6  ;;  %v2821_v63 = vadd.f32 %v2809_v44, %v2664_v28  ;;  %v2751_v1 = vsel %vm5910_vm1, %v2727_v23, 0.0  ;;  %v7025_v45 = vld [vmem:[#allocation175_spill] sm:$0xff]  ;;  %v7027_v20 = vld [vmem:[#allocation61_spill] sm:$0xff] }
 0x3aa   : > { %v6005_v39 = vpop.permute.xlu1 %2110  ;;  %v2642_v29 = vsel %vm2633_vm5, %v7020_v34, %v7019_v37  ;;  %v2475_v19 = vmul.f32 %v7021_v16, %v2415_v25  ;;  %v2884_v6 = vsel %vm2875_vm4, %v7023_v38, %v7022_v49  ;;  %v2729_v50 = vsel %vm2718_vm3, %v7024_v21, %v5876_v60  ;;  %v7030_v44 = vld [vmem:[#allocation169_spill] sm:$0xff]  ;;  %v7035_v37 = vld [vmem:[#allocation27_spill] sm:$0xff]  ;;  %v7037_v38 = vld [vmem:[#allocation40_spill] sm:$0xff] }
 0x3ab   : > { %v2908_v60 = vsel %vm5895_vm14, %v2884_v6, 0.0  ;;  %v2753_v9 = vsel %vm5910_vm1, %v2729_v50, 0.0  ;;  %v2644_v18 = vsel %vm2633_vm5, %v7029_v2, %v7028_v43  ;;  %v2886_v10 = vsel %vm2875_vm4, %v7031_v13, %v7030_v44  ;;  %v7039_v50 = vld [vmem:[#allocation52_spill] sm:$0xff]  ;;  %v7046_v13 = vld [vmem:[#allocation41_spill] sm:$0xff] }
 0x3ac   : > { %v2487_v46 = vadd.f32 %v2475_v19, %v2330_v4  ;;  %v2910_v4 = vsel %vm5895_vm14, %v2886_v10, 0.0 }
 0x3ae   : > { %v2668_v23 = vadd.f32 %v2644_v18, %v2487_v46  ;;  %v7044_v18 = vld [vmem:[#allocation37_spill] sm:$0xff] }
 0x3b7   : > { %v6007_v58 = vpop.permute.xlu0 %2925 }
 0x3bb   : > { %v2922_v31 = vpop.permute.xlu1 %2921  ;;  %v6036_v8 = vpop.permute.xlu0 %2933 }
 0x3bc   : > { %v2962_v54 = vmul.f32 %v2922_v31, %v2902_v0  ;;  %v7017_v0 = vld [vmem:[#allocation159_spill] sm:$0xff]  ;;  %v2666_v31 = vadd.f32 %v2642_v29, %v2485_v35 }
 0x3bd   : > { %v2885_v11 = vsel %vm2875_vm4, %v7018_v14, %v7017_v0  ;;  %v7036_v29 = vld [vmem:[#allocation31_spill] sm:$0xff] }
 0x3be   : > { %v6052_v15 = vadd.f32 %v2962_v54, %v2817_v12  ;;  %v2909_v27 = vsel %vm5895_vm14, %v2885_v11, 0.0  ;;  %v2887_v54 = vsel %vm2875_vm4, %v7025_v45, %v5932_v53  ;;  %v7041_v45 = vld [vmem:[#allocation33_spill] sm:$0xff] }
 0x3bf   : > { %v2930_v7 = vpop.permute.xlu1 %2929  ;;  %v6060_v26 = vpop.permute.xlu0 %2941  ;;  %v2911_v53 = vsel %vm5895_vm14, %v2887_v54, 0.0 }
 0x3c0   : > { %v2964_v12 = vmul.f32 %v2930_v7, %v2904_v24  ;;  %v2811_v24 = vmul.f32 %v7027_v20, %v2751_v1  ;;  %v7033_v7 = vld [vmem:[#allocation63_spill] sm:$0xff] }
 0x3c1   : > { %v2813_v0 = vmul.f32 %v7033_v7, %v2753_v9  ;;  %v7043_v9 = vld [vmem:[#allocation36_spill] sm:$0xff] }
 0x3c2   : > { %v6073_v42 = vadd.f32 %v2964_v12, %v2819_v33  ;;  %v2823_v51 = vadd.f32 %v2811_v24, %v2666_v31  ;;  %v7038_v31 = vld [vmem:[#allocation45_spill] sm:$0xff] }
 0x3c3   : > { %v2938_v40 = vpop.permute.xlu1 %2937  ;;  %v2950_v5 = vpop.permute.xlu0 %2949  ;;  %v2825_v33 = vadd.f32 %v2813_v0, %v2668_v23  ;;  %v7048_v0 = vld [vmem:[#allocation44_spill] sm:$0xff] }
 0x3c4   : > { %v2966_v28 = vmul.f32 %v2938_v40, %v2906_v56  ;;  %v6086_v52 = vmul.f32 %v2950_v5, %v2909_v27  ;;  %v7040_v27 = vld [vmem:[#allocation53_spill] sm:$0xff] }
 0x3c6   : > { %7026 = vst [vmem:[#allocation15_spill] sm:$0xff] %v6086_v52  ;;  %v6089_v41 = vadd.f32 %v2966_v28, %v2821_v63  ;;  %v7042_v28 = vld [vmem:[#allocation34_spill] sm:$0xff]  ;;  %v7141_v52 = vld [vmem:[#allocation19_spill] sm:$0xff] }
 0x3c7   : > { %v2946_v47 = vpop.permute.xlu1 %2945  ;;  %v2958_v48 = vpop.permute.xlu0 %2957 }
 0x3c8   : > { %v2968_v35 = vmul.f32 %v2946_v47, %v2908_v60  ;;  %v6103_v25 = vmul.f32 %v2958_v48, %v2911_v53 }
 0x3ca   : > { %7032 = vst [vmem:[#allocation23_spill] sm:$0xff] %v6103_v25  ;;  %v6106_v14 = vadd.f32 %v2968_v35, %v2823_v51  ;;  %v7045_v51 = vld [vmem:[#allocation38_spill] sm:$0xff] }
 0x3cb   : > { %v2954_v11 = vpop.permute.xlu1 %2953  ;;  %v6110_v63 = vpop.permute.xlu0 %2631  ;;  %v7047_v35 = vld [vmem:[#allocation42_spill] sm:$0xff] }
 0x3cc   : > { %v2970_v12 = vmul.f32 %v2954_v11, %v2910_v4  ;;  %7034 = vst [vmem:[#allocation104_spill] sm:$0xff] %v6110_v63  ;;  %v7153_v63 = vld [vmem:[#allocation153_spill] sm:$0xff] }
 0x3ce   : > { %v6112_v56 = vadd.f32 %v2970_v12, %v2825_v33  ;;  %v7049_v12 = vld [vmem:[#allocation46_spill] sm:$0xff] }
 0x3cf   : > { %v2990_v19 = vpop.permute.xlu0 %2989 }
 0x3d0   : > { %v2986_v1 = vpop.permute.xlu1 %2985  ;;  %v3034_v6 = vmul.f32 %v2990_v19, %v7037_v38  ;;  %v3035_v21 = vmul.f32 %v2990_v19, %v7038_v31 }
 0x3d1   : > { %v3032_v34 = vmul.f32 %v2986_v1, %v7035_v37  ;;  %v3033_v16 = vmul.f32 %v2986_v1, %v7036_v29 }
 0x3d3   : > { %3082 = vrot.lane.b32.xlu1 %v3033_v16, %s4186_s13  ;;  %3080 = vrot.lane.b32.xlu0 %v3032_v34, %s4186_s13  ;;  %v3002_v24 = vpop.permute.xlu0 %3001  ;;  %v7050_v16 = vld [vmem:[#allocation47_spill] sm:$0xff] }
 0x3d4   : > { %v2994_v49 = vpop.permute.xlu1 %2993  ;;  %v3040_v60 = vmul.f32 %v3002_v24, %v5085_v32  ;;  %v3041_v43 = vmul.f32 %v3002_v24, %v7043_v9 }
 0x3d5   : > { %v3036_v40 = vmul.f32 %v2994_v49, %v7039_v50  ;;  %v3037_v5 = vmul.f32 %v2994_v49, %v7040_v27  ;;  %v7051_v49 = vld [vmem:[#allocation48_spill] sm:$0xff] }
 0x3d7   : > { %3086 = vrot.lane.b32.xlu1 %v3035_v21, %s4186_s13  ;;  %3084 = vrot.lane.b32.xlu0 %v3034_v6, %s4186_s13  ;;  %v3010_v48 = vpop.permute.xlu0 %3009 }
 0x3d8   : > { %v2998_v46 = vpop.permute.xlu1 %2997  ;;  %v3044_v44 = vmul.f32 %v3010_v48, %v5121_v61  ;;  %v3045_v10 = vmul.f32 %v3010_v48, %v7046_v13 }
 0x3d9   : > { %v3038_v54 = vmul.f32 %v2998_v46, %v7041_v45  ;;  %v3039_v20 = vmul.f32 %v2998_v46, %v7042_v28 }
 0x3db   : > { %3090 = vrot.lane.b32.xlu1 %v3037_v5, %s4186_s13  ;;  %3088 = vrot.lane.b32.xlu0 %v3036_v40, %s4186_s13  ;;  %v3018_v4 = vpop.permute.xlu0 %3017  ;;  %v7052_v5 = vld [vmem:[#allocation49_spill] sm:$0xff] }
 0x3dc   : > { %v3006_v2 = vpop.permute.xlu1 %3005  ;;  %v3048_v33 = vmul.f32 %v3018_v4, %v5156_v22  ;;  %v3049_v1 = vmul.f32 %v3018_v4, %v7049_v12  ;;  %v7067_v4 = vld [vmem:[#allocation125_spill] sm:$0xff] }
 0x3dd   : > { %v3042_v47 = vmul.f32 %v3006_v2, %v7044_v18  ;;  %v3043_v53 = vmul.f32 %v3006_v2, %v7045_v51  ;;  %v7060_v2 = vld [vmem:[#allocation72_spill] sm:$0xff] }
 0x3df   : > { %3094 = vrot.lane.b32.xlu1 %v3039_v20, %s4186_s13  ;;  %3092 = vrot.lane.b32.xlu0 %v3038_v54, %s4186_s13  ;;  %v3026_v21 = vpop.permute.xlu0 %3025  ;;  %v7053_v20 = vld [vmem:[#allocation50_spill] sm:$0xff] }
 0x3e0   : > { %v3014_v23 = vpop.permute.xlu1 %3013  ;;  %v3052_v40 = vmul.f32 %v3026_v21, %v5187_v62  ;;  %v3053_v46 = vmul.f32 %v3026_v21, %v7052_v5  ;;  %v7072_v21 = vld [vmem:[#allocation78_spill] sm:$0xff] }
 0x3e1   : > { %v3046_v7 = vmul.f32 %v3014_v23, %v7047_v35  ;;  %v3047_v11 = vmul.f32 %v3014_v23, %v7048_v0 }
 0x3e3   : > { %3098 = vrot.lane.b32.xlu1 %v3041_v43, %s4186_s13  ;;  %3096 = vrot.lane.b32.xlu0 %v3040_v60, %s4186_s13  ;;  %v7054_v60 = vld [vmem:[#allocation51_spill] sm:$0xff] }
 0x3e4   : > { %v3022_v34 = vpop.permute.xlu1 %3021 }
 0x3e5   : > { %v3050_v19 = vmul.f32 %v3022_v34, %v7050_v16  ;;  %v3051_v6 = vmul.f32 %v3022_v34, %v7051_v49 }
 0x3e7   : > { %3102 = vrot.lane.b32.xlu1 %v3043_v53, %s4186_s13  ;;  %3100 = vrot.lane.b32.xlu0 %v3042_v47, %s4186_s13  ;;  %v7061_v47 = vld [vmem:[#allocation67_spill] sm:$0xff]  ;;  %v7062_v53 = vld [vmem:[#allocation16_spill] sm:$0xff] }
 0x3e8   : > { %v3030_v54 = vpop.permute.xlu1 %3029 }
 0x3e9   : > { %v3054_v24 = vmul.f32 %v3030_v54, %v7053_v20  ;;  %v3055_v43 = vmul.f32 %v3030_v54, %v7054_v60  ;;  %v7075_v54 = vld [vmem:[#allocation70_spill] sm:$0xff] }
 0x3eb   : > { %3106 = vrot.lane.b32.xlu1 %v3045_v10, %s4186_s13  ;;  %3104 = vrot.lane.b32.xlu0 %v3044_v44, %s4186_s13  ;;  %v7063_v44 = vld [vmem:[#allocation145_spill] sm:$0xff] }
 0x3ef   : > { %3110 = vrot.lane.b32.xlu1 %v3047_v11, %s4186_s13  ;;  %3108 = vrot.lane.b32.xlu0 %v3046_v7, %s4186_s13  ;;  %v7065_v7 = vld [vmem:[#allocation26_spill] sm:$0xff]  ;;  %v7066_v11 = vld [vmem:[#allocation128_spill] sm:$0xff] }
 0x3f3   : > { %3114 = vrot.lane.b32.xlu1 %v3049_v1, %s4186_s13  ;;  %3112 = vrot.lane.b32.xlu0 %v3048_v33, %s4186_s13  ;;  %v7068_v33 = vld [vmem:[#allocation74_spill] sm:$0xff] }
 0x3f7   : > { %3118 = vrot.lane.b32.xlu1 %v3051_v6, %s4186_s13  ;;  %3116 = vrot.lane.b32.xlu0 %v3050_v19, %s4186_s13  ;;  %v7070_v19 = vld [vmem:[#allocation132_spill] sm:$0xff] }
 0x3fb   : > { %3122 = vrot.lane.b32.xlu1 %v3053_v46, %s4186_s13  ;;  %3120 = vrot.lane.b32.xlu0 %v3052_v40, %s4186_s13  ;;  %v7073_v40 = vld [vmem:[#allocation75_spill] sm:$0xff]  ;;  %v7074_v46 = vld [vmem:[#allocation73_spill] sm:$0xff] }
 0x3ff   : > { %3126 = vrot.lane.b32.xlu1 %v3055_v43, %s4186_s13  ;;  %3124 = vrot.lane.b32.xlu0 %v3054_v24, %s4186_s13  ;;  %v2876_v24 = vsel %vm2875_vm4, %v7075_v54, %v7074_v46  ;;  %v7076_v43 = vld [vmem:[#allocation54_spill] sm:$0xff]  ;;  %s3878_s13 = smul.u32 48, %s4381_s23 }
 0x403   : > { %3167 = vrot.lane.b32.xlu1 %v7036_v29, %s4187_s7  ;;  %3165 = vrot.lane.b32.xlu0 %v7035_v37, %s4187_s7  ;;  %v7056_v29 = vld [vmem:[#allocation68_spill] sm:$0xff] }
 0x407   : > { %3171 = vrot.lane.b32.xlu1 %v7038_v31, %s4187_s7  ;;  %3169 = vrot.lane.b32.xlu0 %v7037_v38, %s4187_s7 }
 0x40b   : > { %3175 = vrot.lane.b32.xlu1 %v7040_v27, %s4187_s7  ;;  %3173 = vrot.lane.b32.xlu0 %v7039_v50, %s4187_s7  ;;  %v7057_v50 = vld [vmem:[#allocation77_spill] sm:$0xff]  ;;  %v7058_v27 = vld [vmem:[#allocation76_spill] sm:$0xff] }
 0x40f   : > { %3179 = vrot.lane.b32.xlu1 %v7042_v28, %s4187_s7  ;;  %3177 = vrot.lane.b32.xlu0 %v7041_v45, %s4187_s7  ;;  %v7059_v28 = vld [vmem:[#allocation14_spill] sm:$0xff] }
 0x413   : > { %3183 = vrot.lane.b32.xlu1 %v7043_v9, %s4187_s7  ;;  %3181 = vrot.lane.b32.xlu0 %v5085_v32, %s4187_s7  ;;  %v1872_v32 = vsel %vm5895_vm14, %v7035_v37, 0.0  ;;  %v2381_v37 = vsel %vm2380_vm2, %v7061_v47, %v7060_v2 }
 0x414   : > { %v1944_v9 = vmul.f32 %v7059_v28, %v1872_v32  ;;  %v2405_v10 = vsel %vm5895_vm14, %v2381_v37, 0.0  ;;  %v7080_v28 = vld [vmem:[#allocation140_spill] sm:$0xff] }
 0x417   : > { %3187 = vrot.lane.b32.xlu1 %v7045_v51, %s4187_s7  ;;  %3185 = vrot.lane.b32.xlu0 %v7044_v18, %s4187_s7 }
 0x41b   : > { %3191 = vrot.lane.b32.xlu1 %v7046_v13, %s4187_s7  ;;  %3189 = vrot.lane.b32.xlu0 %v5121_v61, %s4187_s7  ;;  %v7055_v61 = vld [vmem:[#allocation71_spill] sm:$0xff]  ;;  %v7064_v13 = vld [vmem:[#allocation146_spill] sm:$0xff] }
 0x41c   : > { %v2224_v31 = vsel %vm2223_vm15, %v7056_v29, %v7055_v61  ;;  %v7077_v61 = vld [vmem:[#allocation136_spill] sm:$0xff]  ;;  %v7078_v29 = vld [vmem:[#allocation133_spill] sm:$0xff] }
 0x41f   : > { %3195 = vrot.lane.b32.xlu1 %v7048_v0, %s4187_s7  ;;  %3193 = vrot.lane.b32.xlu0 %v7047_v35, %s4187_s7  ;;  %v2465_v0 = vmul.f32 %v7065_v7, %v2405_v10 }
 0x423   : > { %3199 = vrot.lane.b32.xlu1 %v7049_v12, %s4187_s7  ;;  %3197 = vrot.lane.b32.xlu0 %v5156_v22, %s4187_s7  ;;  %v2113_v22 = vsel %vm2112_vm0, %v7058_v27, %v7057_v50  ;;  %v7069_v12 = vld [vmem:[#allocation69_spill] sm:$0xff]  ;;  %v7079_v27 = vld [vmem:[#allocation66_spill] sm:$0xff] }
 0x424   : > { %v2137_v51 = vadd.f32 %v2113_v22, %v1944_v9  ;;  %v2719_v1 = vsel %vm2718_vm3, %v7069_v12, %v7068_v33  ;;  %v7081_v9 = vld [vmem:[#allocation137_spill] sm:$0xff]  ;;  %v3324_v12 = vld [vmem:[%s6742_s6 + $0x10] sm:$0xff] }
 0x425   : > { %v2743_v6 = vsel %vm5910_vm1, %v2719_v1, 0.0 }
 0x426   : > { %v2803_v32 = vmul.f32 %v7076_v43, %v2743_v6 }
 0x427   : > { %3203 = vrot.lane.b32.xlu1 %v7051_v49, %s4187_s7  ;;  %3201 = vrot.lane.b32.xlu0 %v7050_v16, %s4187_s7  ;;  %v7071_v49 = vld [vmem:[#allocation129_spill] sm:$0xff] }
 0x42b   : > { %3207 = vrot.lane.b32.xlu1 %v7052_v5, %s4187_s7  ;;  %3205 = vrot.lane.b32.xlu0 %v5187_v62, %s4187_s7  ;;  %v2248_v62 = vsel %vm5910_vm1, %v2224_v31, 0.0  ;;  %v2634_v5 = vsel %vm2633_vm5, %v7073_v40, %v7072_v21  ;;  %v2900_v31 = vsel %vm5895_vm14, %v2876_v24, 0.0 }
 0x42c   : > { %v2308_v48 = vmul.f32 %v7062_v53, %v2248_v62  ;;  %v2960_v22 = vmul.f32 %v7079_v27, %v2900_v31  ;;  %v7082_v53 = vld [vmem:[#allocation144_spill] sm:$0xff]  ;;  %v3333_v27 = vld [vmem:[%s6742_s6 + $0x58] sm:$0xff] }
 0x42e   : > { %v2320_v23 = vadd.f32 %v2308_v48, %v2137_v51  ;;  %v7083_v48 = vld [vmem:[#allocation141_spill] sm:$0xff] }
 0x42f   : > { %3211 = vrot.lane.b32.xlu1 %v7054_v60, %s4187_s7  ;;  %3209 = vrot.lane.b32.xlu0 %v7053_v20, %s4187_s7  ;;  %s6630_s7 = scalar_lea.vmem [#allocation5], %s3878_s13  ;;  %s4043_s13 = scalar_lea.vmem %s4042_s25, 1536 }
 0x430   : > { %v2477_v34 = vadd.f32 %v2465_v0, %v2320_v23  ;;  %v3322_v23 = vld [vmem:[%s6742_s6] sm:$0xff]  ;;  %v7084_v0 = vmov 0   ;;  %s3481_s19 = sshll.u32 %s6630_s7, 4  ;;  %s6662_s19 = int_to_ptr.vmem [resolvable:$true] %s3481_s19 }
 0x431   : > { %s4037_s29 = scalar_lea.vmem %s6662_s19, 768  ;;  %p4044_p11 = scmp.lt.s32.totalorder %s6662_s19, %s4042_s25 }
 0x432   : > { %v2658_v60 = vadd.f32 %v2634_v5, %v2477_v34  ;;  %p4038_p8 = scmp.ne.s32.totalorder %s6662_s19, %s4037_s29  ;;  %p4045_p12 = scmp.lt.s32.totalorder %s4043_s13, %s4037_s29 }
 0x433   : > { %3255 = vperm.xlu1 %4022, %v7063_v44   ;;  %3251 = vperm.xlu0 %4021, %v7064_v13  }
 0x434   : > { %v2815_v50 = vadd.f32 %v2803_v32, %v2658_v60  ;;  %p4039_p9 = pnand %p4038_p8, %p4342_p13  ;;  %p4046_p0 = por %p4045_p12, %p4044_p11 }
 0x436   : > { %v2972_v2 = vadd.f32 %v2960_v22, %v2815_v50  ;;  %v3323_v22 = vld [vmem:[%s6742_s6 + $0x8] sm:$0xff]  ;;  %p4040_p10 = pneg %p4039_p9 }
 0x437   : > { %3259 = vperm.xlu1 %4022, %v7066_v11   ;;  %3263 = vperm.xlu0 %4021, %v7067_v4  }
 0x438   : > { %p4047_p2 = pnand %p4046_p0, %p4040_p10 }
 0x43b   : > { %3267 = vperm.xlu1 %4022, %v7070_v19   ;;  %3271 = vperm.xlu0 %4021, %v7071_v49  }
 0x43f   : > { %3275 = vperm.xlu1 %4022, %v7077_v61   ;;  %3279 = vperm.xlu0 %4021, %v7078_v29  }
 0x443   : > { %3283 = vperm.xlu1 %4022, %v7080_v28   ;;  %3287 = vperm.xlu0 %4021, %v7081_v9  }
 0x445   : > { %v3083_v62 = vpop.permute.xlu1 %3082  ;;  %v3081_v47 = vpop.permute.xlu0 %3080 }
 0x446   : > { %v3129_v37 = vsel %vm3128_vm6, %v3081_v47, %v3083_v62  ;;  %v3326_v62 = vld [vmem:[%s6742_s6 + $0x20] sm:$0xff] }
 0x447   : > { %v6231_v51 = vadd.f32 %v3129_v37, %v2972_v2  ;;  %3291 = vperm.xlu1 %4022, %v7082_v53   ;;  %3295 = vperm.xlu0 %4021, %v7083_v48  }
 0x449   : > { %v3087_v13 = vpop.permute.xlu1 %3086  ;;  %v3085_v10 = vpop.permute.xlu0 %3084 }
 0x44a   : > { %v6239_v7 = vsel %vm3128_vm6, %v3085_v10, %v3087_v13 }
 0x44b   : > { %4024 = vset.pattern.permute.xlu1 %v7084_v0  ;;  %4023 = vset.pattern.permute.xlu0 %v7084_v0  ;;  %v3330_v0 = vld [vmem:[%s6742_s6 + $0x40] sm:$0xff] }
 0x44c   : > { %3336 = vperm.xlu1 %4024, %v3322_v23   ;;  %1891 = vperm.xlu0 %4023, %v7063_v44   ;;  %v3325_v44 = vld [vmem:[%s6742_s6 + $0x18] sm:$0xff] }
 0x44d   : > { %v3091_v11 = vpop.permute.xlu1 %3090  ;;  %v3089_v33 = vpop.permute.xlu0 %3088 }
 0x44e   : > { %v3131_v1 = vsel %vm3128_vm6, %v3089_v33, %v3091_v11 }
 0x44f   : > { %v6249_v34 = vadd.f32 %v3131_v1, %v6052_v15  ;;  %v3327_v15 = vld [vmem:[%s6742_s6 + $0x28] sm:$0xff]  ;;  %v3332_v1 = vld [vmem:[%s6742_s6 + $0x50] sm:$0xff] }
 0x450   : > { %3346 = vperm.xlu1 %4024, %v3324_v12   ;;  %1901 = vperm.xlu0 %4023, %v7067_v4  }
 0x451   : > { %v3095_v19 = vpop.permute.xlu1 %3094  ;;  %v3093_v6 = vpop.permute.xlu0 %3092 }
 0x452   : > { %v6256_v21 = vsel %vm3128_vm6, %v3093_v6, %v3095_v19 }
 0x454   : > { %3351 = vperm.xlu1 %4024, %v3325_v44   ;;  %1911 = vperm.xlu0 %4023, %v7071_v49   ;;  %v3329_v49 = vld [vmem:[%s6742_s6 + $0x38] sm:$0xff] }
 0x455   : > { %v3099_v40 = vpop.permute.xlu1 %3098  ;;  %v3097_v5 = vpop.permute.xlu0 %3096 }
 0x456   : > { %v3133_v4 = vsel %vm3128_vm6, %v3097_v5, %v3099_v40 }
 0x457   : > { %v6264_v46 = vadd.f32 %v3133_v4, %v6073_v42  ;;  %v3331_v42 = vld [vmem:[%s6742_s6 + $0x48] sm:$0xff] }
 0x458   : > { %3361 = vperm.xlu1 %4024, %v3327_v15   ;;  %1921 = vperm.xlu0 %4023, %v7078_v29  }
 0x459   : > { %v3103_v54 = vpop.permute.xlu1 %3102  ;;  %v3101_v24 = vpop.permute.xlu0 %3100 }
 0x45a   : > { %v6271_v60 = vsel %vm3128_vm6, %v3101_v24, %v3103_v54 }
 0x45c   : > { %3371 = vperm.xlu1 %4024, %v3329_v49   ;;  %1931 = vperm.xlu0 %4023, %v7081_v9  }
 0x45d   : > { %v3107_v43 = vpop.permute.xlu1 %3106  ;;  %v3105_v32 = vpop.permute.xlu0 %3104 }
 0x45e   : > { %v3135_v61 = vsel %vm3128_vm6, %v3105_v32, %v3107_v43 }
 0x45f   : > { %v6279_v29 = vadd.f32 %v3135_v61, %v6089_v41 }
 0x460   : > { %3381 = vperm.xlu1 %4024, %v3331_v42   ;;  %1941 = vperm.xlu0 %4023, %v7083_v48   ;;  %v3328_v48 = vld [vmem:[%s6742_s6 + $0x30] sm:$0xff] }
 0x461   : > { %v3111_v31 = vpop.permute.xlu1 %3110  ;;  %v3109_v50 = vpop.permute.xlu0 %3108 }
 0x462   : > { %v6289_v28 = vsel %vm3128_vm6, %v3109_v50, %v3111_v31 }
 0x463   : > { %7085 = vst [vmem:[#allocation103_spill] sm:$0xff] %v6289_v28 }
 0x464   : > { %3391 = vperm.xlu1 %4024, %v3333_v27   ;;  %3341 = vperm.xlu0 %4023, %v3323_v22  }
 0x465   : > { %v3115_v41 = vpop.permute.xlu1 %3114  ;;  %v3113_v9 = vpop.permute.xlu0 %3112 }
 0x466   : > { %v3137_v2 = vsel %vm3128_vm6, %v3113_v9, %v3115_v41 }
 0x467   : > { %v6296_v47 = vadd.f32 %v3137_v2, %v6106_v14 }
 0x468   : > { %3356 = vperm.xlu0 %4023, %v3326_v62  }
 0x469   : > { %v3119_v37 = vpop.permute.xlu1 %3118  ;;  %v3117_v53 = vpop.permute.xlu0 %3116 }
 0x46a   : > { %v6302_v13 = vsel %vm3128_vm6, %v3117_v53, %v3119_v37 }
 0x46b   : > { %7086 = vst [vmem:[#allocation106_spill] sm:$0xff] %v6302_v13  ;;  %v7138_v13 = vld [vmem:[#allocation99_spill] sm:$0xff] }
 0x46c   : > { %3366 = vperm.xlu0 %4023, %v3328_v48  }
 0x46d   : > { %v3123_v10 = vpop.permute.xlu1 %3122  ;;  %v3121_v23 = vpop.permute.xlu0 %3120 }
 0x46e   : > { %v3139_v14 = vsel %vm3128_vm6, %v3121_v23, %v3123_v10 }
 0x46f   : > { %v6309_v11 = vadd.f32 %v3139_v14, %v6112_v56 }
 0x470   : > { %3376 = vperm.xlu0 %4023, %v3330_v0  }
 0x471   : > { %v3127_v33 = vpop.permute.xlu1 %3126  ;;  %v3125_v12 = vpop.permute.xlu0 %3124 }
 0x472   : > { %v6315_v19 = vsel %vm3128_vm6, %v3125_v12, %v3127_v33 }
 0x473   : > { %7087 = vst [vmem:[#allocation105_spill] sm:$0xff] %v6315_v19  ;;  %v7118_v19 = vld [vmem:[#allocation65_spill] sm:$0xff] }
 0x474   : > { %3386 = vperm.xlu0 %4023, %v3332_v1  }
 0x475   : > { %v3168_v6 = vpop.permute.xlu1 %3167  ;;  %v3166_v44 = vpop.permute.xlu0 %3165 }
 0x476   : > { %v3214_v40 = vsel %vm3213_vm7, %v3166_v44, %v3168_v6 }
 0x477   : > { %v3238_v56 = vsel %vm5910_vm1, %v3214_v40, 0.0 }
 0x479   : > { %v3172_v5 = vpop.permute.xlu1 %3171  ;;  %v3170_v15 = vpop.permute.xlu0 %3169 }
 0x47a   : > { %v6321_v4 = vsel %vm3213_vm7, %v3170_v15, %v3172_v5 }
 0x47d   : > { %v3176_v24 = vpop.permute.xlu1 %3175  ;;  %v3174_v49 = vpop.permute.xlu0 %3173 }
 0x47e   : > { %v3216_v43 = vsel %vm3213_vm7, %v3174_v49, %v3176_v24 }
 0x47f   : > { %v3240_v32 = vsel %vm5910_vm1, %v3216_v43, 0.0  ;;  %v7097_v43 = vld [vmem:[#allocation84_spill] sm:$0xff] }
 0x481   : > { %v3180_v42 = vpop.permute.xlu1 %3179  ;;  %v3178_v61 = vpop.permute.xlu0 %3177 }
 0x482   : > { %v6330_v31 = vsel %vm3213_vm7, %v3178_v61, %v3180_v42 }
 0x485   : > { %v3184_v27 = vpop.permute.xlu1 %3183  ;;  %v3182_v22 = vpop.permute.xlu0 %3181 }
 0x486   : > { %v3218_v41 = vsel %vm3213_vm7, %v3182_v22, %v3184_v27 }
 0x487   : > { %v3242_v9 = vsel %vm5910_vm1, %v3218_v41, 0.0 }
 0x489   : > { %v3188_v62 = vpop.permute.xlu1 %3187  ;;  %v3186_v2 = vpop.permute.xlu0 %3185 }
 0x48a   : > { %v6339_v37 = vsel %vm3213_vm7, %v3186_v2, %v3188_v62 }
 0x48d   : > { %v3192_v48 = vpop.permute.xlu1 %3191  ;;  %v3190_v10 = vpop.permute.xlu0 %3189 }
 0x48e   : > { %v3220_v23 = vsel %vm3213_vm7, %v3190_v10, %v3192_v48 }
 0x48f   : > { %v3244_v0 = vsel %vm5910_vm1, %v3220_v23, 0.0 }
 0x491   : > { %v3196_v14 = vpop.permute.xlu1 %3195  ;;  %v3194_v33 = vpop.permute.xlu0 %3193 }
 0x492   : > { %v6348_v12 = vsel %vm3213_vm7, %v3194_v33, %v3196_v14 }
 0x495   : > { %v3200_v6 = vpop.permute.xlu1 %3199  ;;  %v3198_v44 = vpop.permute.xlu0 %3197 }
 0x496   : > { %v3222_v40 = vsel %vm3213_vm7, %v3198_v44, %v3200_v6 }
 0x497   : > { %v3246_v5 = vsel %vm5910_vm1, %v3222_v40, 0.0 }
 0x499   : > { %v3204_v15 = vpop.permute.xlu1 %3203  ;;  %v3202_v24 = vpop.permute.xlu0 %3201 }
 0x49a   : > { %v6357_v49 = vsel %vm3213_vm7, %v3202_v24, %v3204_v15 }
 0x49b   : > { %7088 = vst [vmem:[#allocation122_spill] sm:$0xff] %v6357_v49  ;;  %v7140_v49 = vld [vmem:[#allocation123_spill] sm:$0xff] }
 0x49d   : > { %v3208_v42 = vpop.permute.xlu1 %3207  ;;  %v3206_v61 = vpop.permute.xlu0 %3205 }
 0x49e   : > { %v3224_v27 = vsel %vm3213_vm7, %v3206_v61, %v3208_v42 }
 0x49f   : > { %v3248_v22 = vsel %vm5910_vm1, %v3224_v27, 0.0 }
 0x4a1   : > { %v6365_v41 = vpop.permute.xlu1 %3211  ;;  %v6367_v62 = vpop.permute.xlu0 %3209 }
 0x4a2   : > { %7089 = vst [vmem:[#allocation121_spill] sm:$0xff] %v6365_v41  ;;  %7090 = vst [vmem:[#allocation168_spill] sm:$0xff] %v6367_v62  ;;  %v7126_v62 = vld [vmem:[#allocation17_spill] sm:$0xff] }
 0x4b2   : > { %v6369_v2 = vpop.permute.xlu1 %3255  ;;  %v3252_v48 = vpop.permute.xlu0 %3251 }
 0x4b3   : > { %v3298_v10 = vmul.f32 %v3252_v48, %v3238_v56 }
 0x4b5   : > { %v6372_v23 = vadd.f32 %v3298_v10, %v6231_v51 }
 0x4b6   : > { %v3260_v14 = vpop.permute.xlu1 %3259  ;;  %v6374_v33 = vpop.permute.xlu0 %3263 }
 0x4b7   : > { %v3300_v6 = vmul.f32 %v3260_v14, %v3240_v32  ;;  %v7095_v32 = vld [vmem:[#allocation83_spill] sm:$0xff] }
 0x4b9   : > { %v6377_v44 = vadd.f32 %v3300_v6, %v6249_v34  ;;  %v7096_v34 = vld [vmem:[#allocation80_spill] sm:$0xff] }
 0x4ba   : > { %v3268_v40 = vpop.permute.xlu1 %3267  ;;  %v6379_v15 = vpop.permute.xlu0 %3271  ;;  %v2225_v14 = vsel %vm2223_vm15, %v7096_v34, %v7095_v32 }
 0x4bb   : > { %v3302_v24 = vmul.f32 %v3268_v40, %v3242_v9  ;;  %v7098_v9 = vld [vmem:[#allocation79_spill] sm:$0xff]  ;;  %v7099_v40 = vld [vmem:[#allocation85_spill] sm:$0xff] }
 0x4bd   : > { %v6382_v42 = vadd.f32 %v3302_v24, %v6264_v46  ;;  %v2382_v46 = vsel %vm2380_vm2, %v7098_v9, %v7097_v43  ;;  %v7100_v24 = vld [vmem:[#allocation82_spill] sm:$0xff]  ;;  %v7105_v43 = vld [vmem:[#allocation92_spill] sm:$0xff] }
 0x4be   : > { %v3276_v61 = vpop.permute.xlu1 %3275  ;;  %v6384_v27 = vpop.permute.xlu0 %3279  ;;  %v2877_v1 = vsel %vm2875_vm4, %v7100_v24, %v7099_v40  ;;  %v1875_v40 = vsel %vm5895_vm14, %v7041_v45, 0.0 }
 0x4bf   : > { %7091 = vst [vmem:[#allocation165_spill] sm:$0xff] %v6382_v42  ;;  %7092 = vst [vmem:[#allocation28_spill] sm:$0xff] %v6384_v27  ;;  %v3304_v56 = vmul.f32 %v3276_v61, %v3244_v0  ;;  %v7101_v0 = vld [vmem:[#allocation86_spill] sm:$0xff]  ;;  %v7102_v61 = vld [vmem:[#allocation81_spill] sm:$0xff] }
 0x4c1   : > { %v6387_v51 = vadd.f32 %v3304_v56, %v6279_v29  ;;  %v2720_v29 = vsel %vm2718_vm3, %v7102_v61, %v7101_v0  ;;  %v1873_v56 = vsel %vm5895_vm14, %v7037_v38, 0.0  ;;  %v1877_v38 = vsel %vm5895_vm14, %v7044_v18, 0.0  ;;  %v7114_v61 = vld [vmem:[#allocation97_spill] sm:$0xff] }
 0x4c2   : > { %v3284_v48 = vpop.permute.xlu1 %3283  ;;  %v6389_v10 = vpop.permute.xlu0 %3287  ;;  %v2744_v45 = vsel %vm5910_vm1, %v2720_v29, 0.0  ;;  %v7113_v29 = vld [vmem:[#allocation24_spill] sm:$0xff] }
 0x4c3   : > { %7093 = vst [vmem:[#allocation57_spill] sm:$0xff] %v6387_v51  ;;  %7094 = vst [vmem:[#allocation120_spill] sm:$0xff] %v6389_v10  ;;  %v3306_v6 = vmul.f32 %v3284_v48, %v3246_v5  ;;  %v2249_v5 = vsel %vm5910_vm1, %v2225_v14, 0.0  ;;  %v7104_v48 = vld [vmem:[#allocation95_spill] sm:$0xff]  ;;  %v7124_v51 = vld [vmem:[#allocation90_spill] sm:$0xff] }
 0x4c4   : > { %v2227_v32 = vsel %vm2223_vm15, %v7105_v43, %v7104_v48  ;;  %v7108_v14 = vld [vmem:[#allocation91_spill] sm:$0xff]  ;;  %v2901_v48 = vsel %vm5895_vm14, %v2877_v1, 0.0  ;;  %v7109_v43 = vld [vmem:[#allocation18_spill] sm:$0xff] }
 0x4c5   : > { %v6407_v53 = vadd.f32 %v3306_v6, %v6296_v47  ;;  %v2406_v47 = vsel %vm5895_vm14, %v2382_v46, 0.0  ;;  %v7107_v6 = vld [vmem:[#allocation96_spill] sm:$0xff]  ;;  %v7139_v10 = vld [vmem:[#allocation131_spill] sm:$0xff] }
 0x4c6   : > { %v3292_v34 = vpop.permute.xlu1 %3291  ;;  %v6414_v9 = vpop.permute.xlu0 %3295  ;;  %v2384_v24 = vsel %vm2380_vm2, %v7108_v14, %v7107_v6  ;;  %v7110_v6 = vld [vmem:[#allocation98_spill] sm:$0xff]  ;;  %v7111_v14 = vld [vmem:[#allocation93_spill] sm:$0xff]  ;;  %v2466_v54 = vmul.f32 %v7113_v29, %v2406_v47  ;;  %v7122_v29 = vld [vmem:[#allocation112_spill] sm:$0xff] }
 0x4c7   : > { %7103 = vst [vmem:[#allocation119_spill] sm:$0xff] %v6407_v53  ;;  %7106 = vst [vmem:[#allocation25_spill] sm:$0xff] %v6414_v9  ;;  %v3308_v0 = vmul.f32 %v3292_v34, %v3248_v22  ;;  %v2309_v22 = vmul.f32 %v7109_v43, %v2249_v5  ;;  %v2251_v34 = vsel %vm5910_vm1, %v2227_v32, 0.0  ;;  %v2722_v1 = vsel %vm2718_vm3, %v7111_v14, %v7110_v6  ;;  %v7115_v53 = vld [vmem:[#allocation94_spill] sm:$0xff]  ;;  %v7116_v5 = vld [vmem:[#allocation111_spill] sm:$0xff] }
 0x4c8   : > { %v2408_v18 = vsel %vm5895_vm14, %v2384_v24, 0.0  ;;  %v6455_v46 = vsel %vm2875_vm4, %v7115_v53, %v7114_v61  ;;  %v7117_v43 = vld [vmem:[#allocation108_spill] sm:$0xff]  ;;  %v2961_v9 = vmul.f32 %v7118_v19, %v2901_v48  ;;  %v7119_v6 = vld [vmem:[#allocation55_spill] sm:$0xff]  ;;  %v2311_v41 = vmul.f32 %v7126_v62, %v2251_v34  ;;  %v7131_v34 = vld [vmem:[#allocation110_spill] sm:$0xff] }
 0x4c9   : > { %v6447_v50 = vadd.f32 %v3308_v0, %v6309_v11  ;;  %v2229_v32 = vsel %vm2223_vm15, %v7117_v43, %v7116_v5  ;;  %v2804_v14 = vmul.f32 %v7119_v6, %v2744_v45  ;;  %v7120_v11 = vld [vmem:[#allocation89_spill] sm:$0xff]  ;;  %v7121_v0 = vld [vmem:[#allocation88_spill] sm:$0xff]  ;;  %v7125_v53 = vld [vmem:[#allocation87_spill] sm:$0xff]  ;;  %v2746_v19 = vsel %vm5910_vm1, %v2722_v1, 0.0 }
 0x4ca   : > { %v2114_v47 = vsel %vm2112_vm0, %v7121_v0, %v7120_v11  ;;  %v2635_v61 = vsel %vm2633_vm5, %v7125_v53, %v7124_v51  ;;  %v7127_v45 = vld [vmem:[#allocation29_spill] sm:$0xff]  ;;  %v2253_v43 = vsel %vm5910_vm1, %v2229_v32, 0.0  ;;  %v7128_v6 = vld [vmem:[#allocation114_spill] sm:$0xff]  ;;  %v2903_v0 = vsel %vm5895_vm14, %v6455_v46, 0.0 }
 0x4cb   : > { %7112 = vst [vmem:[#allocation59_spill] sm:$0xff] %v6447_v50  ;;  %v7123_v50 = vld [vmem:[#allocation107_spill] sm:$0xff]  ;;  %v1892_v25 = vpop.permute.xlu0 %1891  ;;  %v2468_v5 = vmul.f32 %v7127_v45, %v2408_v18  ;;  %v7129_v11 = vld [vmem:[#allocation109_spill] sm:$0xff]  ;;  %v7133_v18 = vld [vmem:[#allocation124_spill] sm:$0xff] }
 0x4cc   : > { %v2386_v24 = vsel %vm2380_vm2, %v7123_v50, %v7122_v29  ;;  %v1945_v48 = vmul.f32 %v1892_v25, %v1873_v56  ;;  %v2724_v50 = vsel %vm2718_vm3, %v7129_v11, %v7128_v6  ;;  %v7130_v51 = vld [vmem:[#allocation113_spill] sm:$0xff]  ;;  %v7132_v56 = vld [vmem:[#allocation130_spill] sm:$0xff]  ;;  %v7134_v29 = vld [vmem:[#allocation56_spill] sm:$0xff] }
 0x4cd   : > { %v2410_v62 = vsel %vm5895_vm14, %v2386_v24, 0.0  ;;  %v6488_v25 = vsel %vm2875_vm4, %v7131_v34, %v7130_v51  ;;  %v2231_v1 = vsel %vm2223_vm15, %v7133_v18, %v7132_v56  ;;  %v2806_v53 = vmul.f32 %v7134_v29, %v2746_v19  ;;  %v7135_v45 = vld [vmem:[#allocation101_spill] sm:$0xff]  ;;  %v7136_v6 = vld [vmem:[#allocation100_spill] sm:$0xff]  ;;  %v7137_v46 = vld [vmem:[#allocation102_spill] sm:$0xff]  ;;  %v6503_v34 = vpop.permute.xlu1 %3336 }
 0x4ce   : > { %v2138_v32 = vadd.f32 %v2114_v47, %v1945_v48  ;;  %v2116_v11 = vsel %vm2112_vm0, %v7136_v6, %v7135_v45  ;;  %v2637_v24 = vsel %vm2633_vm5, %v7138_v13, %v7137_v46  ;;  %v2388_v51 = vsel %vm2380_vm2, %v7140_v49, %v7139_v10  ;;  %v7142_v18 = vld [vmem:[#allocation32_spill] sm:$0xff]  ;;  %v7143_v13 = vld [vmem:[#allocation135_spill] sm:$0xff]  ;;  %v7144_v6 = vld [vmem:[#allocation126_spill] sm:$0xff] }
 0x4cf   : > { %v1902_v42 = vpop.permute.xlu0 %1901  ;;  %v2313_v56 = vmul.f32 %v7141_v52, %v2253_v43  ;;  %v2748_v47 = vsel %vm5910_vm1, %v2724_v50, 0.0  ;;  %v2470_v29 = vmul.f32 %v7142_v18, %v2410_v62  ;;  %v2255_v45 = vsel %vm5910_vm1, %v2231_v1, 0.0  ;;  %v7145_v10 = vld [vmem:[#allocation157_spill] sm:$0xff]  ;;  %v7146_v43 = vld [vmem:[#allocation154_spill] sm:$0xff] }
 0x4d0   : > { %v2321_v19 = vadd.f32 %v2309_v22, %v2138_v32  ;;  %v1947_v48 = vmul.f32 %v1902_v42, %v1875_v40  ;;  %v2726_v46 = vsel %vm2718_vm3, %v7144_v6, %v7143_v13  ;;  %v2905_v49 = vsel %vm5895_vm14, %v6488_v25, 0.0  ;;  %v7147_v50 = vld [vmem:[#allocation58_spill] sm:$0xff]  ;;  %v7148_v1 = vld [vmem:[#allocation117_spill] sm:$0xff]  ;;  %v7149_v32 = vld [vmem:[#allocation116_spill] sm:$0xff] }
 0x4d1   : > { %v2412_v52 = vsel %vm5895_vm14, %v2388_v51, 0.0  ;;  %v2233_v42 = vsel %vm2223_vm15, %v7146_v43, %v7145_v10  ;;  %v2808_v62 = vmul.f32 %v7147_v50, %v2748_v47  ;;  %v2118_v18 = vsel %vm2112_vm0, %v7149_v32, %v7148_v1  ;;  %v7150_v13 = vld [vmem:[#allocation134_spill] sm:$0xff]  ;;  %v7151_v6 = vld [vmem:[#allocation127_spill] sm:$0xff]  ;;  %v7156_v50 = vld [vmem:[#allocation20_spill] sm:$0xff] }
 0x4d2   : > { %v2478_v40 = vadd.f32 %v2466_v54, %v2321_v19  ;;  %v2140_v22 = vadd.f32 %v2116_v11, %v1947_v48  ;;  %v2883_v30 = vsel %vm2875_vm4, %v7151_v6, %v7150_v13  ;;  %v7152_v25 = vld [vmem:[#allocation158_spill] sm:$0xff]  ;;  %v2750_v10 = vsel %vm5910_vm1, %v2726_v46, 0.0  ;;  %v7155_v48 = vld [vmem:[#allocation115_spill] sm:$0xff]  ;;  %v3347_v6 = vpop.permute.xlu1 %3346 }
 0x4d3   : > { %v2390_v51 = vsel %vm2380_vm2, %v7153_v63, %v7152_v25  ;;  %v1912_v28 = vpop.permute.xlu0 %1911  ;;  %v7154_v47 = vld [vmem:[#allocation118_spill] sm:$0xff]  ;;  %v2315_v1 = vmul.f32 %v7156_v50, %v2255_v45  ;;  %v7157_v32 = vld [vmem:[#allocation35_spill] sm:$0xff]  ;;  %v2257_v13 = vsel %vm5910_vm1, %v2233_v42, 0.0  ;;  %v2907_v42 = vsel %vm5895_vm14, %v2883_v30, 0.0 }
 0x4d4   : > { %v2659_v54 = vadd.f32 %v2635_v61, %v2478_v40  ;;  %v2323_v11 = vadd.f32 %v2311_v41, %v2140_v22  ;;  %v1949_v19 = vmul.f32 %v1912_v28, %v1877_v38  ;;  %v2639_v43 = vsel %vm2633_vm5, %v7155_v48, %v7154_v47  ;;  %v7158_v41 = vld [vmem:[#allocation60_spill] sm:$0xff]  ;;  %v7159_v38 = vld [vmem:[#allocation142_spill] sm:$0xff]  ;;  %v7160_v40 = vld [vmem:[#allocation139_spill] sm:$0xff] }
 0x4d5   : > { %v2472_v27 = vmul.f32 %v7157_v32, %v2412_v52  ;;  %v2414_v63 = vsel %vm5895_vm14, %v2390_v51, 0.0  ;;  %v2810_v28 = vmul.f32 %v7158_v41, %v2750_v10  ;;  %v2120_v22 = vsel %vm2112_vm0, %v7160_v40, %v7159_v38  ;;  %v7161_v47 = vld [vmem:[#allocation160_spill] sm:$0xff]  ;;  %v7162_v45 = vld [vmem:[#allocation155_spill] sm:$0xff]  ;;  %v7165_v10 = vld [vmem:[#allocation138_spill] sm:$0xff] }
 0x4d6   : > { %v2480_v25 = vadd.f32 %v2468_v5, %v2323_v11  ;;  %v2142_v46 = vadd.f32 %v2118_v18, %v1949_v19  ;;  %v2816_v61 = vadd.f32 %v2804_v14, %v2659_v54  ;;  %v2728_v52 = vsel %vm2718_vm3, %v7162_v45, %v7161_v47  ;;  %v7164_v51 = vld [vmem:[#allocation143_spill] sm:$0xff]  ;;  %v7166_v11 = vld [vmem:[#allocation21_spill] sm:$0xff] }
 0x4d7   : > { %v1922_v48 = vpop.permute.xlu0 %1921  ;;  %v7163_v14 = vsel %vm5895_vm14, %v7047_v35, 0.0  ;;  %v2641_v54 = vsel %vm2633_vm5, %v7165_v10, %v7164_v51  ;;  %v2317_v19 = vmul.f32 %v7166_v11, %v2257_v13  ;;  %v7167_v41 = vld [vmem:[#allocation39_spill] sm:$0xff]  ;;  %v2963_v40 = vmul.f32 %v6007_v58, %v2903_v0 }
 0x4d8   : > { %v2661_v50 = vadd.f32 %v2637_v24, %v2480_v25  ;;  %v2325_v32 = vadd.f32 %v2313_v56, %v2142_v46  ;;  %v1951_v5 = vmul.f32 %v1922_v48, %v7163_v14  ;;  %v2973_v18 = vadd.f32 %v2961_v9, %v2816_v61  ;;  %v7168_v9 = vld [vmem:[#allocation173_spill] sm:$0xff]  ;;  %v7169_v46 = vld [vmem:[#allocation172_spill] sm:$0xff]  ;;  %v7172_v45 = vld [vmem:[#allocation163_spill] sm:$0xff] }
 0x4d9   : > { %v2474_v38 = vmul.f32 %v7167_v41, %v2414_v63  ;;  %v2752_v35 = vsel %vm5910_vm1, %v2728_v52, 0.0  ;;  %v2235_v25 = vsel %vm2223_vm15, %v7168_v9, %v5905_v55  ;;  %v2392_v13 = vsel %vm2380_vm2, %v7169_v46, %v5915_v57  ;;  %v7173_v52 = vld [vmem:[#allocation162_spill] sm:$0xff] }
 0x4da   : > { %v2818_v30 = vadd.f32 %v2806_v53, %v2661_v50  ;;  %v2482_v47 = vadd.f32 %v2470_v29, %v2325_v32  ;;  %v2144_v24 = vadd.f32 %v2120_v22, %v1951_v5  ;;  %v3154_v56 = vadd.f32 %v6239_v7, %v2973_v18  ;;  %v3352_v53 = vpop.permute.xlu1 %3351 }
 0x4db   : > { %v7170_v58 = vsel %vm5910_vm1, %v6321_v4, 0.0  ;;  %v1932_v7 = vpop.permute.xlu0 %1931  ;;  %v7171_v55 = vsel %vm5895_vm14, %v7050_v16, 0.0  ;;  %v2122_v57 = vsel %vm2112_vm0, %v7173_v52, %v7172_v45  ;;  %v2965_v48 = vmul.f32 %v6036_v8, %v2905_v49  ;;  %v7175_v16 = vld [vmem:[#allocation62_spill] sm:$0xff] }
 0x4dc   : > { %v3299_v0 = vmul.f32 %v6369_v2, %v7170_v58  ;;  %v2975_v29 = vadd.f32 %v2963_v40, %v2818_v30  ;;  %v2663_v63 = vadd.f32 %v2639_v43, %v2482_v47  ;;  %v2327_v61 = vadd.f32 %v2315_v1, %v2144_v24  ;;  %v7180_v24 = vld [vmem:[#allocation22_spill] sm:$0xff] }
 0x4dd   : > { %v1953_v22 = vmul.f32 %v1932_v7, %v7171_v55  ;;  %v7174_v4 = vsel %vm5910_vm1, %v6330_v31, 0.0  ;;  %v2812_v5 = vmul.f32 %v7175_v16, %v2752_v35  ;;  %v2259_v18 = vsel %vm5910_vm1, %v2235_v25, 0.0  ;;  %v7185_v7 = vld [vmem:[#allocation103_spill] sm:$0xff] }
 0x4de   : > { %v3301_v2 = vmul.f32 %v6374_v33, %v7174_v4  ;;  %v3311_v50 = vadd.f32 %v3299_v0, %v3154_v56  ;;  %v3156_v43 = vadd.f32 %v6256_v21, %v2975_v29  ;;  %v2820_v1 = vadd.f32 %v2808_v62, %v2663_v63  ;;  %v3362_v40 = vpop.permute.xlu1 %3361  ;;  %v7184_v0 = vld [vmem:[#allocation28_spill] sm:$0xff] }
 0x4df   : > { %v2484_v32 = vadd.f32 %v2472_v27, %v2327_v61  ;;  %v2146_v14 = vadd.f32 %v2122_v57, %v1953_v22  ;;  %v2416_v8 = vsel %vm5895_vm14, %v2392_v13, 0.0  ;;  %v2124_v31 = vsel %vm2112_vm0, %v5978_v36, %v6005_v39  ;;  %v1942_v33 = vpop.permute.xlu0 %1941  ;;  %v7187_v63 = vld [vmem:[#allocation176_spill] sm:$0xff] }
 0x4e0   : > { %v3313_v49 = vadd.f32 %v3301_v2, %v3156_v43  ;;  %v2977_v51 = vadd.f32 %v2965_v48, %v2820_v1  ;;  %v2967_v27 = vmul.f32 %v6060_v26, %v2907_v42  ;;  %v7176_v10 = vsel %vm5910_vm1, %v6339_v37, 0.0  ;;  %v7178_v26 = vld [vmem:[#allocation164_spill] sm:$0xff]  ;;  %v7179_v42 = vld [vmem:[#allocation161_spill] sm:$0xff]  ;;  %v7188_v48 = vld [vmem:[#allocation15_spill] sm:$0xff] }
 0x4e1   : > { %v2665_v21 = vadd.f32 %v2641_v54, %v2484_v32  ;;  %v2329_v62 = vadd.f32 %v2317_v19, %v2146_v14  ;;  %v3303_v11 = vmul.f32 %v6379_v15, %v7176_v10  ;;  %v3396_v41 = vadd.f32 %v3347_v6, %v6377_v44  ;;  %v7181_v44 = vld [vmem:[#allocation174_spill] sm:$0xff]  ;;  %v7189_v2 = vld [vmem:[#allocation165_spill] sm:$0xff]  ;;  %v7190_v43 = vld [vmem:[#allocation64_spill] sm:$0xff] }
 0x4e2   : > { %v7177_v36 = vsel %vm5895_vm14, %v7053_v20, 0.0  ;;  %v3397_v30 = vadd.f32 %v3352_v53, %v3313_v49  ;;  %v3158_v54 = vadd.f32 %v6271_v60, %v2977_v51  ;;  %v2643_v37 = vsel %vm2633_vm5, %v7179_v42, %v7178_v26  ;;  %v7182_v60 = vld [vmem:[#allocation43_spill] sm:$0xff]  ;;  %v3372_v55 = vpop.permute.xlu1 %3371  ;;  %v7191_v14 = vld [vmem:[#allocation122_spill] sm:$0xff]  ;;  %v7195_v49 = vld [vmem:[#allocation121_spill] sm:$0xff] }
 0x4e3   : > { %v1955_v39 = vmul.f32 %v1942_v33, %v7177_v36  ;;  %v2822_v19 = vadd.f32 %v2810_v28, %v2665_v21  ;;  %v2486_v47 = vadd.f32 %v2474_v38, %v2329_v62  ;;  %v2319_v15 = vmul.f32 %v7180_v24, %v2259_v18  ;;  %v3342_v56 = vpop.permute.xlu0 %3341  ;;  %v7196_v51 = vld [vmem:[#allocation168_spill] sm:$0xff]  ;;  %v7200_v42 = vld [vmem:[#allocation105_spill] sm:$0xff] }
 0x4e4   : > { %v2730_v6 = vsel %vm2718_vm3, %v7181_v44, %v5943_v59  ;;  %v3659_v20 = vpack.c.bf16 %v3397_v30, %v3396_v41  ;;  %v3315_v35 = vadd.f32 %v3303_v11, %v3158_v54  ;;  %v2476_v28 = vmul.f32 %v7182_v60, %v2416_v8  ;;  %v7194_v8 = vld [vmem:[#allocation106_spill] sm:$0xff]  ;;  %v7197_v41 = vld [vmem:[#allocation57_spill] sm:$0xff]  ;;  %v7201_v44 = vld [vmem:[#allocation119_spill] sm:$0xff] }
 0x4e5   : > { %v2148_v17 = vadd.f32 %v2124_v31, %v1955_v39  ;;  %v2979_v9 = vadd.f32 %v2967_v27, %v2822_v19  ;;  %v2667_v25 = vadd.f32 %v2643_v37, %v2486_v47  ;;  %v3394_v38 = vadd.f32 %v6503_v34, %v6372_v23  ;;  %v7186_v34 = vld [vmem:[#allocation104_spill] sm:$0xff]  ;;  %v7198_v39 = vld [vmem:[#allocation23_spill] sm:$0xff]  ;;  %v7199_v47 = vld [vmem:[#allocation25_spill] sm:$0xff] }
 0x4e6   : > { %v3395_v13 = vadd.f32 %v3342_v56, %v3311_v50  ;;  %v2754_v58 = vsel %vm5910_vm1, %v2730_v6, 0.0  ;;  %v7183_v59 = vsel %vm5910_vm1, %v6348_v12, 0.0  ;;  %3681 = vst [vmem:[%s6630_s7 + $0x8] sm:$0xff] %v3659_v20   ;;  %v2645_v61 = vsel %vm2633_vm5, %v7187_v63, %v7186_v34  ;;  %v3382_v36 = vpop.permute.xlu1 %3381 }
 0x4e7   : > { %v2331_v46 = vadd.f32 %v2319_v15, %v2148_v17  ;;  %v3305_v53 = vmul.f32 %v7184_v0, %v7183_v59  ;;  %v3160_v29 = vadd.f32 %v7185_v7, %v2979_v9  ;;  %v2824_v23 = vadd.f32 %v2812_v5, %v2667_v25  ;;  %v3357_v52 = vpop.permute.xlu0 %3356  ;;  %v7193_v5 = vld [vmem:[#allocation120_spill] sm:$0xff]  ;;  %v7202_v9 = vld [vmem:[#allocation59_spill] sm:$0xff] }
 0x4e8   : > { %v3654_v45 = vpack.c.bf16 %v3395_v13, %v3394_v38  ;;  %v3399_v12 = vadd.f32 %v3362_v40, %v3315_v35  ;;  %v3398_v50 = vadd.f32 %v3357_v52, %v7189_v2  ;;  %v2814_v1 = vmul.f32 %v7190_v43, %v2754_v58 }
 0x4e9   : > { %v2488_v22 = vadd.f32 %v2476_v28, %v2331_v46  ;;  %v3317_v57 = vadd.f32 %v3305_v53, %v3160_v29  ;;  %v2981_v4 = vadd.f32 %v7188_v48, %v2824_v23  ;;  %v7192_v16 = vsel %vm5910_vm1, %v7191_v14, 0.0 }
 0x4ea   : > { %3655 = vst [vmem:[%s6630_s7] sm:$0xff] %v3654_v45   ;;  %v3307_v18 = vmul.f32 %v7193_v5, %v7192_v16  ;;  %v3664_v33 = vpack.c.bf16 %v3399_v12, %v3398_v50  ;;  %v3225_v21 = vsel %vm3213_vm7, %v7196_v51, %v7195_v49  ;;  %v3392_v3 = vpop.permute.xlu1 %3391 }
 0x4eb   : > { %v2669_v32 = vadd.f32 %v2645_v61, %v2488_v22  ;;  %v3162_v31 = vadd.f32 %v7194_v8, %v2981_v4  ;;  %v3367_v27 = vpop.permute.xlu0 %3366  ;;  %v3401_v10 = vadd.f32 %v3372_v55, %v3317_v57  ;;  %v3249_v54 = vsel %vm5910_vm1, %v3225_v21, 0.0 }
 0x4ec   : > { %3682 = vst [vmem:[%s6630_s7 + $0x10] sm:$0xff] %v3664_v33   ;;  %v3400_v40 = vadd.f32 %v3367_v27, %v7197_v41  ;;  %v3309_v26 = vmul.f32 %v7199_v47, %v3249_v54 }
 0x4ed   : > { %v2826_v62 = vadd.f32 %v2814_v1, %v2669_v32  ;;  %v3319_v11 = vadd.f32 %v3307_v18, %v3162_v31 }
 0x4ee   : > { %v3669_v19 = vpack.c.bf16 %v3401_v10, %v3400_v40 }
 0x4ef   : > { %v2983_v30 = vadd.f32 %v7198_v39, %v2826_v62  ;;  %v3377_v24 = vpop.permute.xlu0 %3376  ;;  %v3403_v15 = vadd.f32 %v3382_v36, %v3319_v11 }
 0x4f0   : > { %3683 = vst [vmem:[%s6630_s7 + $0x18] sm:$0xff] %v3669_v19   ;;  %v3402_v6 = vadd.f32 %v3377_v24, %v7201_v44 }
 0x4f1   : > { %v3164_v37 = vadd.f32 %v7200_v42, %v2983_v30 }
 0x4f2   : > { %v3674_v56 = vpack.c.bf16 %v3403_v15, %v3402_v6 }
 0x4f3   : > { %v3321_v17 = vadd.f32 %v3309_v26, %v3164_v37  ;;  %v3387_v20 = vpop.permute.xlu0 %3386 }
 0x4f4   : > { %3684 = vst [vmem:[%s6630_s7 + $0x20] sm:$0xff] %v3674_v56   ;;  %v3404_v25 = vadd.f32 %v3387_v20, %v7202_v9 }
 0x4f5   : > { %v3405_v35 = vadd.f32 %v3392_v3, %v3321_v17 }
 0x4f7   : > { %v3679_v60 = vpack.c.bf16 %v3405_v35, %v3404_v25 }
 0x4f9   : > { %3685 = vst [vmem:[%s6630_s7 + $0x28] sm:$0xff] %v3679_v60  }
 0x4fa   : > { %4050 = shalt.err (!%p4047_p2)
}
 0x4fb   : > { %s4051_s7 = scalar_lea.hbm %s6669_s20, 768  ;;  %s4055_s14 = scalar_lea.hbm %s7204_s18, 3072 }
 0x4fc   : > { %p4052_p3 = scmp.ne.s32.totalorder %s6669_s20, %s4051_s7  ;;  %p4056_p6 = scmp.lt.u32.totalorder %s6669_s20, %s7204_s18 }
 0x4fd   : > { %p4057_p7 = scmp.lt.u32.totalorder %s4055_s14, %s4051_s7  ;;  %p4059_p9 = scmp.lt.u32.totalorder %s4051_s7, %s6669_s20 }
 0x4fe   : > { %p4053_p4 = pnand %p4052_p3, %p4342_p13 }
 0x4ff   : > { %p4058_p8 = por %p4057_p7, %p4056_p6 }
 0x500   : > { %p4054_p5 = pneg %p4053_p4 }
 0x501   : > { %p4060_p10 = por %p4059_p9, %p4058_p8 }
 0x503   : > { %p4061_p11 = pnand %p4060_p10, %p4054_p5 }
 0x505   : > { %4064 = shalt.err (!%p4061_p11)
}
 0x506   : > { %s4189_s8 = smov 64   ;;  %s4190_s29 = smov 128  }
 0x507   : > { %s4191_s30 = smov 4  }
 0x508   : > { %3880 = dma.vmem_to_hbm [thread:$0]  (%p4342_p13), %s6662_s19, 768, %s6669_s20, %s3467_s0, %s4189_s8, %s4190_s29, %s4191_s30  }
 0x509 PF: > { %s7205_s25 = sld [smem:[#allocation8_spill]]  ;;  %p3886_p12 = scmp.ge.s32.totalorder %s4167_s12, 2 }
 0x50b   : > { %p3883_p0 = pnand %p3886_p12, %p4350_p1 }
 0x50f   : > { %s3496_s13 = sand.u32 1, %s7205_s25  }
 0x510   : > { %s3497_s7 = scalar_lea.sflag [#allocation6], %s3496_s13 }
 0x511   : > { %4114 = dma.done.wait (!%p3883_p0), %s3497_s7, 768  }
 0x512   : > { %4116 = vsyncadd (!%p3883_p0), %s3497_s7, 4294966528  ;;  %s20_s12 = sadd.s32 1, %s4167_s12   ;;  %s7206_s17 = sld [smem:[#allocation13_spill]] }
 0x513   : > { %p17_p2 = scmp.ge.s32.totalorder %s20_s12, 6   ;;  %s7207_s29 = sld [smem:[#allocation9_spill]] }
 0x514   : > { %s7208_s30 = sld [smem:[#allocation12_spill]]  ;;  %s7209_s23 = sld [smem:[#allocation10_spill]] }
 0x515   : > { %s7210_s19 = sld [smem:[#allocation11_spill]]  ;;  %s7211_s24 = smov %s4135_s27 }
 0x516   : > { %s7212_s25 = smov %s4131_s26  ;;  %s7213_s26 = smov %s4348_s21 }
 0x517   : > { %s7214_s27 = smov %s4139_s28  ;;  %s7216_s8 = smov %s4159_s10 }
 0x518   : > { %s7215_s28 = smov %s7206_s17  ;;  %s7217_s9 = smov %s4163_s11 }
 0x519   :  { %19 = sbr.rel (!%p17_p2) target bundleno = 10 (0xa), region = 218 }
 0x51a   : > { %s7218_s10 = smov %s7209_s23 }
 0x51b   : > { %s7219_s11 = smov %s7210_s19 }
 0x520   :  { %3502 = vsyncpa [#allocation6], 1 }
 0x521   :  { %3504 = vsyncpa [#allocation6 + $0x1], 1 }

</bundles_post_ra>
